<compile_context>
chip_gen: v5e
topology: v5e:2x2
jax: 0.10.0
libtpu: 0.0.40
codegen_flags: <defaults>
</compile_context>

<pallas_src>
import jax
import jax.numpy as jnp
import numpy as np
from jax import lax
from jax.experimental import pallas as pl
from jax.experimental.pallas import tpu as pltpu


def _upconv_kernel(row_lo_ref,          # SMEM (Ho+2,) int32 : low source row per padded out row
                   x_ref,               # (1, Cin, H, W)     : input image (one batch element)
                   wlo_ref, whi_ref,    # (Ho+2, 1) f32      : vertical lerp weights (0 on pad rows)
                   uwt_ref,             # (W, Wo+2) f32      : horizontal interp matrix (+ pad cols)
                   wmats_ref,           # (3, Cout, 3*Cin)   : BN-scaled conv weights, per ky, (kx,ci)
                   bias_ref,            # (Cout, 1) f32      : folded conv+BN bias
                   o_ref,               # (1, Cout, tR, Wo)  : NCHW output tile
                   col_scr):            # VMEM (tR+2, 3*Cin, Wo) f32 : im2col rows (upsampled+padded)
    tR = o_ref.shape[2]
    Wo = o_ref.shape[3]

    r = pl.program_id(1)
    row0 = pl.multiple_of(r * tR, tR)           # first padded output row of this tile

    uwt = uwt_ref[...]                          # (W, Wo+2)
    wlo_t = wlo_ref[pl.ds(row0, tR + 2), :]     # (tR+2, 1)
    whi_t = whi_ref[pl.ds(row0, tR + 2), :]

    # ---- fused bilinear upsample (align_corners=True) + conv zero padding ----
    # One padded-upsampled row at a time: 2-tap vertical lerp (VPU), horizontal
    # interpolation matmul (MXU), then the row is stored to the scratch already
    # in im2col order: the three horizontal conv shifts stacked along sublanes
    # as (kx, ci).  Halo rows / pad cols come out as exact zeros because their
    # interpolation weights are zero, so they double as the conv's zero padding.
    for p in range(tR + 2):
        i0 = row_lo_ref[row0 + p]
        r_lo = x_ref[0, :, i0, :].astype(jnp.float32)        # (Cin, W)
        r_hi = x_ref[0, :, i0 + 1, :].astype(jnp.float32)    # (Cin, W)
        blended = wlo_t[p:p + 1, :] * r_lo + whi_t[p:p + 1, :] * r_hi
        up_row = jnp.dot(blended, uwt,
                         preferred_element_type=jnp.float32)  # (Cin, Wo+2)
        col_scr[p] = jnp.concatenate(
            [up_row[:, kx:kx + Wo] for kx in range(3)], axis=0)  # (3*Cin, Wo)

    # ---- 3x3 conv (BN folded) + bias + ReLU ----
    # Per output row: three accumulated MXU matmuls (one per vertical tap ky),
    # each reading a full scratch row — no slicing / concat in the hot loop.
    w0 = wmats_ref[0]                           # (Cout, 3*Cin)
    w1 = wmats_ref[1]
    w2 = wmats_ref[2]
    bias = bias_ref[...]                        # (Cout, 1)
    for y in range(tR):
        acc = jnp.dot(w0, col_scr[y], preferred_element_type=jnp.float32)
        acc = acc + jnp.dot(w1, col_scr[y + 1], preferred_element_type=jnp.float32)
        acc = acc + jnp.dot(w2, col_scr[y + 2], preferred_element_type=jnp.float32)
        o_ref[0, :, y, :] = jnp.maximum(acc + bias, 0.0).astype(o_ref.dtype)


def _lerp_table(in_size, out_size):
    """PyTorch align_corners=True source-index / fraction tables (host side)."""
    if in_size == 1 or out_size == 1:
        return np.zeros(out_size, np.int32), np.zeros(out_size, np.float32)
    src = np.arange(out_size) * (in_size - 1) / (out_size - 1)
    lo = np.clip(np.floor(src).astype(np.int32), 0, in_size - 2)
    frac = (src - lo).astype(np.float32)
    return lo, frac


def upconv_block(x, conv_w, conv_b, bn_gamma, bn_beta, bn_mean, bn_var,
                 *, eps=1e-5, block_rows=16):
    """Upsample(x2, bilinear, align_corners=True) -> Conv3x3(pad=1) -> BN(eval) -> ReLU.

    x       : (N, Cin, H, W)   NCHW, same as the PyTorch module
    conv_w  : (Cout, Cin, 3, 3), conv_b: (Cout,)
    bn_*    : (Cout,)          BatchNorm2d affine + running stats
    returns : (N, Cout, 2H, 2W) NCHW
    """
    N, Cin, H, W = x.shape
    Cout = conv_w.shape[0]
    Ho, Wo = 2 * H, 2 * W

    # --- fold BatchNorm (inference) into the conv weights / bias ---
    scale = bn_gamma / jnp.sqrt(bn_var + eps)                          # (Cout,)
    w_scaled = conv_w * scale[:, None, None, None]                     # (Cout,Cin,3,3)
    # per-ky matrices, inner order (kx, ci) to match the im2col scratch rows
    wmats = w_scaled.transpose(2, 0, 3, 1).reshape(3, Cout, 3 * Cin)   # (ky,Cout,kx*Cin+ci)
    bias = ((conv_b - bn_mean) * scale + bn_beta).reshape(Cout, 1)

    # --- bilinear align_corners=True tables (tiny, built host side) ---
    lo_h, fr_h = _lerp_table(H, Ho)
    row_lo = np.zeros(Ho + 2, np.int32)
    w_lo = np.zeros((Ho + 2, 1), np.float32)
    w_hi = np.zeros((Ho + 2, 1), np.float32)
    row_lo[1:Ho + 1] = lo_h
    w_lo[1:Ho + 1, 0] = 1.0 - fr_h          # rows 0 / Ho+1 keep zero weights ->
    w_hi[1:Ho + 1, 0] = fr_h                # they become the conv's zero-pad rows

    lo_w, fr_w = _lerp_table(W, Wo)
    uwt = np.zeros((W, Wo + 2), np.float32)  # cols 0 / Wo+1 stay zero -> pad cols
    cols = np.arange(Wo) + 1
    uwt[lo_w, cols] = 1.0 - fr_w
    uwt[lo_w + 1, cols] += fr_w

    # --- tiling over output rows ---
    tR = block_rows
    if Ho % tR != 0 or (tR % 8 != 0 and tR != Ho):
        tR = Ho                              # fall back to a single row tile

    kernel = pl.pallas_call(
        _upconv_kernel,
        out_shape=jax.ShapeDtypeStruct((N, Cout, Ho, Wo), x.dtype),
        grid_spec=pltpu.PrefetchScalarGridSpec(
            num_scalar_prefetch=1,
            grid=(N, Ho // tR),
            in_specs=[
                # Input block depends only on the batch index -> DMA'd once per
                # batch element and reused by every row tile.
                pl.BlockSpec((1, Cin, H, W), lambda n, r, *_: (n, 0, 0, 0)),
                pl.BlockSpec((Ho + 2, 1), lambda n, r, *_: (0, 0)),
                pl.BlockSpec((Ho + 2, 1), lambda n, r, *_: (0, 0)),
                pl.BlockSpec((W, Wo + 2), lambda n, r, *_: (0, 0)),
                pl.BlockSpec((3, Cout, 3 * Cin), lambda n, r, *_: (0, 0, 0)),
                pl.BlockSpec((Cout, 1), lambda n, r, *_: (0, 0)),
            ],
            out_specs=pl.BlockSpec((1, Cout, tR, Wo),
                                   lambda n, r, *_: (n, 0, r, 0)),
            scratch_shapes=[pltpu.VMEM((tR + 2, 3 * Cin, Wo), jnp.float32)],
        ),
        compiler_params=pltpu.CompilerParams(
            dimension_semantics=("parallel", "parallel"),
            vmem_limit_bytes=48 * 1024 * 1024,
        ),
    )

    return kernel(jnp.asarray(row_lo), x,
                  jnp.asarray(w_lo), jnp.asarray(w_hi), jnp.asarray(uwt),
                  wmats, bias)


def _reference(x, conv_w, conv_b, bn_gamma, bn_beta, bn_mean, bn_var, eps=1e-5):
    """Pure-JAX reference (gather/lerp upsample + lax.conv + BN eval + ReLU)."""
    N, Cin, H, W = x.shape
    Ho, Wo = 2 * H, 2 * W

    def coords(in_size, out_size):
        src = jnp.arange(out_size) * (in_size - 1) / (out_size - 1)
        lo = jnp.clip(jnp.floor(src).astype(jnp.int32), 0, in_size - 2)
        return lo, (src - lo).astype(x.dtype)

    iy, fy = coords(H, Ho)
    ix, fx = coords(W, Wo)
    rows = (x[:, :, iy, :] * (1.0 - fy)[None, None, :, None]
            + x[:, :, iy + 1, :] * fy[None, None, :, None])
    up = (rows[:, :, :, ix] * (1.0 - fx)[None, None, None, :]
          + rows[:, :, :, ix + 1] * fx[None, None, None, :])

    y = lax.conv_general_dilated(up, conv_w, (1, 1), ((1, 1), (1, 1)),
                                 dimension_numbers=("NCHW", "OIHW", "NCHW"))
    y = y + conv_b[None, :, None, None]
    y = (y - bn_mean[None, :, None, None]) / jnp.sqrt(
        bn_var[None, :, None, None] + eps)
    y = y * bn_gamma[None, :, None, None] + bn_beta[None, :, None, None]
    return jnp.maximum(y, 0.0)


if __name__ == "__main__":
    key = jax.random.PRNGKey(0)
    ks = jax.random.split(key, 7)
    N, Cin, Cout, H, W = 2, 4, 8, 16, 16

    x = jax.random.normal(ks[0], (N, Cin, H, W), dtype=jnp.float32)
    conv_w = jax.random.normal(ks[1], (Cout, Cin, 3, 3), dtype=jnp.float32) * 0.1
    conv_b = jax.random.normal(ks[2], (Cout,), dtype=jnp.float32) * 0.1
    # BatchNorm folded in inference mode (running stats); non-trivial values so
    # the folding is actually exercised (PyTorch default init would be
    # gamma=1, beta=0, mean=0, var=1).
    # TODO(synk): training-mode BatchNorm (batch statistics) is not computed
    # in-kernel; this implements the eval-mode forward pass.
    bn_gamma = 1.0 + 0.1 * jax.random.normal(ks[3], (Cout,), dtype=jnp.float32)
    bn_beta = 0.1 * jax.random.normal(ks[4], (Cout,), dtype=jnp.float32)
    bn_mean = 0.05 * jax.random.normal(ks[5], (Cout,), dtype=jnp.float32)
    bn_var = 1.0 + 0.1 * jax.random.uniform(ks[6], (Cout,), dtype=jnp.float32)

    out = jax.jit(upconv_block)(x, conv_w, conv_b,
                                bn_gamma, bn_beta, bn_mean, bn_var)
    out = jax.block_until_ready(out)

    ref = _reference(x, conv_w, conv_b, bn_gamma, bn_beta, bn_mean, bn_var)
    assert out.shape == (N, Cout, 2 * H, 2 * W), out.shape
    assert jnp.allclose(out, ref, atol=1e-4, rtol=1e-4), \
        float(jnp.max(jnp.abs(out - ref)))

    print("KERNEL_OK")
</pallas_src>

<mosaic_0001>
module attributes {stable_mosaic.version = 11 : i64} {
  func.func @_upconv_kernel(%arg0: i32, %arg1: i32, %arg2: memref<34xi32, #tpu.memory_space<smem>>, %arg3: memref<1x4x16x16xf32, #tpu.memory_space<vmem>>, %arg4: memref<34x1xf32, #tpu.memory_space<vmem>>, %arg5: memref<34x1xf32, #tpu.memory_space<vmem>>, %arg6: memref<16x34xf32, #tpu.memory_space<vmem>>, %arg7: memref<3x8x12xf32, #tpu.memory_space<vmem>>, %arg8: memref<8x1xf32, #tpu.memory_space<vmem>>, %arg9: memref<1x8x16x32xf32, #tpu.memory_space<vmem>>, %arg10: memref<18x12x32xf32, #tpu.memory_space<vmem>>) attributes {dimension_semantics = [#tpu.dimension_semantics<parallel>, #tpu.dimension_semantics<parallel>], iteration_bounds = array<i64: 2, 2>, scalar_prefetch = 1 : i64, scratch_operands = 1 : i64, tpu.core_type = #tpu.core_type<tc>, window_params = [{transform_indices = @transform_0, window_bounds = array<i64: 1, 4, 16, 16>}, {pipeline_mode = #tpu.pipeline_mode<synchronous>, transform_indices = @transform_1, window_bounds = array<i64: 34, 1>}, {pipeline_mode = #tpu.pipeline_mode<synchronous>, transform_indices = @transform_2, window_bounds = array<i64: 34, 1>}, {pipeline_mode = #tpu.pipeline_mode<synchronous>, transform_indices = @transform_3, window_bounds = array<i64: 16, 34>}, {pipeline_mode = #tpu.pipeline_mode<synchronous>, transform_indices = @transform_4, window_bounds = array<i64: 3, 8, 12>}, {pipeline_mode = #tpu.pipeline_mode<synchronous>, transform_indices = @transform_5, window_bounds = array<i64: 8, 1>}, {transform_indices = @transform_6, window_bounds = array<i64: 1, 8, 16, 32>}]} {
    %c16_i32 = arith.constant 16 : i32
    %0 = arith.muli %arg1, %c16_i32 : i32
    %1 = tpu.assume_multiple %0, 16 : i32
    %c0 = arith.constant 0 : index
    %c0_0 = arith.constant 0 : index
    %2 = vector.load %arg6[%c0, %c0_0] : memref<16x34xf32, #tpu.memory_space<vmem>>, vector<16x34xf32>
    %3 = arith.index_cast %1 : i32 to index
    %c0_1 = arith.constant 0 : index
    %4 = vector.load %arg4[%3, %c0_1] : memref<34x1xf32, #tpu.memory_space<vmem>>, vector<18x1xf32>
    %5 = arith.index_cast %1 : i32 to index
    %c0_2 = arith.constant 0 : index
    %6 = vector.load %arg5[%5, %c0_2] : memref<34x1xf32, #tpu.memory_space<vmem>>, vector<18x1xf32>
    %c0_i32 = arith.constant 0 : i32
    %7 = arith.addi %1, %c0_i32 : i32
    %8 = arith.index_cast %7 : i32 to index
    %9 = memref.load %arg2[%8] : memref<34xi32, #tpu.memory_space<smem>>
    %c0_3 = arith.constant 0 : index
    %c0_4 = arith.constant 0 : index
    %10 = arith.index_cast %9 : i32 to index
    %c0_5 = arith.constant 0 : index
    %11 = vector.load %arg3[%c0_3, %c0_4, %10, %c0_5] : memref<1x4x16x16xf32, #tpu.memory_space<vmem>>, vector<1x4x1x16xf32>
    %12 = vector.shape_cast %11 : vector<1x4x1x16xf32> to vector<4x16xf32>
    %c1_i32 = arith.constant 1 : i32
    %13 = arith.addi %9, %c1_i32 : i32
    %c0_6 = arith.constant 0 : index
    %c0_7 = arith.constant 0 : index
    %14 = arith.index_cast %13 : i32 to index
    %c0_8 = arith.constant 0 : index
    %15 = vector.load %arg3[%c0_6, %c0_7, %14, %c0_8] : memref<1x4x16x16xf32, #tpu.memory_space<vmem>>, vector<1x4x1x16xf32>
    %16 = vector.shape_cast %15 : vector<1x4x1x16xf32> to vector<4x16xf32>
    %17 = vector.extract_strided_slice %4 {offsets = [0, 0], sizes = [1, 1], strides = [1, 1]} : vector<18x1xf32> to vector<1x1xf32>
    %18 = vector.broadcast %17 : vector<1x1xf32> to vector<4x16xf32>
    %19 = arith.mulf %18, %12 : vector<4x16xf32>
    %20 = vector.extract_strided_slice %6 {offsets = [0, 0], sizes = [1, 1], strides = [1, 1]} : vector<18x1xf32> to vector<1x1xf32>
    %21 = vector.broadcast %20 : vector<1x1xf32> to vector<4x16xf32>
    %22 = arith.mulf %21, %16 : vector<4x16xf32>
    %23 = arith.addf %19, %22 : vector<4x16xf32>
    %cst = arith.constant dense<0.000000e+00> : vector<4x34xf32>
    %24 = tpu.matmul %23, %2, %cst {dimension_numbers = #tpu.dot_dimension_numbers<[1], [0], [0], [1], [0, 0, 1, 1], [], []>} : vector<4x16xf32>, vector<16x34xf32>, vector<4x34xf32> -> vector<4x34xf32>
    %25 = vector.extract_strided_slice %24 {offsets = [0, 0], sizes = [4, 32], strides = [1, 1]} : vector<4x34xf32> to vector<4x32xf32>
    %26 = vector.extract_strided_slice %24 {offsets = [0, 1], sizes = [4, 32], strides = [1, 1]} : vector<4x34xf32> to vector<4x32xf32>
    %27 = vector.extract_strided_slice %24 {offsets = [0, 2], sizes = [4, 32], strides = [1, 1]} : vector<4x34xf32> to vector<4x32xf32>
    %28 = tpu.concatenate %25, %26, %27 in 0 : vector<4x32xf32>, vector<4x32xf32>, vector<4x32xf32> -> vector<12x32xf32>
    %c0_9 = arith.constant 0 : index
    %c0_10 = arith.constant 0 : index
    %c0_11 = arith.constant 0 : index
    %29 = vector.load %arg10[%c0_9, %c0_10, %c0_11] : memref<18x12x32xf32, #tpu.memory_space<vmem>>, vector<1x12x32xf32>
    %30 = vector.shape_cast %29 : vector<1x12x32xf32> to vector<12x32xf32>
    %31 = vector.shape_cast %28 : vector<12x32xf32> to vector<1x12x32xf32>
    tpu.vector_store %arg10[%c0_9, %c0_10, %c0_11], %31 {strides = array<i32>} : memref<18x12x32xf32, #tpu.memory_space<vmem>>, vector<1x12x32xf32>,
    %c1_i32_12 = arith.constant 1 : i32
    %32 = arith.addi %1, %c1_i32_12 : i32
    %33 = arith.index_cast %32 : i32 to index
    %34 = memref.load %arg2[%33] : memref<34xi32, #tpu.memory_space<smem>>
    %c0_13 = arith.constant 0 : index
    %c0_14 = arith.constant 0 : index
    %35 = arith.index_cast %34 : i32 to index
    %c0_15 = arith.constant 0 : index
    %36 = vector.load %arg3[%c0_13, %c0_14, %35, %c0_15] : memref<1x4x16x16xf32, #tpu.memory_space<vmem>>, vector<1x4x1x16xf32>
    %37 = vector.shape_cast %36 : vector<1x4x1x16xf32> to vector<4x16xf32>
    %c1_i32_16 = arith.constant 1 : i32
    %38 = arith.addi %34, %c1_i32_16 : i32
    %c0_17 = arith.constant 0 : index
    %c0_18 = arith.constant 0 : index
    %39 = arith.index_cast %38 : i32 to index
    %c0_19 = arith.constant 0 : index
    %40 = vector.load %arg3[%c0_17, %c0_18, %39, %c0_19] : memref<1x4x16x16xf32, #tpu.memory_space<vmem>>, vector<1x4x1x16xf32>
    %41 = vector.shape_cast %40 : vector<1x4x1x16xf32> to vector<4x16xf32>
    %42 = vector.extract_strided_slice %4 {offsets = [1, 0], sizes = [1, 1], strides = [1, 1]} : vector<18x1xf32> to vector<1x1xf32>
    %43 = vector.broadcast %42 : vector<1x1xf32> to vector<4x16xf32>
    %44 = arith.mulf %43, %37 : vector<4x16xf32>
    %45 = vector.extract_strided_slice %6 {offsets = [1, 0], sizes = [1, 1], strides = [1, 1]} : vector<18x1xf32> to vector<1x1xf32>
    %46 = vector.broadcast %45 : vector<1x1xf32> to vector<4x16xf32>
    %47 = arith.mulf %46, %41 : vector<4x16xf32>
    %48 = arith.addf %44, %47 : vector<4x16xf32>
    %cst_20 = arith.constant dense<0.000000e+00> : vector<4x34xf32>
    %49 = tpu.matmul %48, %2, %cst_20 {dimension_numbers = #tpu.dot_dimension_numbers<[1], [0], [0], [1], [0, 0, 1, 1], [], []>} : vector<4x16xf32>, vector<16x34xf32>, vector<4x34xf32> -> vector<4x34xf32>
    %50 = vector.extract_strided_slice %49 {offsets = [0, 0], sizes = [4, 32], strides = [1, 1]} : vector<4x34xf32> to vector<4x32xf32>
    %51 = vector.extract_strided_slice %49 {offsets = [0, 1], sizes = [4, 32], strides = [1, 1]} : vector<4x34xf32> to vector<4x32xf32>
    %52 = vector.extract_strided_slice %49 {offsets = [0, 2], sizes = [4, 32], strides = [1, 1]} : vector<4x34xf32> to vector<4x32xf32>
    %53 = tpu.concatenate %50, %51, %52 in 0 : vector<4x32xf32>, vector<4x32xf32>, vector<4x32xf32> -> vector<12x32xf32>
    %c1 = arith.constant 1 : index
    %c0_21 = arith.constant 0 : index
    %c0_22 = arith.constant 0 : index
    %54 = vector.load %arg10[%c1, %c0_21, %c0_22] : memref<18x12x32xf32, #tpu.memory_space<vmem>>, vector<1x12x32xf32>
    %55 = vector.shape_cast %54 : vector<1x12x32xf32> to vector<12x32xf32>
    %56 = vector.shape_cast %53 : vector<12x32xf32> to vector<1x12x32xf32>
    tpu.vector_store %arg10[%c1, %c0_21, %c0_22], %56 {strides = array<i32>} : memref<18x12x32xf32, #tpu.memory_space<vmem>>, vector<1x12x32xf32>,
    %c2_i32 = arith.constant 2 : i32
    %57 = arith.addi %1, %c2_i32 : i32
    %58 = arith.index_cast %57 : i32 to index
    %59 = memref.load %arg2[%58] : memref<34xi32, #tpu.memory_space<smem>>
    %c0_23 = arith.constant 0 : index
    %c0_24 = arith.constant 0 : index
    %60 = arith.index_cast %59 : i32 to index
    %c0_25 = arith.constant 0 : index
    %61 = vector.load %arg3[%c0_23, %c0_24, %60, %c0_25] : memref<1x4x16x16xf32, #tpu.memory_space<vmem>>, vector<1x4x1x16xf32>
    %62 = vector.shape_cast %61 : vector<1x4x1x16xf32> to vector<4x16xf32>
    %c1_i32_26 = arith.constant 1 : i32
    %63 = arith.addi %59, %c1_i32_26 : i32
    %c0_27 = arith.constant 0 : index
    %c0_28 = arith.constant 0 : index
    %64 = arith.index_cast %63 : i32 to index
    %c0_29 = arith.constant 0 : index
    %65 = vector.load %arg3[%c0_27, %c0_28, %64, %c0_29] : memref<1x4x16x16xf32, #tpu.memory_space<vmem>>, vector<1x4x1x16xf32>
    %66 = vector.shape_cast %65 : vector<1x4x1x16xf32> to vector<4x16xf32>
    %67 = vector.extract_strided_slice %4 {offsets = [2, 0], sizes = [1, 1], strides = [1, 1]} : vector<18x1xf32> to vector<1x1xf32>
    %68 = vector.broadcast %67 : vector<1x1xf32> to vector<4x16xf32>
    %69 = arith.mulf %68, %62 : vector<4x16xf32>
    %70 = vector.extract_strided_slice %6 {offsets = [2, 0], sizes = [1, 1], strides = [1, 1]} : vector<18x1xf32> to vector<1x1xf32>
    %71 = vector.broadcast %70 : vector<1x1xf32> to vector<4x16xf32>
    %72 = arith.mulf %71, %66 : vector<4x16xf32>
    %73 = arith.addf %69, %72 : vector<4x16xf32>
    %cst_30 = arith.constant dense<0.000000e+00> : vector<4x34xf32>
    %74 = tpu.matmul %73, %2, %cst_30 {dimension_numbers = #tpu.dot_dimension_numbers<[1], [0], [0], [1], [0, 0, 1, 1], [], []>} : vector<4x16xf32>, vector<16x34xf32>, vector<4x34xf32> -> vector<4x34xf32>
    %75 = vector.extract_strided_slice %74 {offsets = [0, 0], sizes = [4, 32], strides = [1, 1]} : vector<4x34xf32> to vector<4x32xf32>
    %76 = vector.extract_strided_slice %74 {offsets = [0, 1], sizes = [4, 32], strides = [1, 1]} : vector<4x34xf32> to vector<4x32xf32>
    %77 = vector.extract_strided_slice %74 {offsets = [0, 2], sizes = [4, 32], strides = [1, 1]} : vector<4x34xf32> to vector<4x32xf32>
    %78 = tpu.concatenate %75, %76, %77 in 0 : vector<4x32xf32>, vector<4x32xf32>, vector<4x32xf32> -> vector<12x32xf32>
    %c2 = arith.constant 2 : index
    %c0_31 = arith.constant 0 : index
    %c0_32 = arith.constant 0 : index
    %79 = vector.load %arg10[%c2, %c0_31, %c0_32] : memref<18x12x32xf32, #tpu.memory_space<vmem>>, vector<1x12x32xf32>
    %80 = vector.shape_cast %79 : vector<1x12x32xf32> to vector<12x32xf32>
    %81 = vector.shape_cast %78 : vector<12x32xf32> to vector<1x12x32xf32>
    tpu.vector_store %arg10[%c2, %c0_31, %c0_32], %81 {strides = array<i32>} : memref<18x12x32xf32, #tpu.memory_space<vmem>>, vector<1x12x32xf32>,
    %c3_i32 = arith.constant 3 : i32
    %82 = arith.addi %1, %c3_i32 : i32
    %83 = arith.index_cast %82 : i32 to index
    %84 = memref.load %arg2[%83] : memref<34xi32, #tpu.memory_space<smem>>
    %c0_33 = arith.constant 0 : index
    %c0_34 = arith.constant 0 : index
    %85 = arith.index_cast %84 : i32 to index
    %c0_35 = arith.constant 0 : index
    %86 = vector.load %arg3[%c0_33, %c0_34, %85, %c0_35] : memref<1x4x16x16xf32, #tpu.memory_space<vmem>>, vector<1x4x1x16xf32>
    %87 = vector.shape_cast %86 : vector<1x4x1x16xf32> to vector<4x16xf32>
    %c1_i32_36 = arith.constant 1 : i32
    %88 = arith.addi %84, %c1_i32_36 : i32
    %c0_37 = arith.constant 0 : index
    %c0_38 = arith.constant 0 : index
    %89 = arith.index_cast %88 : i32 to index
    %c0_39 = arith.constant 0 : index
    %90 = vector.load %arg3[%c0_37, %c0_38, %89, %c0_39] : memref<1x4x16x16xf32, #tpu.memory_space<vmem>>, vector<1x4x1x16xf32>
    %91 = vector.shape_cast %90 : vector<1x4x1x16xf32> to vector<4x16xf32>
    %92 = vector.extract_strided_slice %4 {offsets = [3, 0], sizes = [1, 1], strides = [1, 1]} : vector<18x1xf32> to vector<1x1xf32>
    %93 = vector.broadcast %92 : vector<1x1xf32> to vector<4x16xf32>
    %94 = arith.mulf %93, %87 : vector<4x16xf32>
    %95 = vector.extract_strided_slice %6 {offsets = [3, 0], sizes = [1, 1], strides = [1, 1]} : vector<18x1xf32> to vector<1x1xf32>
    %96 = vector.broadcast %95 : vector<1x1xf32> to vector<4x16xf32>
    %97 = arith.mulf %96, %91 : vector<4x16xf32>
    %98 = arith.addf %94, %97 : vector<4x16xf32>
    %cst_40 = arith.constant dense<0.000000e+00> : vector<4x34xf32>
    %99 = tpu.matmul %98, %2, %cst_40 {dimension_numbers = #tpu.dot_dimension_numbers<[1], [0], [0], [1], [0, 0, 1, 1], [], []>} : vector<4x16xf32>, vector<16x34xf32>, vector<4x34xf32> -> vector<4x34xf32>
    %100 = vector.extract_strided_slice %99 {offsets = [0, 0], sizes = [4, 32], strides = [1, 1]} : vector<4x34xf32> to vector<4x32xf32>
    %101 = vector.extract_strided_slice %99 {offsets = [0, 1], sizes = [4, 32], strides = [1, 1]} : vector<4x34xf32> to vector<4x32xf32>
    %102 = vector.extract_strided_slice %99 {offsets = [0, 2], sizes = [4, 32], strides = [1, 1]} : vector<4x34xf32> to vector<4x32xf32>
    %103 = tpu.concatenate %100, %101, %102 in 0 : vector<4x32xf32>, vector<4x32xf32>, vector<4x32xf32> -> vector<12x32xf32>
    %c3 = arith.constant 3 : index
    %c0_41 = arith.constant 0 : index
    %c0_42 = arith.constant 0 : index
    %104 = vector.load %arg10[%c3, %c0_41, %c0_42] : memref<18x12x32xf32, #tpu.memory_space<vmem>>, vector<1x12x32xf32>
    %105 = vector.shape_cast %104 : vector<1x12x32xf32> to vector<12x32xf32>
    %106 = vector.shape_cast %103 : vector<12x32xf32> to vector<1x12x32xf32>
    tpu.vector_store %arg10[%c3, %c0_41, %c0_42], %106 {strides = array<i32>} : memref<18x12x32xf32, #tpu.memory_space<vmem>>, vector<1x12x32xf32>,
    %c4_i32 = arith.constant 4 : i32
    %107 = arith.addi %1, %c4_i32 : i32
    %108 = arith.index_cast %107 : i32 to index
    %109 = memref.load %arg2[%108] : memref<34xi32, #tpu.memory_space<smem>>
    %c0_43 = arith.constant 0 : index
    %c0_44 = arith.constant 0 : index
    %110 = arith.index_cast %109 : i32 to index
    %c0_45 = arith.constant 0 : index
    %111 = vector.load %arg3[%c0_43, %c0_44, %110, %c0_45] : memref<1x4x16x16xf32, #tpu.memory_space<vmem>>, vector<1x4x1x16xf32>
    %112 = vector.shape_cast %111 : vector<1x4x1x16xf32> to vector<4x16xf32>
    %c1_i32_46 = arith.constant 1 : i32
    %113 = arith.addi %109, %c1_i32_46 : i32
    %c0_47 = arith.constant 0 : index
    %c0_48 = arith.constant 0 : index
    %114 = arith.index_cast %113 : i32 to index
    %c0_49 = arith.constant 0 : index
    %115 = vector.load %arg3[%c0_47, %c0_48, %114, %c0_49] : memref<1x4x16x16xf32, #tpu.memory_space<vmem>>, vector<1x4x1x16xf32>
    %116 = vector.shape_cast %115 : vector<1x4x1x16xf32> to vector<4x16xf32>
    %117 = vector.extract_strided_slice %4 {offsets = [4, 0], sizes = [1, 1], strides = [1, 1]} : vector<18x1xf32> to vector<1x1xf32>
    %118 = vector.broadcast %117 : vector<1x1xf32> to vector<4x16xf32>
    %119 = arith.mulf %118, %112 : vector<4x16xf32>
    %120 = vector.extract_strided_slice %6 {offsets = [4, 0], sizes = [1, 1], strides = [1, 1]} : vector<18x1xf32> to vector<1x1xf32>
    %121 = vector.broadcast %120 : vector<1x1xf32> to vector<4x16xf32>
    %122 = arith.mulf %121, %116 : vector<4x16xf32>
    %123 = arith.addf %119, %122 : vector<4x16xf32>
    %cst_50 = arith.constant dense<0.000000e+00> : vector<4x34xf32>
    %124 = tpu.matmul %123, %2, %cst_50 {dimension_numbers = #tpu.dot_dimension_numbers<[1], [0], [0], [1], [0, 0, 1, 1], [], []>} : vector<4x16xf32>, vector<16x34xf32>, vector<4x34xf32> -> vector<4x34xf32>
    %125 = vector.extract_strided_slice %124 {offsets = [0, 0], sizes = [4, 32], strides = [1, 1]} : vector<4x34xf32> to vector<4x32xf32>
    %126 = vector.extract_strided_slice %124 {offsets = [0, 1], sizes = [4, 32], strides = [1, 1]} : vector<4x34xf32> to vector<4x32xf32>
    %127 = vector.extract_strided_slice %124 {offsets = [0, 2], sizes = [4, 32], strides = [1, 1]} : vector<4x34xf32> to vector<4x32xf32>
    %128 = tpu.concatenate %125, %126, %127 in 0 : vector<4x32xf32>, vector<4x32xf32>, vector<4x32xf32> -> vector<12x32xf32>
    %c4 = arith.constant 4 : index
    %c0_51 = arith.constant 0 : index
    %c0_52 = arith.constant 0 : index
    %129 = vector.load %arg10[%c4, %c0_51, %c0_52] : memref<18x12x32xf32, #tpu.memory_space<vmem>>, vector<1x12x32xf32>
    %130 = vector.shape_cast %129 : vector<1x12x32xf32> to vector<12x32xf32>
    %131 = vector.shape_cast %128 : vector<12x32xf32> to vector<1x12x32xf32>
    tpu.vector_store %arg10[%c4, %c0_51, %c0_52], %131 {strides = array<i32>} : memref<18x12x32xf32, #tpu.memory_space<vmem>>, vector<1x12x32xf32>,
    %c5_i32 = arith.constant 5 : i32
    %132 = arith.addi %1, %c5_i32 : i32
    %133 = arith.index_cast %132 : i32 to index
    %134 = memref.load %arg2[%133] : memref<34xi32, #tpu.memory_space<smem>>
    %c0_53 = arith.constant 0 : index
    %c0_54 = arith.constant 0 : index
    %135 = arith.index_cast %134 : i32 to index
    %c0_55 = arith.constant 0 : index
    %136 = vector.load %arg3[%c0_53, %c0_54, %135, %c0_55] : memref<1x4x16x16xf32, #tpu.memory_space<vmem>>, vector<1x4x1x16xf32>
    %137 = vector.shape_cast %136 : vector<1x4x1x16xf32> to vector<4x16xf32>
    %c1_i32_56 = arith.constant 1 : i32
    %138 = arith.addi %134, %c1_i32_56 : i32
    %c0_57 = arith.constant 0 : index
    %c0_58 = arith.constant 0 : index
    %139 = arith.index_cast %138 : i32 to index
    %c0_59 = arith.constant 0 : index
    %140 = vector.load %arg3[%c0_57, %c0_58, %139, %c0_59] : memref<1x4x16x16xf32, #tpu.memory_space<vmem>>, vector<1x4x1x16xf32>
    %141 = vector.shape_cast %140 : vector<1x4x1x16xf32> to vector<4x16xf32>
    %142 = vector.extract_strided_slice %4 {offsets = [5, 0], sizes = [1, 1], strides = [1, 1]} : vector<18x1xf32> to vector<1x1xf32>
    %143 = vector.broadcast %142 : vector<1x1xf32> to vector<4x16xf32>
    %144 = arith.mulf %143, %137 : vector<4x16xf32>
    %145 = vector.extract_strided_slice %6 {offsets = [5, 0], sizes = [1, 1], strides = [1, 1]} : vector<18x1xf32> to vector<1x1xf32>
    %146 = vector.broadcast %145 : vector<1x1xf32> to vector<4x16xf32>
    %147 = arith.mulf %146, %141 : vector<4x16xf32>
    %148 = arith.addf %144, %147 : vector<4x16xf32>
    %cst_60 = arith.constant dense<0.000000e+00> : vector<4x34xf32>
    %149 = tpu.matmul %148, %2, %cst_60 {dimension_numbers = #tpu.dot_dimension_numbers<[1], [0], [0], [1], [0, 0, 1, 1], [], []>} : vector<4x16xf32>, vector<16x34xf32>, vector<4x34xf32> -> vector<4x34xf32>
    %150 = vector.extract_strided_slice %149 {offsets = [0, 0], sizes = [4, 32], strides = [1, 1]} : vector<4x34xf32> to vector<4x32xf32>
    %151 = vector.extract_strided_slice %149 {offsets = [0, 1], sizes = [4, 32], strides = [1, 1]} : vector<4x34xf32> to vector<4x32xf32>
    %152 = vector.extract_strided_slice %149 {offsets = [0, 2], sizes = [4, 32], strides = [1, 1]} : vector<4x34xf32> to vector<4x32xf32>
    %153 = tpu.concatenate %150, %151, %152 in 0 : vector<4x32xf32>, vector<4x32xf32>, vector<4x32xf32> -> vector<12x32xf32>
    %c5 = arith.constant 5 : index
    %c0_61 = arith.constant 0 : index
    %c0_62 = arith.constant 0 : index
    %154 = vector.load %arg10[%c5, %c0_61, %c0_62] : memref<18x12x32xf32, #tpu.memory_space<vmem>>, vector<1x12x32xf32>
    %155 = vector.shape_cast %154 : vector<1x12x32xf32> to vector<12x32xf32>
    %156 = vector.shape_cast %153 : vector<12x32xf32> to vector<1x12x32xf32>
    tpu.vector_store %arg10[%c5, %c0_61, %c0_62], %156 {strides = array<i32>} : memref<18x12x32xf32, #tpu.memory_space<vmem>>, vector<1x12x32xf32>,
    %c6_i32 = arith.constant 6 : i32
    %157 = arith.addi %1, %c6_i32 : i32
    %158 = arith.index_cast %157 : i32 to index
    %159 = memref.load %arg2[%158] : memref<34xi32, #tpu.memory_space<smem>>
    %c0_63 = arith.constant 0 : index
    %c0_64 = arith.constant 0 : index
    %160 = arith.index_cast %159 : i32 to index
    %c0_65 = arith.constant 0 : index
    %161 = vector.load %arg3[%c0_63, %c0_64, %160, %c0_65] : memref<1x4x16x16xf32, #tpu.memory_space<vmem>>, vector<1x4x1x16xf32>
    %162 = vector.shape_cast %161 : vector<1x4x1x16xf32> to vector<4x16xf32>
    %c1_i32_66 = arith.constant 1 : i32
    %163 = arith.addi %159, %c1_i32_66 : i32
    %c0_67 = arith.constant 0 : index
    %c0_68 = arith.constant 0 : index
    %164 = arith.index_cast %163 : i32 to index
    %c0_69 = arith.constant 0 : index
    %165 = vector.load %arg3[%c0_67, %c0_68, %164, %c0_69] : memref<1x4x16x16xf32, #tpu.memory_space<vmem>>, vector<1x4x1x16xf32>
    %166 = vector.shape_cast %165 : vector<1x4x1x16xf32> to vector<4x16xf32>
    %167 = vector.extract_strided_slice %4 {offsets = [6, 0], sizes = [1, 1], strides = [1, 1]} : vector<18x1xf32> to vector<1x1xf32>
    %168 = vector.broadcast %167 : vector<1x1xf32> to vector<4x16xf32>
    %169 = arith.mulf %168, %162 : vector<4x16xf32>
    %170 = vector.extract_strided_slice %6 {offsets = [6, 0], sizes = [1, 1], strides = [1, 1]} : vector<18x1xf32> to vector<1x1xf32>
    %171 = vector.broadcast %170 : vector<1x1xf32> to vector<4x16xf32>
    %172 = arith.mulf %171, %166 : vector<4x16xf32>
    %173 = arith.addf %169, %172 : vector<4x16xf32>
    %cst_70 = arith.constant dense<0.000000e+00> : vector<4x34xf32>
    %174 = tpu.matmul %173, %2, %cst_70 {dimension_numbers = #tpu.dot_dimension_numbers<[1], [0], [0], [1], [0, 0, 1, 1], [], []>} : vector<4x16xf32>, vector<16x34xf32>, vector<4x34xf32> -> vector<4x34xf32>
    %175 = vector.extract_strided_slice %174 {offsets = [0, 0], sizes = [4, 32], strides = [1, 1]} : vector<4x34xf32> to vector<4x32xf32>
    %176 = vector.extract_strided_slice %174 {offsets = [0, 1], sizes = [4, 32], strides = [1, 1]} : vector<4x34xf32> to vector<4x32xf32>
    %177 = vector.extract_strided_slice %174 {offsets = [0, 2], sizes = [4, 32], strides = [1, 1]} : vector<4x34xf32> to vector<4x32xf32>
    %178 = tpu.concatenate %175, %176, %177 in 0 : vector<4x32xf32>, vector<4x32xf32>, vector<4x32xf32> -> vector<12x32xf32>
    %c6 = arith.constant 6 : index
    %c0_71 = arith.constant 0 : index
    %c0_72 = arith.constant 0 : index
    %179 = vector.load %arg10[%c6, %c0_71, %c0_72] : memref<18x12x32xf32, #tpu.memory_space<vmem>>, vector<1x12x32xf32>
    %180 = vector.shape_cast %179 : vector<1x12x32xf32> to vector<12x32xf32>
    %181 = vector.shape_cast %178 : vector<12x32xf32> to vector<1x12x32xf32>
    tpu.vector_store %arg10[%c6, %c0_71, %c0_72], %181 {strides = array<i32>} : memref<18x12x32xf32, #tpu.memory_space<vmem>>, vector<1x12x32xf32>,
    %c7_i32 = arith.constant 7 : i32
    %182 = arith.addi %1, %c7_i32 : i32
    %183 = arith.index_cast %182 : i32 to index
    %184 = memref.load %arg2[%183] : memref<34xi32, #tpu.memory_space<smem>>
    %c0_73 = arith.constant 0 : index
    %c0_74 = arith.constant 0 : index
    %185 = arith.index_cast %184 : i32 to index
    %c0_75 = arith.constant 0 : index
    %186 = vector.load %arg3[%c0_73, %c0_74, %185, %c0_75] : memref<1x4x16x16xf32, #tpu.memory_space<vmem>>, vector<1x4x1x16xf32>
    %187 = vector.shape_cast %186 : vector<1x4x1x16xf32> to vector<4x16xf32>
    %c1_i32_76 = arith.constant 1 : i32
    %188 = arith.addi %184, %c1_i32_76 : i32
    %c0_77 = arith.constant 0 : index
    %c0_78 = arith.constant 0 : index
    %189 = arith.index_cast %188 : i32 to index
    %c0_79 = arith.constant 0 : index
    %190 = vector.load %arg3[%c0_77, %c0_78, %189, %c0_79] : memref<1x4x16x16xf32, #tpu.memory_space<vmem>>, vector<1x4x1x16xf32>
    %191 = vector.shape_cast %190 : vector<1x4x1x16xf32> to vector<4x16xf32>
    %192 = vector.extract_strided_slice %4 {offsets = [7, 0], sizes = [1, 1], strides = [1, 1]} : vector<18x1xf32> to vector<1x1xf32>
    %193 = vector.broadcast %192 : vector<1x1xf32> to vector<4x16xf32>
    %194 = arith.mulf %193, %187 : vector<4x16xf32>
    %195 = vector.extract_strided_slice %6 {offsets = [7, 0], sizes = [1, 1], strides = [1, 1]} : vector<18x1xf32> to vector<1x1xf32>
    %196 = vector.broadcast %195 : vector<1x1xf32> to vector<4x16xf32>
    %197 = arith.mulf %196, %191 : vector<4x16xf32>
    %198 = arith.addf %194, %197 : vector<4x16xf32>
    %cst_80 = arith.constant dense<0.000000e+00> : vector<4x34xf32>
    %199 = tpu.matmul %198, %2, %cst_80 {dimension_numbers = #tpu.dot_dimension_numbers<[1], [0], [0], [1], [0, 0, 1, 1], [], []>} : vector<4x16xf32>, vector<16x34xf32>, vector<4x34xf32> -> vector<4x34xf32>
    %200 = vector.extract_strided_slice %199 {offsets = [0, 0], sizes = [4, 32], strides = [1, 1]} : vector<4x34xf32> to vector<4x32xf32>
    %201 = vector.extract_strided_slice %199 {offsets = [0, 1], sizes = [4, 32], strides = [1, 1]} : vector<4x34xf32> to vector<4x32xf32>
    %202 = vector.extract_strided_slice %199 {offsets = [0, 2], sizes = [4, 32], strides = [1, 1]} : vector<4x34xf32> to vector<4x32xf32>
    %203 = tpu.concatenate %200, %201, %202 in 0 : vector<4x32xf32>, vector<4x32xf32>, vector<4x32xf32> -> vector<12x32xf32>
    %c7 = arith.constant 7 : index
    %c0_81 = arith.constant 0 : index
    %c0_82 = arith.constant 0 : index
    %204 = vector.load %arg10[%c7, %c0_81, %c0_82] : memref<18x12x32xf32, #tpu.memory_space<vmem>>, vector<1x12x32xf32>
    %205 = vector.shape_cast %204 : vector<1x12x32xf32> to vector<12x32xf32>
    %206 = vector.shape_cast %203 : vector<12x32xf32> to vector<1x12x32xf32>
    tpu.vector_store %arg10[%c7, %c0_81, %c0_82], %206 {strides = array<i32>} : memref<18x12x32xf32, #tpu.memory_space<vmem>>, vector<1x12x32xf32>,
    %c8_i32 = arith.constant 8 : i32
    %207 = arith.addi %1, %c8_i32 : i32
    %208 = arith.index_cast %207 : i32 to index
    %209 = memref.load %arg2[%208] : memref<34xi32, #tpu.memory_space<smem>>
    %c0_83 = arith.constant 0 : index
    %c0_84 = arith.constant 0 : index
    %210 = arith.index_cast %209 : i32 to index
    %c0_85 = arith.constant 0 : index
    %211 = vector.load %arg3[%c0_83, %c0_84, %210, %c0_85] : memref<1x4x16x16xf32, #tpu.memory_space<vmem>>, vector<1x4x1x16xf32>
    %212 = vector.shape_cast %211 : vector<1x4x1x16xf32> to vector<4x16xf32>
    %c1_i32_86 = arith.constant 1 : i32
    %213 = arith.addi %209, %c1_i32_86 : i32
    %c0_87 = arith.constant 0 : index
    %c0_88 = arith.constant 0 : index
    %214 = arith.index_cast %213 : i32 to index
    %c0_89 = arith.constant 0 : index
    %215 = vector.load %arg3[%c0_87, %c0_88, %214, %c0_89] : memref<1x4x16x16xf32, #tpu.memory_space<vmem>>, vector<1x4x1x16xf32>
    %216 = vector.shape_cast %215 : vector<1x4x1x16xf32> to vector<4x16xf32>
    %217 = vector.extract_strided_slice %4 {offsets = [8, 0], sizes = [1, 1], strides = [1, 1]} : vector<18x1xf32> to vector<1x1xf32>
    %218 = vector.broadcast %217 : vector<1x1xf32> to vector<4x16xf32>
    %219 = arith.mulf %218, %212 : vector<4x16xf32>
    %220 = vector.extract_strided_slice %6 {offsets = [8, 0], sizes = [1, 1], strides = [1, 1]} : vector<18x1xf32> to vector<1x1xf32>
    %221 = vector.broadcast %220 : vector<1x1xf32> to vector<4x16xf32>
    %222 = arith.mulf %221, %216 : vector<4x16xf32>
    %223 = arith.addf %219, %222 : vector<4x16xf32>
    %cst_90 = arith.constant dense<0.000000e+00> : vector<4x34xf32>
    %224 = tpu.matmul %223, %2, %cst_90 {dimension_numbers = #tpu.dot_dimension_numbers<[1], [0], [0], [1], [0, 0, 1, 1], [], []>} : vector<4x16xf32>, vector<16x34xf32>, vector<4x34xf32> -> vector<4x34xf32>
    %225 = vector.extract_strided_slice %224 {offsets = [0, 0], sizes = [4, 32], strides = [1, 1]} : vector<4x34xf32> to vector<4x32xf32>
    %226 = vector.extract_strided_slice %224 {offsets = [0, 1], sizes = [4, 32], strides = [1, 1]} : vector<4x34xf32> to vector<4x32xf32>
    %227 = vector.extract_strided_slice %224 {offsets = [0, 2], sizes = [4, 32], strides = [1, 1]} : vector<4x34xf32> to vector<4x32xf32>
    %228 = tpu.concatenate %225, %226, %227 in 0 : vector<4x32xf32>, vector<4x32xf32>, vector<4x32xf32> -> vector<12x32xf32>
    %c8 = arith.constant 8 : index
    %c0_91 = arith.constant 0 : index
    %c0_92 = arith.constant 0 : index
    %229 = vector.load %arg10[%c8, %c0_91, %c0_92] : memref<18x12x32xf32, #tpu.memory_space<vmem>>, vector<1x12x32xf32>
    %230 = vector.shape_cast %229 : vector<1x12x32xf32> to vector<12x32xf32>
    %231 = vector.shape_cast %228 : vector<12x32xf32> to vector<1x12x32xf32>
    tpu.vector_store %arg10[%c8, %c0_91, %c0_92], %231 {strides = array<i32>} : memref<18x12x32xf32, #tpu.memory_space<vmem>>, vector<1x12x32xf32>,
    %c9_i32 = arith.constant 9 : i32
    %232 = arith.addi %1, %c9_i32 : i32
    %233 = arith.index_cast %232 : i32 to index
    %234 = memref.load %arg2[%233] : memref<34xi32, #tpu.memory_space<smem>>
    %c0_93 = arith.constant 0 : index
    %c0_94 = arith.constant 0 : index
    %235 = arith.index_cast %234 : i32 to index
    %c0_95 = arith.constant 0 : index
    %236 = vector.load %arg3[%c0_93, %c0_94, %235, %c0_95] : memref<1x4x16x16xf32, #tpu.memory_space<vmem>>, vector<1x4x1x16xf32>
    %237 = vector.shape_cast %236 : vector<1x4x1x16xf32> to vector<4x16xf32>
    %c1_i32_96 = arith.constant 1 : i32
    %238 = arith.addi %234, %c1_i32_96 : i32
    %c0_97 = arith.constant 0 : index
    %c0_98 = arith.constant 0 : index
    %239 = arith.index_cast %238 : i32 to index
    %c0_99 = arith.constant 0 : index
    %240 = vector.load %arg3[%c0_97, %c0_98, %239, %c0_99] : memref<1x4x16x16xf32, #tpu.memory_space<vmem>>, vector<1x4x1x16xf32>
    %241 = vector.shape_cast %240 : vector<1x4x1x16xf32> to vector<4x16xf32>
    %242 = vector.extract_strided_slice %4 {offsets = [9, 0], sizes = [1, 1], strides = [1, 1]} : vector<18x1xf32> to vector<1x1xf32>
    %243 = vector.broadcast %242 : vector<1x1xf32> to vector<4x16xf32>
    %244 = arith.mulf %243, %237 : vector<4x16xf32>
    %245 = vector.extract_strided_slice %6 {offsets = [9, 0], sizes = [1, 1], strides = [1, 1]} : vector<18x1xf32> to vector<1x1xf32>
    %246 = vector.broadcast %245 : vector<1x1xf32> to vector<4x16xf32>
    %247 = arith.mulf %246, %241 : vector<4x16xf32>
    %248 = arith.addf %244, %247 : vector<4x16xf32>
    %cst_100 = arith.constant dense<0.000000e+00> : vector<4x34xf32>
    %249 = tpu.matmul %248, %2, %cst_100 {dimension_numbers = #tpu.dot_dimension_numbers<[1], [0], [0], [1], [0, 0, 1, 1], [], []>} : vector<4x16xf32>, vector<16x34xf32>, vector<4x34xf32> -> vector<4x34xf32>
    %250 = vector.extract_strided_slice %249 {offsets = [0, 0], sizes = [4, 32], strides = [1, 1]} : vector<4x34xf32> to vector<4x32xf32>
    %251 = vector.extract_strided_slice %249 {offsets = [0, 1], sizes = [4, 32], strides = [1, 1]} : vector<4x34xf32> to vector<4x32xf32>
    %252 = vector.extract_strided_slice %249 {offsets = [0, 2], sizes = [4, 32], strides = [1, 1]} : vector<4x34xf32> to vector<4x32xf32>
    %253 = tpu.concatenate %250, %251, %252 in 0 : vector<4x32xf32>, vector<4x32xf32>, vector<4x32xf32> -> vector<12x32xf32>
    %c9 = arith.constant 9 : index
    %c0_101 = arith.constant 0 : index
    %c0_102 = arith.constant 0 : index
    %254 = vector.load %arg10[%c9, %c0_101, %c0_102] : memref<18x12x32xf32, #tpu.memory_space<vmem>>, vector<1x12x32xf32>
    %255 = vector.shape_cast %254 : vector<1x12x32xf32> to vector<12x32xf32>
    %256 = vector.shape_cast %253 : vector<12x32xf32> to vector<1x12x32xf32>
    tpu.vector_store %arg10[%c9, %c0_101, %c0_102], %256 {strides = array<i32>} : memref<18x12x32xf32, #tpu.memory_space<vmem>>, vector<1x12x32xf32>,
    %c10_i32 = arith.constant 10 : i32
    %257 = arith.addi %1, %c10_i32 : i32
    %258 = arith.index_cast %257 : i32 to index
    %259 = memref.load %arg2[%258] : memref<34xi32, #tpu.memory_space<smem>>
    %c0_103 = arith.constant 0 : index
    %c0_104 = arith.constant 0 : index
    %260 = arith.index_cast %259 : i32 to index
    %c0_105 = arith.constant 0 : index
    %261 = vector.load %arg3[%c0_103, %c0_104, %260, %c0_105] : memref<1x4x16x16xf32, #tpu.memory_space<vmem>>, vector<1x4x1x16xf32>
    %262 = vector.shape_cast %261 : vector<1x4x1x16xf32> to vector<4x16xf32>
    %c1_i32_106 = arith.constant 1 : i32
    %263 = arith.addi %259, %c1_i32_106 : i32
    %c0_107 = arith.constant 0 : index
    %c0_108 = arith.constant 0 : index
    %264 = arith.index_cast %263 : i32 to index
    %c0_109 = arith.constant 0 : index
    %265 = vector.load %arg3[%c0_107, %c0_108, %264, %c0_109] : memref<1x4x16x16xf32, #tpu.memory_space<vmem>>, vector<1x4x1x16xf32>
    %266 = vector.shape_cast %265 : vector<1x4x1x16xf32> to vector<4x16xf32>
    %267 = vector.extract_strided_slice %4 {offsets = [10, 0], sizes = [1, 1], strides = [1, 1]} : vector<18x1xf32> to vector<1x1xf32>
    %268 = vector.broadcast %267 : vector<1x1xf32> to vector<4x16xf32>
    %269 = arith.mulf %268, %262 : vector<4x16xf32>
    %270 = vector.extract_strided_slice %6 {offsets = [10, 0], sizes = [1, 1], strides = [1, 1]} : vector<18x1xf32> to vector<1x1xf32>
    %271 = vector.broadcast %270 : vector<1x1xf32> to vector<4x16xf32>
    %272 = arith.mulf %271, %266 : vector<4x16xf32>
    %273 = arith.addf %269, %272 : vector<4x16xf32>
    %cst_110 = arith.constant dense<0.000000e+00> : vector<4x34xf32>
    %274 = tpu.matmul %273, %2, %cst_110 {dimension_numbers = #tpu.dot_dimension_numbers<[1], [0], [0], [1], [0, 0, 1, 1], [], []>} : vector<4x16xf32>, vector<16x34xf32>, vector<4x34xf32> -> vector<4x34xf32>
    %275 = vector.extract_strided_slice %274 {offsets = [0, 0], sizes = [4, 32], strides = [1, 1]} : vector<4x34xf32> to vector<4x32xf32>
    %276 = vector.extract_strided_slice %274 {offsets = [0, 1], sizes = [4, 32], strides = [1, 1]} : vector<4x34xf32> to vector<4x32xf32>
    %277 = vector.extract_strided_slice %274 {offsets = [0, 2], sizes = [4, 32], strides = [1, 1]} : vector<4x34xf32> to vector<4x32xf32>
    %278 = tpu.concatenate %275, %276, %277 in 0 : vector<4x32xf32>, vector<4x32xf32>, vector<4x32xf32> -> vector<12x32xf32>
    %c10 = arith.constant 10 : index
    %c0_111 = arith.constant 0 : index
    %c0_112 = arith.constant 0 : index
    %279 = vector.load %arg10[%c10, %c0_111, %c0_112] : memref<18x12x32xf32, #tpu.memory_space<vmem>>, vector<1x12x32xf32>
    %280 = vector.shape_cast %279 : vector<1x12x32xf32> to vector<12x32xf32>
    %281 = vector.shape_cast %278 : vector<12x32xf32> to vector<1x12x32xf32>
    tpu.vector_store %arg10[%c10, %c0_111, %c0_112], %281 {strides = array<i32>} : memref<18x12x32xf32, #tpu.memory_space<vmem>>, vector<1x12x32xf32>,
    %c11_i32 = arith.constant 11 : i32
    %282 = arith.addi %1, %c11_i32 : i32
    %283 = arith.index_cast %282 : i32 to index
    %284 = memref.load %arg2[%283] : memref<34xi32, #tpu.memory_space<smem>>
    %c0_113 = arith.constant 0 : index
    %c0_114 = arith.constant 0 : index
    %285 = arith.index_cast %284 : i32 to index
    %c0_115 = arith.constant 0 : index
    %286 = vector.load %arg3[%c0_113, %c0_114, %285, %c0_115] : memref<1x4x16x16xf32, #tpu.memory_space<vmem>>, vector<1x4x1x16xf32>
    %287 = vector.shape_cast %286 : vector<1x4x1x16xf32> to vector<4x16xf32>
    %c1_i32_116 = arith.constant 1 : i32
    %288 = arith.addi %284, %c1_i32_116 : i32
    %c0_117 = arith.constant 0 : index
    %c0_118 = arith.constant 0 : index
    %289 = arith.index_cast %288 : i32 to index
    %c0_119 = arith.constant 0 : index
    %290 = vector.load %arg3[%c0_117, %c0_118, %289, %c0_119] : memref<1x4x16x16xf32, #tpu.memory_space<vmem>>, vector<1x4x1x16xf32>
    %291 = vector.shape_cast %290 : vector<1x4x1x16xf32> to vector<4x16xf32>
    %292 = vector.extract_strided_slice %4 {offsets = [11, 0], sizes = [1, 1], strides = [1, 1]} : vector<18x1xf32> to vector<1x1xf32>
    %293 = vector.broadcast %292 : vector<1x1xf32> to vector<4x16xf32>
    %294 = arith.mulf %293, %287 : vector<4x16xf32>
    %295 = vector.extract_strided_slice %6 {offsets = [11, 0], sizes = [1, 1], strides = [1, 1]} : vector<18x1xf32> to vector<1x1xf32>
    %296 = vector.broadcast %295 : vector<1x1xf32> to vector<4x16xf32>
    %297 = arith.mulf %296, %291 : vector<4x16xf32>
    %298 = arith.addf %294, %297 : vector<4x16xf32>
    %cst_120 = arith.constant dense<0.000000e+00> : vector<4x34xf32>
    %299 = tpu.matmul %298, %2, %cst_120 {dimension_numbers = #tpu.dot_dimension_numbers<[1], [0], [0], [1], [0, 0, 1, 1], [], []>} : vector<4x16xf32>, vector<16x34xf32>, vector<4x34xf32> -> vector<4x34xf32>
    %300 = vector.extract_strided_slice %299 {offsets = [0, 0], sizes = [4, 32], strides = [1, 1]} : vector<4x34xf32> to vector<4x32xf32>
    %301 = vector.extract_strided_slice %299 {offsets = [0, 1], sizes = [4, 32], strides = [1, 1]} : vector<4x34xf32> to vector<4x32xf32>
    %302 = vector.extract_strided_slice %299 {offsets = [0, 2], sizes = [4, 32], strides = [1, 1]} : vector<4x34xf32> to vector<4x32xf32>
    %303 = tpu.concatenate %300, %301, %302 in 0 : vector<4x32xf32>, vector<4x32xf32>, vector<4x32xf32> -> vector<12x32xf32>
    %c11 = arith.constant 11 : index
    %c0_121 = arith.constant 0 : index
    %c0_122 = arith.constant 0 : index
    %304 = vector.load %arg10[%c11, %c0_121, %c0_122] : memref<18x12x32xf32, #tpu.memory_space<vmem>>, vector<1x12x32xf32>
    %305 = vector.shape_cast %304 : vector<1x12x32xf32> to vector<12x32xf32>
    %306 = vector.shape_cast %303 : vector<12x32xf32> to vector<1x12x32xf32>
    tpu.vector_store %arg10[%c11, %c0_121, %c0_122], %306 {strides = array<i32>} : memref<18x12x32xf32, #tpu.memory_space<vmem>>, vector<1x12x32xf32>,
    %c12_i32 = arith.constant 12 : i32
    %307 = arith.addi %1, %c12_i32 : i32
    %308 = arith.index_cast %307 : i32 to index
    %309 = memref.load %arg2[%308] : memref<34xi32, #tpu.memory_space<smem>>
    %c0_123 = arith.constant 0 : index
    %c0_124 = arith.constant 0 : index
    %310 = arith.index_cast %309 : i32 to index
    %c0_125 = arith.constant 0 : index
    %311 = vector.load %arg3[%c0_123, %c0_124, %310, %c0_125] : memref<1x4x16x16xf32, #tpu.memory_space<vmem>>, vector<1x4x1x16xf32>
    %312 = vector.shape_cast %311 : vector<1x4x1x16xf32> to vector<4x16xf32>
    %c1_i32_126 = arith.constant 1 : i32
    %313 = arith.addi %309, %c1_i32_126 : i32
    %c0_127 = arith.constant 0 : index
    %c0_128 = arith.constant 0 : index
    %314 = arith.index_cast %313 : i32 to index
    %c0_129 = arith.constant 0 : index
    %315 = vector.load %arg3[%c0_127, %c0_128, %314, %c0_129] : memref<1x4x16x16xf32, #tpu.memory_space<vmem>>, vector<1x4x1x16xf32>
    %316 = vector.shape_cast %315 : vector<1x4x1x16xf32> to vector<4x16xf32>
    %317 = vector.extract_strided_slice %4 {offsets = [12, 0], sizes = [1, 1], strides = [1, 1]} : vector<18x1xf32> to vector<1x1xf32>
    %318 = vector.broadcast %317 : vector<1x1xf32> to vector<4x16xf32>
    %319 = arith.mulf %318, %312 : vector<4x16xf32>
    %320 = vector.extract_strided_slice %6 {offsets = [12, 0], sizes = [1, 1], strides = [1, 1]} : vector<18x1xf32> to vector<1x1xf32>
    %321 = vector.broadcast %320 : vector<1x1xf32> to vector<4x16xf32>
    %322 = arith.mulf %321, %316 : vector<4x16xf32>
    %323 = arith.addf %319, %322 : vector<4x16xf32>
    %cst_130 = arith.constant dense<0.000000e+00> : vector<4x34xf32>
    %324 = tpu.matmul %323, %2, %cst_130 {dimension_numbers = #tpu.dot_dimension_numbers<[1], [0], [0], [1], [0, 0, 1, 1], [], []>} : vector<4x16xf32>, vector<16x34xf32>, vector<4x34xf32> -> vector<4x34xf32>
    %325 = vector.extract_strided_slice %324 {offsets = [0, 0], sizes = [4, 32], strides = [1, 1]} : vector<4x34xf32> to vector<4x32xf32>
    %326 = vector.extract_strided_slice %324 {offsets = [0, 1], sizes = [4, 32], strides = [1, 1]} : vector<4x34xf32> to vector<4x32xf32>
    %327 = vector.extract_strided_slice %324 {offsets = [0, 2], sizes = [4, 32], strides = [1, 1]} : vector<4x34xf32> to vector<4x32xf32>
    %328 = tpu.concatenate %325, %326, %327 in 0 : vector<4x32xf32>, vector<4x32xf32>, vector<4x32xf32> -> vector<12x32xf32>
    %c12 = arith.constant 12 : index
    %c0_131 = arith.constant 0 : index
    %c0_132 = arith.constant 0 : index
    %329 = vector.load %arg10[%c12, %c0_131, %c0_132] : memref<18x12x32xf32, #tpu.memory_space<vmem>>, vector<1x12x32xf32>
    %330 = vector.shape_cast %329 : vector<1x12x32xf32> to vector<12x32xf32>
    %331 = vector.shape_cast %328 : vector<12x32xf32> to vector<1x12x32xf32>
    tpu.vector_store %arg10[%c12, %c0_131, %c0_132], %331 {strides = array<i32>} : memref<18x12x32xf32, #tpu.memory_space<vmem>>, vector<1x12x32xf32>,
    %c13_i32 = arith.constant 13 : i32
    %332 = arith.addi %1, %c13_i32 : i32
    %333 = arith.index_cast %332 : i32 to index
    %334 = memref.load %arg2[%333] : memref<34xi32, #tpu.memory_space<smem>>
    %c0_133 = arith.constant 0 : index
    %c0_134 = arith.constant 0 : index
    %335 = arith.index_cast %334 : i32 to index
    %c0_135 = arith.constant 0 : index
    %336 = vector.load %arg3[%c0_133, %c0_134, %335, %c0_135] : memref<1x4x16x16xf32, #tpu.memory_space<vmem>>, vector<1x4x1x16xf32>
    %337 = vector.shape_cast %336 : vector<1x4x1x16xf32> to vector<4x16xf32>
    %c1_i32_136 = arith.constant 1 : i32
    %338 = arith.addi %334, %c1_i32_136 : i32
    %c0_137 = arith.constant 0 : index
    %c0_138 = arith.constant 0 : index
    %339 = arith.index_cast %338 : i32 to index
    %c0_139 = arith.constant 0 : index
    %340 = vector.load %arg3[%c0_137, %c0_138, %339, %c0_139] : memref<1x4x16x16xf32, #tpu.memory_space<vmem>>, vector<1x4x1x16xf32>
    %341 = vector.shape_cast %340 : vector<1x4x1x16xf32> to vector<4x16xf32>
    %342 = vector.extract_strided_slice %4 {offsets = [13, 0], sizes = [1, 1], strides = [1, 1]} : vector<18x1xf32> to vector<1x1xf32>
    %343 = vector.broadcast %342 : vector<1x1xf32> to vector<4x16xf32>
    %344 = arith.mulf %343, %337 : vector<4x16xf32>
    %345 = vector.extract_strided_slice %6 {offsets = [13, 0], sizes = [1, 1], strides = [1, 1]} : vector<18x1xf32> to vector<1x1xf32>
    %346 = vector.broadcast %345 : vector<1x1xf32> to vector<4x16xf32>
    %347 = arith.mulf %346, %341 : vector<4x16xf32>
    %348 = arith.addf %344, %347 : vector<4x16xf32>
    %cst_140 = arith.constant dense<0.000000e+00> : vector<4x34xf32>
    %349 = tpu.matmul %348, %2, %cst_140 {dimension_numbers = #tpu.dot_dimension_numbers<[1], [0], [0], [1], [0, 0, 1, 1], [], []>} : vector<4x16xf32>, vector<16x34xf32>, vector<4x34xf32> -> vector<4x34xf32>
    %350 = vector.extract_strided_slice %349 {offsets = [0, 0], sizes = [4, 32], strides = [1, 1]} : vector<4x34xf32> to vector<4x32xf32>
    %351 = vector.extract_strided_slice %349 {offsets = [0, 1], sizes = [4, 32], strides = [1, 1]} : vector<4x34xf32> to vector<4x32xf32>
    %352 = vector.extract_strided_slice %349 {offsets = [0, 2], sizes = [4, 32], strides = [1, 1]} : vector<4x34xf32> to vector<4x32xf32>
    %353 = tpu.concatenate %350, %351, %352 in 0 : vector<4x32xf32>, vector<4x32xf32>, vector<4x32xf32> -> vector<12x32xf32>
    %c13 = arith.constant 13 : index
    %c0_141 = arith.constant 0 : index
    %c0_142 = arith.constant 0 : index
    %354 = vector.load %arg10[%c13, %c0_141, %c0_142] : memref<18x12x32xf32, #tpu.memory_space<vmem>>, vector<1x12x32xf32>
    %355 = vector.shape_cast %354 : vector<1x12x32xf32> to vector<12x32xf32>
    %356 = vector.shape_cast %353 : vector<12x32xf32> to vector<1x12x32xf32>
    tpu.vector_store %arg10[%c13, %c0_141, %c0_142], %356 {strides = array<i32>} : memref<18x12x32xf32, #tpu.memory_space<vmem>>, vector<1x12x32xf32>,
    %c14_i32 = arith.constant 14 : i32
    %357 = arith.addi %1, %c14_i32 : i32
    %358 = arith.index_cast %357 : i32 to index
    %359 = memref.load %arg2[%358] : memref<34xi32, #tpu.memory_space<smem>>
    %c0_143 = arith.constant 0 : index
    %c0_144 = arith.constant 0 : index
    %360 = arith.index_cast %359 : i32 to index
    %c0_145 = arith.constant 0 : index
    %361 = vector.load %arg3[%c0_143, %c0_144, %360, %c0_145] : memref<1x4x16x16xf32, #tpu.memory_space<vmem>>, vector<1x4x1x16xf32>
    %362 = vector.shape_cast %361 : vector<1x4x1x16xf32> to vector<4x16xf32>
    %c1_i32_146 = arith.constant 1 : i32
    %363 = arith.addi %359, %c1_i32_146 : i32
    %c0_147 = arith.constant 0 : index
    %c0_148 = arith.constant 0 : index
    %364 = arith.index_cast %363 : i32 to index
    %c0_149 = arith.constant 0 : index
    %365 = vector.load %arg3[%c0_147, %c0_148, %364, %c0_149] : memref<1x4x16x16xf32, #tpu.memory_space<vmem>>, vector<1x4x1x16xf32>
    %366 = vector.shape_cast %365 : vector<1x4x1x16xf32> to vector<4x16xf32>
    %367 = vector.extract_strided_slice %4 {offsets = [14, 0], sizes = [1, 1], strides = [1, 1]} : vector<18x1xf32> to vector<1x1xf32>
    %368 = vector.broadcast %367 : vector<1x1xf32> to vector<4x16xf32>
    %369 = arith.mulf %368, %362 : vector<4x16xf32>
    %370 = vector.extract_strided_slice %6 {offsets = [14, 0], sizes = [1, 1], strides = [1, 1]} : vector<18x1xf32> to vector<1x1xf32>
    %371 = vector.broadcast %370 : vector<1x1xf32> to vector<4x16xf32>
    %372 = arith.mulf %371, %366 : vector<4x16xf32>
    %373 = arith.addf %369, %372 : vector<4x16xf32>
    %cst_150 = arith.constant dense<0.000000e+00> : vector<4x34xf32>
    %374 = tpu.matmul %373, %2, %cst_150 {dimension_numbers = #tpu.dot_dimension_numbers<[1], [0], [0], [1], [0, 0, 1, 1], [], []>} : vector<4x16xf32>, vector<16x34xf32>, vector<4x34xf32> -> vector<4x34xf32>
    %375 = vector.extract_strided_slice %374 {offsets = [0, 0], sizes = [4, 32], strides = [1, 1]} : vector<4x34xf32> to vector<4x32xf32>
    %376 = vector.extract_strided_slice %374 {offsets = [0, 1], sizes = [4, 32], strides = [1, 1]} : vector<4x34xf32> to vector<4x32xf32>
    %377 = vector.extract_strided_slice %374 {offsets = [0, 2], sizes = [4, 32], strides = [1, 1]} : vector<4x34xf32> to vector<4x32xf32>
    %378 = tpu.concatenate %375, %376, %377 in 0 : vector<4x32xf32>, vector<4x32xf32>, vector<4x32xf32> -> vector<12x32xf32>
    %c14 = arith.constant 14 : index
    %c0_151 = arith.constant 0 : index
    %c0_152 = arith.constant 0 : index
    %379 = vector.load %arg10[%c14, %c0_151, %c0_152] : memref<18x12x32xf32, #tpu.memory_space<vmem>>, vector<1x12x32xf32>
    %380 = vector.shape_cast %379 : vector<1x12x32xf32> to vector<12x32xf32>
    %381 = vector.shape_cast %378 : vector<12x32xf32> to vector<1x12x32xf32>
    tpu.vector_store %arg10[%c14, %c0_151, %c0_152], %381 {strides = array<i32>} : memref<18x12x32xf32, #tpu.memory_space<vmem>>, vector<1x12x32xf32>,
    %c15_i32 = arith.constant 15 : i32
    %382 = arith.addi %1, %c15_i32 : i32
    %383 = arith.index_cast %382 : i32 to index
    %384 = memref.load %arg2[%383] : memref<34xi32, #tpu.memory_space<smem>>
    %c0_153 = arith.constant 0 : index
    %c0_154 = arith.constant 0 : index
    %385 = arith.index_cast %384 : i32 to index
    %c0_155 = arith.constant 0 : index
    %386 = vector.load %arg3[%c0_153, %c0_154, %385, %c0_155] : memref<1x4x16x16xf32, #tpu.memory_space<vmem>>, vector<1x4x1x16xf32>
    %387 = vector.shape_cast %386 : vector<1x4x1x16xf32> to vector<4x16xf32>
    %c1_i32_156 = arith.constant 1 : i32
    %388 = arith.addi %384, %c1_i32_156 : i32
    %c0_157 = arith.constant 0 : index
    %c0_158 = arith.constant 0 : index
    %389 = arith.index_cast %388 : i32 to index
    %c0_159 = arith.constant 0 : index
    %390 = vector.load %arg3[%c0_157, %c0_158, %389, %c0_159] : memref<1x4x16x16xf32, #tpu.memory_space<vmem>>, vector<1x4x1x16xf32>
    %391 = vector.shape_cast %390 : vector<1x4x1x16xf32> to vector<4x16xf32>
    %392 = vector.extract_strided_slice %4 {offsets = [15, 0], sizes = [1, 1], strides = [1, 1]} : vector<18x1xf32> to vector<1x1xf32>
    %393 = vector.broadcast %392 : vector<1x1xf32> to vector<4x16xf32>
    %394 = arith.mulf %393, %387 : vector<4x16xf32>
    %395 = vector.extract_strided_slice %6 {offsets = [15, 0], sizes = [1, 1], strides = [1, 1]} : vector<18x1xf32> to vector<1x1xf32>
    %396 = vector.broadcast %395 : vector<1x1xf32> to vector<4x16xf32>
    %397 = arith.mulf %396, %391 : vector<4x16xf32>
    %398 = arith.addf %394, %397 : vector<4x16xf32>
    %cst_160 = arith.constant dense<0.000000e+00> : vector<4x34xf32>
    %399 = tpu.matmul %398, %2, %cst_160 {dimension_numbers = #tpu.dot_dimension_numbers<[1], [0], [0], [1], [0, 0, 1, 1], [], []>} : vector<4x16xf32>, vector<16x34xf32>, vector<4x34xf32> -> vector<4x34xf32>
    %400 = vector.extract_strided_slice %399 {offsets = [0, 0], sizes = [4, 32], strides = [1, 1]} : vector<4x34xf32> to vector<4x32xf32>
    %401 = vector.extract_strided_slice %399 {offsets = [0, 1], sizes = [4, 32], strides = [1, 1]} : vector<4x34xf32> to vector<4x32xf32>
    %402 = vector.extract_strided_slice %399 {offsets = [0, 2], sizes = [4, 32], strides = [1, 1]} : vector<4x34xf32> to vector<4x32xf32>
    %403 = tpu.concatenate %400, %401, %402 in 0 : vector<4x32xf32>, vector<4x32xf32>, vector<4x32xf32> -> vector<12x32xf32>
    %c15 = arith.constant 15 : index
    %c0_161 = arith.constant 0 : index
    %c0_162 = arith.constant 0 : index
    %404 = vector.load %arg10[%c15, %c0_161, %c0_162] : memref<18x12x32xf32, #tpu.memory_space<vmem>>, vector<1x12x32xf32>
    %405 = vector.shape_cast %404 : vector<1x12x32xf32> to vector<12x32xf32>
    %406 = vector.shape_cast %403 : vector<12x32xf32> to vector<1x12x32xf32>
    tpu.vector_store %arg10[%c15, %c0_161, %c0_162], %406 {strides = array<i32>} : memref<18x12x32xf32, #tpu.memory_space<vmem>>, vector<1x12x32xf32>,
    %c16_i32_163 = arith.constant 16 : i32
    %407 = arith.addi %1, %c16_i32_163 : i32
    %408 = arith.index_cast %407 : i32 to index
    %409 = memref.load %arg2[%408] : memref<34xi32, #tpu.memory_space<smem>>
    %c0_164 = arith.constant 0 : index
    %c0_165 = arith.constant 0 : index
    %410 = arith.index_cast %409 : i32 to index
    %c0_166 = arith.constant 0 : index
    %411 = vector.load %arg3[%c0_164, %c0_165, %410, %c0_166] : memref<1x4x16x16xf32, #tpu.memory_space<vmem>>, vector<1x4x1x16xf32>
    %412 = vector.shape_cast %411 : vector<1x4x1x16xf32> to vector<4x16xf32>
    %c1_i32_167 = arith.constant 1 : i32
    %413 = arith.addi %409, %c1_i32_167 : i32
    %c0_168 = arith.constant 0 : index
    %c0_169 = arith.constant 0 : index
    %414 = arith.index_cast %413 : i32 to index
    %c0_170 = arith.constant 0 : index
    %415 = vector.load %arg3[%c0_168, %c0_169, %414, %c0_170] : memref<1x4x16x16xf32, #tpu.memory_space<vmem>>, vector<1x4x1x16xf32>
    %416 = vector.shape_cast %415 : vector<1x4x1x16xf32> to vector<4x16xf32>
    %417 = vector.extract_strided_slice %4 {offsets = [16, 0], sizes = [1, 1], strides = [1, 1]} : vector<18x1xf32> to vector<1x1xf32>
    %418 = vector.broadcast %417 : vector<1x1xf32> to vector<4x16xf32>
    %419 = arith.mulf %418, %412 : vector<4x16xf32>
    %420 = vector.extract_strided_slice %6 {offsets = [16, 0], sizes = [1, 1], strides = [1, 1]} : vector<18x1xf32> to vector<1x1xf32>
    %421 = vector.broadcast %420 : vector<1x1xf32> to vector<4x16xf32>
    %422 = arith.mulf %421, %416 : vector<4x16xf32>
    %423 = arith.addf %419, %422 : vector<4x16xf32>
    %cst_171 = arith.constant dense<0.000000e+00> : vector<4x34xf32>
    %424 = tpu.matmul %423, %2, %cst_171 {dimension_numbers = #tpu.dot_dimension_numbers<[1], [0], [0], [1], [0, 0, 1, 1], [], []>} : vector<4x16xf32>, vector<16x34xf32>, vector<4x34xf32> -> vector<4x34xf32>
    %425 = vector.extract_strided_slice %424 {offsets = [0, 0], sizes = [4, 32], strides = [1, 1]} : vector<4x34xf32> to vector<4x32xf32>
    %426 = vector.extract_strided_slice %424 {offsets = [0, 1], sizes = [4, 32], strides = [1, 1]} : vector<4x34xf32> to vector<4x32xf32>
    %427 = vector.extract_strided_slice %424 {offsets = [0, 2], sizes = [4, 32], strides = [1, 1]} : vector<4x34xf32> to vector<4x32xf32>
    %428 = tpu.concatenate %425, %426, %427 in 0 : vector<4x32xf32>, vector<4x32xf32>, vector<4x32xf32> -> vector<12x32xf32>
    %c16 = arith.constant 16 : index
    %c0_172 = arith.constant 0 : index
    %c0_173 = arith.constant 0 : index
    %429 = vector.load %arg10[%c16, %c0_172, %c0_173] : memref<18x12x32xf32, #tpu.memory_space<vmem>>, vector<1x12x32xf32>
    %430 = vector.shape_cast %429 : vector<1x12x32xf32> to vector<12x32xf32>
    %431 = vector.shape_cast %428 : vector<12x32xf32> to vector<1x12x32xf32>
    tpu.vector_store %arg10[%c16, %c0_172, %c0_173], %431 {strides = array<i32>} : memref<18x12x32xf32, #tpu.memory_space<vmem>>, vector<1x12x32xf32>,
    %c17_i32 = arith.constant 17 : i32
    %432 = arith.addi %1, %c17_i32 : i32
    %433 = arith.index_cast %432 : i32 to index
    %434 = memref.load %arg2[%433] : memref<34xi32, #tpu.memory_space<smem>>
    %c0_174 = arith.constant 0 : index
    %c0_175 = arith.constant 0 : index
    %435 = arith.index_cast %434 : i32 to index
    %c0_176 = arith.constant 0 : index
    %436 = vector.load %arg3[%c0_174, %c0_175, %435, %c0_176] : memref<1x4x16x16xf32, #tpu.memory_space<vmem>>, vector<1x4x1x16xf32>
    %437 = vector.shape_cast %436 : vector<1x4x1x16xf32> to vector<4x16xf32>
    %c1_i32_177 = arith.constant 1 : i32
    %438 = arith.addi %434, %c1_i32_177 : i32
    %c0_178 = arith.constant 0 : index
    %c0_179 = arith.constant 0 : index
    %439 = arith.index_cast %438 : i32 to index
    %c0_180 = arith.constant 0 : index
    %440 = vector.load %arg3[%c0_178, %c0_179, %439, %c0_180] : memref<1x4x16x16xf32, #tpu.memory_space<vmem>>, vector<1x4x1x16xf32>
    %441 = vector.shape_cast %440 : vector<1x4x1x16xf32> to vector<4x16xf32>
    %442 = vector.extract_strided_slice %4 {offsets = [17, 0], sizes = [1, 1], strides = [1, 1]} : vector<18x1xf32> to vector<1x1xf32>
    %443 = vector.broadcast %442 : vector<1x1xf32> to vector<4x16xf32>
    %444 = arith.mulf %443, %437 : vector<4x16xf32>
    %445 = vector.extract_strided_slice %6 {offsets = [17, 0], sizes = [1, 1], strides = [1, 1]} : vector<18x1xf32> to vector<1x1xf32>
    %446 = vector.broadcast %445 : vector<1x1xf32> to vector<4x16xf32>
    %447 = arith.mulf %446, %441 : vector<4x16xf32>
    %448 = arith.addf %444, %447 : vector<4x16xf32>
    %cst_181 = arith.constant dense<0.000000e+00> : vector<4x34xf32>
    %449 = tpu.matmul %448, %2, %cst_181 {dimension_numbers = #tpu.dot_dimension_numbers<[1], [0], [0], [1], [0, 0, 1, 1], [], []>} : vector<4x16xf32>, vector<16x34xf32>, vector<4x34xf32> -> vector<4x34xf32>
    %450 = vector.extract_strided_slice %449 {offsets = [0, 0], sizes = [4, 32], strides = [1, 1]} : vector<4x34xf32> to vector<4x32xf32>
    %451 = vector.extract_strided_slice %449 {offsets = [0, 1], sizes = [4, 32], strides = [1, 1]} : vector<4x34xf32> to vector<4x32xf32>
    %452 = vector.extract_strided_slice %449 {offsets = [0, 2], sizes = [4, 32], strides = [1, 1]} : vector<4x34xf32> to vector<4x32xf32>
    %453 = tpu.concatenate %450, %451, %452 in 0 : vector<4x32xf32>, vector<4x32xf32>, vector<4x32xf32> -> vector<12x32xf32>
    %c17 = arith.constant 17 : index
    %c0_182 = arith.constant 0 : index
    %c0_183 = arith.constant 0 : index
    %454 = vector.load %arg10[%c17, %c0_182, %c0_183] : memref<18x12x32xf32, #tpu.memory_space<vmem>>, vector<1x12x32xf32>
    %455 = vector.shape_cast %454 : vector<1x12x32xf32> to vector<12x32xf32>
    %456 = vector.shape_cast %453 : vector<12x32xf32> to vector<1x12x32xf32>
    tpu.vector_store %arg10[%c17, %c0_182, %c0_183], %456 {strides = array<i32>} : memref<18x12x32xf32, #tpu.memory_space<vmem>>, vector<1x12x32xf32>,
    %c0_184 = arith.constant 0 : index
    %c0_185 = arith.constant 0 : index
    %c0_186 = arith.constant 0 : index
    %457 = vector.load %arg7[%c0_184, %c0_185, %c0_186] : memref<3x8x12xf32, #tpu.memory_space<vmem>>, vector<1x8x12xf32>
    %458 = vector.shape_cast %457 : vector<1x8x12xf32> to vector<8x12xf32>
    %c1_187 = arith.constant 1 : index
    %c0_188 = arith.constant 0 : index
    %c0_189 = arith.constant 0 : index
    %459 = vector.load %arg7[%c1_187, %c0_188, %c0_189] : memref<3x8x12xf32, #tpu.memory_space<vmem>>, vector<1x8x12xf32>
    %460 = vector.shape_cast %459 : vector<1x8x12xf32> to vector<8x12xf32>
    %c2_190 = arith.constant 2 : index
    %c0_191 = arith.constant 0 : index
    %c0_192 = arith.constant 0 : index
    %461 = vector.load %arg7[%c2_190, %c0_191, %c0_192] : memref<3x8x12xf32, #tpu.memory_space<vmem>>, vector<1x8x12xf32>
    %462 = vector.shape_cast %461 : vector<1x8x12xf32> to vector<8x12xf32>
    %c0_193 = arith.constant 0 : index
    %c0_194 = arith.constant 0 : index
    %463 = vector.load %arg8[%c0_193, %c0_194] : memref<8x1xf32, #tpu.memory_space<vmem>>, vector<8x1xf32>
    %c0_195 = arith.constant 0 : index
    %c0_196 = arith.constant 0 : index
    %c0_197 = arith.constant 0 : index
    %464 = vector.load %arg10[%c0_195, %c0_196, %c0_197] : memref<18x12x32xf32, #tpu.memory_space<vmem>>, vector<1x12x32xf32>
    %465 = vector.shape_cast %464 : vector<1x12x32xf32> to vector<12x32xf32>
    %cst_198 = arith.constant dense<0.000000e+00> : vector<8x32xf32>
    %466 = tpu.matmul %458, %465, %cst_198 {dimension_numbers = #tpu.dot_dimension_numbers<[1], [0], [0], [1], [0, 0, 1, 1], [], []>} : vector<8x12xf32>, vector<12x32xf32>, vector<8x32xf32> -> vector<8x32xf32>
    %c1_199 = arith.constant 1 : index
    %c0_200 = arith.constant 0 : index
    %c0_201 = arith.constant 0 : index
    %467 = vector.load %arg10[%c1_199, %c0_200, %c0_201] : memref<18x12x32xf32, #tpu.memory_space<vmem>>, vector<1x12x32xf32>
    %468 = vector.shape_cast %467 : vector<1x12x32xf32> to vector<12x32xf32>
    %cst_202 = arith.constant dense<0.000000e+00> : vector<8x32xf32>
    %469 = tpu.matmul %460, %468, %cst_202 {dimension_numbers = #tpu.dot_dimension_numbers<[1], [0], [0], [1], [0, 0, 1, 1], [], []>} : vector<8x12xf32>, vector<12x32xf32>, vector<8x32xf32> -> vector<8x32xf32>
    %470 = arith.addf %466, %469 : vector<8x32xf32>
    %c2_203 = arith.constant 2 : index
    %c0_204 = arith.constant 0 : index
    %c0_205 = arith.constant 0 : index
    %471 = vector.load %arg10[%c2_203, %c0_204, %c0_205] : memref<18x12x32xf32, #tpu.memory_space<vmem>>, vector<1x12x32xf32>
    %472 = vector.shape_cast %471 : vector<1x12x32xf32> to vector<12x32xf32>
    %cst_206 = arith.constant dense<0.000000e+00> : vector<8x32xf32>
    %473 = tpu.matmul %462, %472, %cst_206 {dimension_numbers = #tpu.dot_dimension_numbers<[1], [0], [0], [1], [0, 0, 1, 1], [], []>} : vector<8x12xf32>, vector<12x32xf32>, vector<8x32xf32> -> vector<8x32xf32>
    %474 = arith.addf %470, %473 : vector<8x32xf32>
    %475 = vector.broadcast %463 : vector<8x1xf32> to vector<8x32xf32>
    %476 = arith.addf %474, %475 : vector<8x32xf32>
    %cst_207 = arith.constant 0.000000e+00 : f32
    %477 = vector.broadcast %cst_207 : f32 to vector<8x32xf32>
    %478 = arith.maximumf %476, %477 : vector<8x32xf32>
    %c0_208 = arith.constant 0 : index
    %c0_209 = arith.constant 0 : index
    %c0_210 = arith.constant 0 : index
    %c0_211 = arith.constant 0 : index
    %479 = vector.load %arg9[%c0_208, %c0_209, %c0_210, %c0_211] : memref<1x8x16x32xf32, #tpu.memory_space<vmem>>, vector<1x8x1x32xf32>
    %480 = vector.shape_cast %479 : vector<1x8x1x32xf32> to vector<8x32xf32>
    %481 = vector.shape_cast %478 : vector<8x32xf32> to vector<1x8x1x32xf32>
    tpu.vector_store %arg9[%c0_208, %c0_209, %c0_210, %c0_211], %481 {strides = array<i32>} : memref<1x8x16x32xf32, #tpu.memory_space<vmem>>, vector<1x8x1x32xf32>,
    %c1_212 = arith.constant 1 : index
    %c0_213 = arith.constant 0 : index
    %c0_214 = arith.constant 0 : index
    %482 = vector.load %arg10[%c1_212, %c0_213, %c0_214] : memref<18x12x32xf32, #tpu.memory_space<vmem>>, vector<1x12x32xf32>
    %483 = vector.shape_cast %482 : vector<1x12x32xf32> to vector<12x32xf32>
    %cst_215 = arith.constant dense<0.000000e+00> : vector<8x32xf32>
    %484 = tpu.matmul %458, %483, %cst_215 {dimension_numbers = #tpu.dot_dimension_numbers<[1], [0], [0], [1], [0, 0, 1, 1], [], []>} : vector<8x12xf32>, vector<12x32xf32>, vector<8x32xf32> -> vector<8x32xf32>
    %c2_216 = arith.constant 2 : index
    %c0_217 = arith.constant 0 : index
    %c0_218 = arith.constant 0 : index
    %485 = vector.load %arg10[%c2_216, %c0_217, %c0_218] : memref<18x12x32xf32, #tpu.memory_space<vmem>>, vector<1x12x32xf32>
    %486 = vector.shape_cast %485 : vector<1x12x32xf32> to vector<12x32xf32>
    %cst_219 = arith.constant dense<0.000000e+00> : vector<8x32xf32>
    %487 = tpu.matmul %460, %486, %cst_219 {dimension_numbers = #tpu.dot_dimension_numbers<[1], [0], [0], [1], [0, 0, 1, 1], [], []>} : vector<8x12xf32>, vector<12x32xf32>, vector<8x32xf32> -> vector<8x32xf32>
    %488 = arith.addf %484, %487 : vector<8x32xf32>
    %c3_220 = arith.constant 3 : index
    %c0_221 = arith.constant 0 : index
    %c0_222 = arith.constant 0 : index
    %489 = vector.load %arg10[%c3_220, %c0_221, %c0_222] : memref<18x12x32xf32, #tpu.memory_space<vmem>>, vector<1x12x32xf32>
    %490 = vector.shape_cast %489 : vector<1x12x32xf32> to vector<12x32xf32>
    %cst_223 = arith.constant dense<0.000000e+00> : vector<8x32xf32>
    %491 = tpu.matmul %462, %490, %cst_223 {dimension_numbers = #tpu.dot_dimension_numbers<[1], [0], [0], [1], [0, 0, 1, 1], [], []>} : vector<8x12xf32>, vector<12x32xf32>, vector<8x32xf32> -> vector<8x32xf32>
    %492 = arith.addf %488, %491 : vector<8x32xf32>
    %493 = vector.broadcast %463 : vector<8x1xf32> to vector<8x32xf32>
    %494 = arith.addf %492, %493 : vector<8x32xf32>
    %cst_224 = arith.constant 0.000000e+00 : f32
    %495 = vector.broadcast %cst_224 : f32 to vector<8x32xf32>
    %496 = arith.maximumf %494, %495 : vector<8x32xf32>
    %c0_225 = arith.constant 0 : index
    %c0_226 = arith.constant 0 : index
    %c1_227 = arith.constant 1 : index
    %c0_228 = arith.constant 0 : index
    %497 = vector.load %arg9[%c0_225, %c0_226, %c1_227, %c0_228] : memref<1x8x16x32xf32, #tpu.memory_space<vmem>>, vector<1x8x1x32xf32>
    %498 = vector.shape_cast %497 : vector<1x8x1x32xf32> to vector<8x32xf32>
    %499 = vector.shape_cast %496 : vector<8x32xf32> to vector<1x8x1x32xf32>
    tpu.vector_store %arg9[%c0_225, %c0_226, %c1_227, %c0_228], %499 {strides = array<i32>} : memref<1x8x16x32xf32, #tpu.memory_space<vmem>>, vector<1x8x1x32xf32>,
    %c2_229 = arith.constant 2 : index
    %c0_230 = arith.constant 0 : index
    %c0_231 = arith.constant 0 : index
    %500 = vector.load %arg10[%c2_229, %c0_230, %c0_231] : memref<18x12x32xf32, #tpu.memory_space<vmem>>, vector<1x12x32xf32>
    %501 = vector.shape_cast %500 : vector<1x12x32xf32> to vector<12x32xf32>
    %cst_232 = arith.constant dense<0.000000e+00> : vector<8x32xf32>
    %502 = tpu.matmul %458, %501, %cst_232 {dimension_numbers = #tpu.dot_dimension_numbers<[1], [0], [0], [1], [0, 0, 1, 1], [], []>} : vector<8x12xf32>, vector<12x32xf32>, vector<8x32xf32> -> vector<8x32xf32>
    %c3_233 = arith.constant 3 : index
    %c0_234 = arith.constant 0 : index
    %c0_235 = arith.constant 0 : index
    %503 = vector.load %arg10[%c3_233, %c0_234, %c0_235] : memref<18x12x32xf32, #tpu.memory_space<vmem>>, vector<1x12x32xf32>
    %504 = vector.shape_cast %503 : vector<1x12x32xf32> to vector<12x32xf32>
    %cst_236 = arith.constant dense<0.000000e+00> : vector<8x32xf32>
    %505 = tpu.matmul %460, %504, %cst_236 {dimension_numbers = #tpu.dot_dimension_numbers<[1], [0], [0], [1], [0, 0, 1, 1], [], []>} : vector<8x12xf32>, vector<12x32xf32>, vector<8x32xf32> -> vector<8x32xf32>
    %506 = arith.addf %502, %505 : vector<8x32xf32>
    %c4_237 = arith.constant 4 : index
    %c0_238 = arith.constant 0 : index
    %c0_239 = arith.constant 0 : index
    %507 = vector.load %arg10[%c4_237, %c0_238, %c0_239] : memref<18x12x32xf32, #tpu.memory_space<vmem>>, vector<1x12x32xf32>
    %508 = vector.shape_cast %507 : vector<1x12x32xf32> to vector<12x32xf32>
    %cst_240 = arith.constant dense<0.000000e+00> : vector<8x32xf32>
    %509 = tpu.matmul %462, %508, %cst_240 {dimension_numbers = #tpu.dot_dimension_numbers<[1], [0], [0], [1], [0, 0, 1, 1], [], []>} : vector<8x12xf32>, vector<12x32xf32>, vector<8x32xf32> -> vector<8x32xf32>
    %510 = arith.addf %506, %509 : vector<8x32xf32>
    %511 = vector.broadcast %463 : vector<8x1xf32> to vector<8x32xf32>
    %512 = arith.addf %510, %511 : vector<8x32xf32>
    %cst_241 = arith.constant 0.000000e+00 : f32
    %513 = vector.broadcast %cst_241 : f32 to vector<8x32xf32>
    %514 = arith.maximumf %512, %513 : vector<8x32xf32>
    %c0_242 = arith.constant 0 : index
    %c0_243 = arith.constant 0 : index
    %c2_244 = arith.constant 2 : index
    %c0_245 = arith.constant 0 : index
    %515 = vector.load %arg9[%c0_242, %c0_243, %c2_244, %c0_245] : memref<1x8x16x32xf32, #tpu.memory_space<vmem>>, vector<1x8x1x32xf32>
    %516 = vector.shape_cast %515 : vector<1x8x1x32xf32> to vector<8x32xf32>
    %517 = vector.shape_cast %514 : vector<8x32xf32> to vector<1x8x1x32xf32>
    tpu.vector_store %arg9[%c0_242, %c0_243, %c2_244, %c0_245], %517 {strides = array<i32>} : memref<1x8x16x32xf32, #tpu.memory_space<vmem>>, vector<1x8x1x32xf32>,
    %c3_246 = arith.constant 3 : index
    %c0_247 = arith.constant 0 : index
    %c0_248 = arith.constant 0 : index
    %518 = vector.load %arg10[%c3_246, %c0_247, %c0_248] : memref<18x12x32xf32, #tpu.memory_space<vmem>>, vector<1x12x32xf32>
    %519 = vector.shape_cast %518 : vector<1x12x32xf32> to vector<12x32xf32>
    %cst_249 = arith.constant dense<0.000000e+00> : vector<8x32xf32>
    %520 = tpu.matmul %458, %519, %cst_249 {dimension_numbers = #tpu.dot_dimension_numbers<[1], [0], [0], [1], [0, 0, 1, 1], [], []>} : vector<8x12xf32>, vector<12x32xf32>, vector<8x32xf32> -> vector<8x32xf32>
    %c4_250 = arith.constant 4 : index
    %c0_251 = arith.constant 0 : index
    %c0_252 = arith.constant 0 : index
    %521 = vector.load %arg10[%c4_250, %c0_251, %c0_252] : memref<18x12x32xf32, #tpu.memory_space<vmem>>, vector<1x12x32xf32>
    %522 = vector.shape_cast %521 : vector<1x12x32xf32> to vector<12x32xf32>
    %cst_253 = arith.constant dense<0.000000e+00> : vector<8x32xf32>
    %523 = tpu.matmul %460, %522, %cst_253 {dimension_numbers = #tpu.dot_dimension_numbers<[1], [0], [0], [1], [0, 0, 1, 1], [], []>} : vector<8x12xf32>, vector<12x32xf32>, vector<8x32xf32> -> vector<8x32xf32>
    %524 = arith.addf %520, %523 : vector<8x32xf32>
    %c5_254 = arith.constant 5 : index
    %c0_255 = arith.constant 0 : index
    %c0_256 = arith.constant 0 : index
    %525 = vector.load %arg10[%c5_254, %c0_255, %c0_256] : memref<18x12x32xf32, #tpu.memory_space<vmem>>, vector<1x12x32xf32>
    %526 = vector.shape_cast %525 : vector<1x12x32xf32> to vector<12x32xf32>
    %cst_257 = arith.constant dense<0.000000e+00> : vector<8x32xf32>
    %527 = tpu.matmul %462, %526, %cst_257 {dimension_numbers = #tpu.dot_dimension_numbers<[1], [0], [0], [1], [0, 0, 1, 1], [], []>} : vector<8x12xf32>, vector<12x32xf32>, vector<8x32xf32> -> vector<8x32xf32>
    %528 = arith.addf %524, %527 : vector<8x32xf32>
    %529 = vector.broadcast %463 : vector<8x1xf32> to vector<8x32xf32>
    %530 = arith.addf %528, %529 : vector<8x32xf32>
    %cst_258 = arith.constant 0.000000e+00 : f32
    %531 = vector.broadcast %cst_258 : f32 to vector<8x32xf32>
    %532 = arith.maximumf %530, %531 : vector<8x32xf32>
    %c0_259 = arith.constant 0 : index
    %c0_260 = arith.constant 0 : index
    %c3_261 = arith.constant 3 : index
    %c0_262 = arith.constant 0 : index
    %533 = vector.load %arg9[%c0_259, %c0_260, %c3_261, %c0_262] : memref<1x8x16x32xf32, #tpu.memory_space<vmem>>, vector<1x8x1x32xf32>
    %534 = vector.shape_cast %533 : vector<1x8x1x32xf32> to vector<8x32xf32>
    %535 = vector.shape_cast %532 : vector<8x32xf32> to vector<1x8x1x32xf32>
    tpu.vector_store %arg9[%c0_259, %c0_260, %c3_261, %c0_262], %535 {strides = array<i32>} : memref<1x8x16x32xf32, #tpu.memory_space<vmem>>, vector<1x8x1x32xf32>,
    %c4_263 = arith.constant 4 : index
    %c0_264 = arith.constant 0 : index
    %c0_265 = arith.constant 0 : index
    %536 = vector.load %arg10[%c4_263, %c0_264, %c0_265] : memref<18x12x32xf32, #tpu.memory_space<vmem>>, vector<1x12x32xf32>
    %537 = vector.shape_cast %536 : vector<1x12x32xf32> to vector<12x32xf32>
    %cst_266 = arith.constant dense<0.000000e+00> : vector<8x32xf32>
    %538 = tpu.matmul %458, %537, %cst_266 {dimension_numbers = #tpu.dot_dimension_numbers<[1], [0], [0], [1], [0, 0, 1, 1], [], []>} : vector<8x12xf32>, vector<12x32xf32>, vector<8x32xf32> -> vector<8x32xf32>
    %c5_267 = arith.constant 5 : index
    %c0_268 = arith.constant 0 : index
    %c0_269 = arith.constant 0 : index
    %539 = vector.load %arg10[%c5_267, %c0_268, %c0_269] : memref<18x12x32xf32, #tpu.memory_space<vmem>>, vector<1x12x32xf32>
    %540 = vector.shape_cast %539 : vector<1x12x32xf32> to vector<12x32xf32>
    %cst_270 = arith.constant dense<0.000000e+00> : vector<8x32xf32>
    %541 = tpu.matmul %460, %540, %cst_270 {dimension_numbers = #tpu.dot_dimension_numbers<[1], [0], [0], [1], [0, 0, 1, 1], [], []>} : vector<8x12xf32>, vector<12x32xf32>, vector<8x32xf32> -> vector<8x32xf32>
    %542 = arith.addf %538, %541 : vector<8x32xf32>
    %c6_271 = arith.constant 6 : index
    %c0_272 = arith.constant 0 : index
    %c0_273 = arith.constant 0 : index
    %543 = vector.load %arg10[%c6_271, %c0_272, %c0_273] : memref<18x12x32xf32, #tpu.memory_space<vmem>>, vector<1x12x32xf32>
    %544 = vector.shape_cast %543 : vector<1x12x32xf32> to vector<12x32xf32>
    %cst_274 = arith.constant dense<0.000000e+00> : vector<8x32xf32>
    %545 = tpu.matmul %462, %544, %cst_274 {dimension_numbers = #tpu.dot_dimension_numbers<[1], [0], [0], [1], [0, 0, 1, 1], [], []>} : vector<8x12xf32>, vector<12x32xf32>, vector<8x32xf32> -> vector<8x32xf32>
    %546 = arith.addf %542, %545 : vector<8x32xf32>
    %547 = vector.broadcast %463 : vector<8x1xf32> to vector<8x32xf32>
    %548 = arith.addf %546, %547 : vector<8x32xf32>
    %cst_275 = arith.constant 0.000000e+00 : f32
    %549 = vector.broadcast %cst_275 : f32 to vector<8x32xf32>
    %550 = arith.maximumf %548, %549 : vector<8x32xf32>
    %c0_276 = arith.constant 0 : index
    %c0_277 = arith.constant 0 : index
    %c4_278 = arith.constant 4 : index
    %c0_279 = arith.constant 0 : index
    %551 = vector.load %arg9[%c0_276, %c0_277, %c4_278, %c0_279] : memref<1x8x16x32xf32, #tpu.memory_space<vmem>>, vector<1x8x1x32xf32>
    %552 = vector.shape_cast %551 : vector<1x8x1x32xf32> to vector<8x32xf32>
    %553 = vector.shape_cast %550 : vector<8x32xf32> to vector<1x8x1x32xf32>
    tpu.vector_store %arg9[%c0_276, %c0_277, %c4_278, %c0_279], %553 {strides = array<i32>} : memref<1x8x16x32xf32, #tpu.memory_space<vmem>>, vector<1x8x1x32xf32>,
    %c5_280 = arith.constant 5 : index
    %c0_281 = arith.constant 0 : index
    %c0_282 = arith.constant 0 : index
    %554 = vector.load %arg10[%c5_280, %c0_281, %c0_282] : memref<18x12x32xf32, #tpu.memory_space<vmem>>, vector<1x12x32xf32>
    %555 = vector.shape_cast %554 : vector<1x12x32xf32> to vector<12x32xf32>
    %cst_283 = arith.constant dense<0.000000e+00> : vector<8x32xf32>
    %556 = tpu.matmul %458, %555, %cst_283 {dimension_numbers = #tpu.dot_dimension_numbers<[1], [0], [0], [1], [0, 0, 1, 1], [], []>} : vector<8x12xf32>, vector<12x32xf32>, vector<8x32xf32> -> vector<8x32xf32>
    %c6_284 = arith.constant 6 : index
    %c0_285 = arith.constant 0 : index
    %c0_286 = arith.constant 0 : index
    %557 = vector.load %arg10[%c6_284, %c0_285, %c0_286] : memref<18x12x32xf32, #tpu.memory_space<vmem>>, vector<1x12x32xf32>
    %558 = vector.shape_cast %557 : vector<1x12x32xf32> to vector<12x32xf32>
    %cst_287 = arith.constant dense<0.000000e+00> : vector<8x32xf32>
    %559 = tpu.matmul %460, %558, %cst_287 {dimension_numbers = #tpu.dot_dimension_numbers<[1], [0], [0], [1], [0, 0, 1, 1], [], []>} : vector<8x12xf32>, vector<12x32xf32>, vector<8x32xf32> -> vector<8x32xf32>
    %560 = arith.addf %556, %559 : vector<8x32xf32>
    %c7_288 = arith.constant 7 : index
    %c0_289 = arith.constant 0 : index
    %c0_290 = arith.constant 0 : index
    %561 = vector.load %arg10[%c7_288, %c0_289, %c0_290] : memref<18x12x32xf32, #tpu.memory_space<vmem>>, vector<1x12x32xf32>
    %562 = vector.shape_cast %561 : vector<1x12x32xf32> to vector<12x32xf32>
    %cst_291 = arith.constant dense<0.000000e+00> : vector<8x32xf32>
    %563 = tpu.matmul %462, %562, %cst_291 {dimension_numbers = #tpu.dot_dimension_numbers<[1], [0], [0], [1], [0, 0, 1, 1], [], []>} : vector<8x12xf32>, vector<12x32xf32>, vector<8x32xf32> -> vector<8x32xf32>
    %564 = arith.addf %560, %563 : vector<8x32xf32>
    %565 = vector.broadcast %463 : vector<8x1xf32> to vector<8x32xf32>
    %566 = arith.addf %564, %565 : vector<8x32xf32>
    %cst_292 = arith.constant 0.000000e+00 : f32
    %567 = vector.broadcast %cst_292 : f32 to vector<8x32xf32>
    %568 = arith.maximumf %566, %567 : vector<8x32xf32>
    %c0_293 = arith.constant 0 : index
    %c0_294 = arith.constant 0 : index
    %c5_295 = arith.constant 5 : index
    %c0_296 = arith.constant 0 : index
    %569 = vector.load %arg9[%c0_293, %c0_294, %c5_295, %c0_296] : memref<1x8x16x32xf32, #tpu.memory_space<vmem>>, vector<1x8x1x32xf32>
    %570 = vector.shape_cast %569 : vector<1x8x1x32xf32> to vector<8x32xf32>
    %571 = vector.shape_cast %568 : vector<8x32xf32> to vector<1x8x1x32xf32>
    tpu.vector_store %arg9[%c0_293, %c0_294, %c5_295, %c0_296], %571 {strides = array<i32>} : memref<1x8x16x32xf32, #tpu.memory_space<vmem>>, vector<1x8x1x32xf32>,
    %c6_297 = arith.constant 6 : index
    %c0_298 = arith.constant 0 : index
    %c0_299 = arith.constant 0 : index
    %572 = vector.load %arg10[%c6_297, %c0_298, %c0_299] : memref<18x12x32xf32, #tpu.memory_space<vmem>>, vector<1x12x32xf32>
    %573 = vector.shape_cast %572 : vector<1x12x32xf32> to vector<12x32xf32>
    %cst_300 = arith.constant dense<0.000000e+00> : vector<8x32xf32>
    %574 = tpu.matmul %458, %573, %cst_300 {dimension_numbers = #tpu.dot_dimension_numbers<[1], [0], [0], [1], [0, 0, 1, 1], [], []>} : vector<8x12xf32>, vector<12x32xf32>, vector<8x32xf32> -> vector<8x32xf32>
    %c7_301 = arith.constant 7 : index
    %c0_302 = arith.constant 0 : index
    %c0_303 = arith.constant 0 : index
    %575 = vector.load %arg10[%c7_301, %c0_302, %c0_303] : memref<18x12x32xf32, #tpu.memory_space<vmem>>, vector<1x12x32xf32>
    %576 = vector.shape_cast %575 : vector<1x12x32xf32> to vector<12x32xf32>
    %cst_304 = arith.constant dense<0.000000e+00> : vector<8x32xf32>
    %577 = tpu.matmul %460, %576, %cst_304 {dimension_numbers = #tpu.dot_dimension_numbers<[1], [0], [0], [1], [0, 0, 1, 1], [], []>} : vector<8x12xf32>, vector<12x32xf32>, vector<8x32xf32> -> vector<8x32xf32>
    %578 = arith.addf %574, %577 : vector<8x32xf32>
    %c8_305 = arith.constant 8 : index
    %c0_306 = arith.constant 0 : index
    %c0_307 = arith.constant 0 : index
    %579 = vector.load %arg10[%c8_305, %c0_306, %c0_307] : memref<18x12x32xf32, #tpu.memory_space<vmem>>, vector<1x12x32xf32>
    %580 = vector.shape_cast %579 : vector<1x12x32xf32> to vector<12x32xf32>
    %cst_308 = arith.constant dense<0.000000e+00> : vector<8x32xf32>
    %581 = tpu.matmul %462, %580, %cst_308 {dimension_numbers = #tpu.dot_dimension_numbers<[1], [0], [0], [1], [0, 0, 1, 1], [], []>} : vector<8x12xf32>, vector<12x32xf32>, vector<8x32xf32> -> vector<8x32xf32>
    %582 = arith.addf %578, %581 : vector<8x32xf32>
    %583 = vector.broadcast %463 : vector<8x1xf32> to vector<8x32xf32>
    %584 = arith.addf %582, %583 : vector<8x32xf32>
    %cst_309 = arith.constant 0.000000e+00 : f32
    %585 = vector.broadcast %cst_309 : f32 to vector<8x32xf32>
    %586 = arith.maximumf %584, %585 : vector<8x32xf32>
    %c0_310 = arith.constant 0 : index
    %c0_311 = arith.constant 0 : index
    %c6_312 = arith.constant 6 : index
    %c0_313 = arith.constant 0 : index
    %587 = vector.load %arg9[%c0_310, %c0_311, %c6_312, %c0_313] : memref<1x8x16x32xf32, #tpu.memory_space<vmem>>, vector<1x8x1x32xf32>
    %588 = vector.shape_cast %587 : vector<1x8x1x32xf32> to vector<8x32xf32>
    %589 = vector.shape_cast %586 : vector<8x32xf32> to vector<1x8x1x32xf32>
    tpu.vector_store %arg9[%c0_310, %c0_311, %c6_312, %c0_313], %589 {strides = array<i32>} : memref<1x8x16x32xf32, #tpu.memory_space<vmem>>, vector<1x8x1x32xf32>,
    %c7_314 = arith.constant 7 : index
    %c0_315 = arith.constant 0 : index
    %c0_316 = arith.constant 0 : index
    %590 = vector.load %arg10[%c7_314, %c0_315, %c0_316] : memref<18x12x32xf32, #tpu.memory_space<vmem>>, vector<1x12x32xf32>
    %591 = vector.shape_cast %590 : vector<1x12x32xf32> to vector<12x32xf32>
    %cst_317 = arith.constant dense<0.000000e+00> : vector<8x32xf32>
    %592 = tpu.matmul %458, %591, %cst_317 {dimension_numbers = #tpu.dot_dimension_numbers<[1], [0], [0], [1], [0, 0, 1, 1], [], []>} : vector<8x12xf32>, vector<12x32xf32>, vector<8x32xf32> -> vector<8x32xf32>
    %c8_318 = arith.constant 8 : index
    %c0_319 = arith.constant 0 : index
    %c0_320 = arith.constant 0 : index
    %593 = vector.load %arg10[%c8_318, %c0_319, %c0_320] : memref<18x12x32xf32, #tpu.memory_space<vmem>>, vector<1x12x32xf32>
    %594 = vector.shape_cast %593 : vector<1x12x32xf32> to vector<12x32xf32>
    %cst_321 = arith.constant dense<0.000000e+00> : vector<8x32xf32>
    %595 = tpu.matmul %460, %594, %cst_321 {dimension_numbers = #tpu.dot_dimension_numbers<[1], [0], [0], [1], [0, 0, 1, 1], [], []>} : vector<8x12xf32>, vector<12x32xf32>, vector<8x32xf32> -> vector<8x32xf32>
    %596 = arith.addf %592, %595 : vector<8x32xf32>
    %c9_322 = arith.constant 9 : index
    %c0_323 = arith.constant 0 : index
    %c0_324 = arith.constant 0 : index
    %597 = vector.load %arg10[%c9_322, %c0_323, %c0_324] : memref<18x12x32xf32, #tpu.memory_space<vmem>>, vector<1x12x32xf32>
    %598 = vector.shape_cast %597 : vector<1x12x32xf32> to vector<12x32xf32>
    %cst_325 = arith.constant dense<0.000000e+00> : vector<8x32xf32>
    %599 = tpu.matmul %462, %598, %cst_325 {dimension_numbers = #tpu.dot_dimension_numbers<[1], [0], [0], [1], [0, 0, 1, 1], [], []>} : vector<8x12xf32>, vector<12x32xf32>, vector<8x32xf32> -> vector<8x32xf32>
    %600 = arith.addf %596, %599 : vector<8x32xf32>
    %601 = vector.broadcast %463 : vector<8x1xf32> to vector<8x32xf32>
    %602 = arith.addf %600, %601 : vector<8x32xf32>
    %cst_326 = arith.constant 0.000000e+00 : f32
    %603 = vector.broadcast %cst_326 : f32 to vector<8x32xf32>
    %604 = arith.maximumf %602, %603 : vector<8x32xf32>
    %c0_327 = arith.constant 0 : index
    %c0_328 = arith.constant 0 : index
    %c7_329 = arith.constant 7 : index
    %c0_330 = arith.constant 0 : index
    %605 = vector.load %arg9[%c0_327, %c0_328, %c7_329, %c0_330] : memref<1x8x16x32xf32, #tpu.memory_space<vmem>>, vector<1x8x1x32xf32>
    %606 = vector.shape_cast %605 : vector<1x8x1x32xf32> to vector<8x32xf32>
    %607 = vector.shape_cast %604 : vector<8x32xf32> to vector<1x8x1x32xf32>
    tpu.vector_store %arg9[%c0_327, %c0_328, %c7_329, %c0_330], %607 {strides = array<i32>} : memref<1x8x16x32xf32, #tpu.memory_space<vmem>>, vector<1x8x1x32xf32>,
    %c8_331 = arith.constant 8 : index
    %c0_332 = arith.constant 0 : index
    %c0_333 = arith.constant 0 : index
    %608 = vector.load %arg10[%c8_331, %c0_332, %c0_333] : memref<18x12x32xf32, #tpu.memory_space<vmem>>, vector<1x12x32xf32>
    %609 = vector.shape_cast %608 : vector<1x12x32xf32> to vector<12x32xf32>
    %cst_334 = arith.constant dense<0.000000e+00> : vector<8x32xf32>
    %610 = tpu.matmul %458, %609, %cst_334 {dimension_numbers = #tpu.dot_dimension_numbers<[1], [0], [0], [1], [0, 0, 1, 1], [], []>} : vector<8x12xf32>, vector<12x32xf32>, vector<8x32xf32> -> vector<8x32xf32>
    %c9_335 = arith.constant 9 : index
    %c0_336 = arith.constant 0 : index
    %c0_337 = arith.constant 0 : index
    %611 = vector.load %arg10[%c9_335, %c0_336, %c0_337] : memref<18x12x32xf32, #tpu.memory_space<vmem>>, vector<1x12x32xf32>
    %612 = vector.shape_cast %611 : vector<1x12x32xf32> to vector<12x32xf32>
    %cst_338 = arith.constant dense<0.000000e+00> : vector<8x32xf32>
    %613 = tpu.matmul %460, %612, %cst_338 {dimension_numbers = #tpu.dot_dimension_numbers<[1], [0], [0], [1], [0, 0, 1, 1], [], []>} : vector<8x12xf32>, vector<12x32xf32>, vector<8x32xf32> -> vector<8x32xf32>
    %614 = arith.addf %610, %613 : vector<8x32xf32>
    %c10_339 = arith.constant 10 : index
    %c0_340 = arith.constant 0 : index
    %c0_341 = arith.constant 0 : index
    %615 = vector.load %arg10[%c10_339, %c0_340, %c0_341] : memref<18x12x32xf32, #tpu.memory_space<vmem>>, vector<1x12x32xf32>
    %616 = vector.shape_cast %615 : vector<1x12x32xf32> to vector<12x32xf32>
    %cst_342 = arith.constant dense<0.000000e+00> : vector<8x32xf32>
    %617 = tpu.matmul %462, %616, %cst_342 {dimension_numbers = #tpu.dot_dimension_numbers<[1], [0], [0], [1], [0, 0, 1, 1], [], []>} : vector<8x12xf32>, vector<12x32xf32>, vector<8x32xf32> -> vector<8x32xf32>
    %618 = arith.addf %614, %617 : vector<8x32xf32>
    %619 = vector.broadcast %463 : vector<8x1xf32> to vector<8x32xf32>
    %620 = arith.addf %618, %619 : vector<8x32xf32>
    %cst_343 = arith.constant 0.000000e+00 : f32
    %621 = vector.broadcast %cst_343 : f32 to vector<8x32xf32>
    %622 = arith.maximumf %620, %621 : vector<8x32xf32>
    %c0_344 = arith.constant 0 : index
    %c0_345 = arith.constant 0 : index
    %c8_346 = arith.constant 8 : index
    %c0_347 = arith.constant 0 : index
    %623 = vector.load %arg9[%c0_344, %c0_345, %c8_346, %c0_347] : memref<1x8x16x32xf32, #tpu.memory_space<vmem>>, vector<1x8x1x32xf32>
    %624 = vector.shape_cast %623 : vector<1x8x1x32xf32> to vector<8x32xf32>
    %625 = vector.shape_cast %622 : vector<8x32xf32> to vector<1x8x1x32xf32>
    tpu.vector_store %arg9[%c0_344, %c0_345, %c8_346, %c0_347], %625 {strides = array<i32>} : memref<1x8x16x32xf32, #tpu.memory_space<vmem>>, vector<1x8x1x32xf32>,
    %c9_348 = arith.constant 9 : index
    %c0_349 = arith.constant 0 : index
    %c0_350 = arith.constant 0 : index
    %626 = vector.load %arg10[%c9_348, %c0_349, %c0_350] : memref<18x12x32xf32, #tpu.memory_space<vmem>>, vector<1x12x32xf32>
    %627 = vector.shape_cast %626 : vector<1x12x32xf32> to vector<12x32xf32>
    %cst_351 = arith.constant dense<0.000000e+00> : vector<8x32xf32>
    %628 = tpu.matmul %458, %627, %cst_351 {dimension_numbers = #tpu.dot_dimension_numbers<[1], [0], [0], [1], [0, 0, 1, 1], [], []>} : vector<8x12xf32>, vector<12x32xf32>, vector<8x32xf32> -> vector<8x32xf32>
    %c10_352 = arith.constant 10 : index
    %c0_353 = arith.constant 0 : index
    %c0_354 = arith.constant 0 : index
    %629 = vector.load %arg10[%c10_352, %c0_353, %c0_354] : memref<18x12x32xf32, #tpu.memory_space<vmem>>, vector<1x12x32xf32>
    %630 = vector.shape_cast %629 : vector<1x12x32xf32> to vector<12x32xf32>
    %cst_355 = arith.constant dense<0.000000e+00> : vector<8x32xf32>
    %631 = tpu.matmul %460, %630, %cst_355 {dimension_numbers = #tpu.dot_dimension_numbers<[1], [0], [0], [1], [0, 0, 1, 1], [], []>} : vector<8x12xf32>, vector<12x32xf32>, vector<8x32xf32> -> vector<8x32xf32>
    %632 = arith.addf %628, %631 : vector<8x32xf32>
    %c11_356 = arith.constant 11 : index
    %c0_357 = arith.constant 0 : index
    %c0_358 = arith.constant 0 : index
    %633 = vector.load %arg10[%c11_356, %c0_357, %c0_358] : memref<18x12x32xf32, #tpu.memory_space<vmem>>, vector<1x12x32xf32>
    %634 = vector.shape_cast %633 : vector<1x12x32xf32> to vector<12x32xf32>
    %cst_359 = arith.constant dense<0.000000e+00> : vector<8x32xf32>
    %635 = tpu.matmul %462, %634, %cst_359 {dimension_numbers = #tpu.dot_dimension_numbers<[1], [0], [0], [1], [0, 0, 1, 1], [], []>} : vector<8x12xf32>, vector<12x32xf32>, vector<8x32xf32> -> vector<8x32xf32>
    %636 = arith.addf %632, %635 : vector<8x32xf32>
    %637 = vector.broadcast %463 : vector<8x1xf32> to vector<8x32xf32>
    %638 = arith.addf %636, %637 : vector<8x32xf32>
    %cst_360 = arith.constant 0.000000e+00 : f32
    %639 = vector.broadcast %cst_360 : f32 to vector<8x32xf32>
    %640 = arith.maximumf %638, %639 : vector<8x32xf32>
    %c0_361 = arith.constant 0 : index
    %c0_362 = arith.constant 0 : index
    %c9_363 = arith.constant 9 : index
    %c0_364 = arith.constant 0 : index
    %641 = vector.load %arg9[%c0_361, %c0_362, %c9_363, %c0_364] : memref<1x8x16x32xf32, #tpu.memory_space<vmem>>, vector<1x8x1x32xf32>
    %642 = vector.shape_cast %641 : vector<1x8x1x32xf32> to vector<8x32xf32>
    %643 = vector.shape_cast %640 : vector<8x32xf32> to vector<1x8x1x32xf32>
    tpu.vector_store %arg9[%c0_361, %c0_362, %c9_363, %c0_364], %643 {strides = array<i32>} : memref<1x8x16x32xf32, #tpu.memory_space<vmem>>, vector<1x8x1x32xf32>,
    %c10_365 = arith.constant 10 : index
    %c0_366 = arith.constant 0 : index
    %c0_367 = arith.constant 0 : index
    %644 = vector.load %arg10[%c10_365, %c0_366, %c0_367] : memref<18x12x32xf32, #tpu.memory_space<vmem>>, vector<1x12x32xf32>
    %645 = vector.shape_cast %644 : vector<1x12x32xf32> to vector<12x32xf32>
    %cst_368 = arith.constant dense<0.000000e+00> : vector<8x32xf32>
    %646 = tpu.matmul %458, %645, %cst_368 {dimension_numbers = #tpu.dot_dimension_numbers<[1], [0], [0], [1], [0, 0, 1, 1], [], []>} : vector<8x12xf32>, vector<12x32xf32>, vector<8x32xf32> -> vector<8x32xf32>
    %c11_369 = arith.constant 11 : index
    %c0_370 = arith.constant 0 : index
    %c0_371 = arith.constant 0 : index
    %647 = vector.load %arg10[%c11_369, %c0_370, %c0_371] : memref<18x12x32xf32, #tpu.memory_space<vmem>>, vector<1x12x32xf32>
    %648 = vector.shape_cast %647 : vector<1x12x32xf32> to vector<12x32xf32>
    %cst_372 = arith.constant dense<0.000000e+00> : vector<8x32xf32>
    %649 = tpu.matmul %460, %648, %cst_372 {dimension_numbers = #tpu.dot_dimension_numbers<[1], [0], [0], [1], [0, 0, 1, 1], [], []>} : vector<8x12xf32>, vector<12x32xf32>, vector<8x32xf32> -> vector<8x32xf32>
    %650 = arith.addf %646, %649 : vector<8x32xf32>
    %c12_373 = arith.constant 12 : index
    %c0_374 = arith.constant 0 : index
    %c0_375 = arith.constant 0 : index
    %651 = vector.load %arg10[%c12_373, %c0_374, %c0_375] : memref<18x12x32xf32, #tpu.memory_space<vmem>>, vector<1x12x32xf32>
    %652 = vector.shape_cast %651 : vector<1x12x32xf32> to vector<12x32xf32>
    %cst_376 = arith.constant dense<0.000000e+00> : vector<8x32xf32>
    %653 = tpu.matmul %462, %652, %cst_376 {dimension_numbers = #tpu.dot_dimension_numbers<[1], [0], [0], [1], [0, 0, 1, 1], [], []>} : vector<8x12xf32>, vector<12x32xf32>, vector<8x32xf32> -> vector<8x32xf32>
    %654 = arith.addf %650, %653 : vector<8x32xf32>
    %655 = vector.broadcast %463 : vector<8x1xf32> to vector<8x32xf32>
    %656 = arith.addf %654, %655 : vector<8x32xf32>
    %cst_377 = arith.constant 0.000000e+00 : f32
    %657 = vector.broadcast %cst_377 : f32 to vector<8x32xf32>
    %658 = arith.maximumf %656, %657 : vector<8x32xf32>
    %c0_378 = arith.constant 0 : index
    %c0_379 = arith.constant 0 : index
    %c10_380 = arith.constant 10 : index
    %c0_381 = arith.constant 0 : index
    %659 = vector.load %arg9[%c0_378, %c0_379, %c10_380, %c0_381] : memref<1x8x16x32xf32, #tpu.memory_space<vmem>>, vector<1x8x1x32xf32>
    %660 = vector.shape_cast %659 : vector<1x8x1x32xf32> to vector<8x32xf32>
    %661 = vector.shape_cast %658 : vector<8x32xf32> to vector<1x8x1x32xf32>
    tpu.vector_store %arg9[%c0_378, %c0_379, %c10_380, %c0_381], %661 {strides = array<i32>} : memref<1x8x16x32xf32, #tpu.memory_space<vmem>>, vector<1x8x1x32xf32>,
    %c11_382 = arith.constant 11 : index
    %c0_383 = arith.constant 0 : index
    %c0_384 = arith.constant 0 : index
    %662 = vector.load %arg10[%c11_382, %c0_383, %c0_384] : memref<18x12x32xf32, #tpu.memory_space<vmem>>, vector<1x12x32xf32>
    %663 = vector.shape_cast %662 : vector<1x12x32xf32> to vector<12x32xf32>
    %cst_385 = arith.constant dense<0.000000e+00> : vector<8x32xf32>
    %664 = tpu.matmul %458, %663, %cst_385 {dimension_numbers = #tpu.dot_dimension_numbers<[1], [0], [0], [1], [0, 0, 1, 1], [], []>} : vector<8x12xf32>, vector<12x32xf32>, vector<8x32xf32> -> vector<8x32xf32>
    %c12_386 = arith.constant 12 : index
    %c0_387 = arith.constant 0 : index
    %c0_388 = arith.constant 0 : index
    %665 = vector.load %arg10[%c12_386, %c0_387, %c0_388] : memref<18x12x32xf32, #tpu.memory_space<vmem>>, vector<1x12x32xf32>
    %666 = vector.shape_cast %665 : vector<1x12x32xf32> to vector<12x32xf32>
    %cst_389 = arith.constant dense<0.000000e+00> : vector<8x32xf32>
    %667 = tpu.matmul %460, %666, %cst_389 {dimension_numbers = #tpu.dot_dimension_numbers<[1], [0], [0], [1], [0, 0, 1, 1], [], []>} : vector<8x12xf32>, vector<12x32xf32>, vector<8x32xf32> -> vector<8x32xf32>
    %668 = arith.addf %664, %667 : vector<8x32xf32>
    %c13_390 = arith.constant 13 : index
    %c0_391 = arith.constant 0 : index
    %c0_392 = arith.constant 0 : index
    %669 = vector.load %arg10[%c13_390, %c0_391, %c0_392] : memref<18x12x32xf32, #tpu.memory_space<vmem>>, vector<1x12x32xf32>
    %670 = vector.shape_cast %669 : vector<1x12x32xf32> to vector<12x32xf32>
    %cst_393 = arith.constant dense<0.000000e+00> : vector<8x32xf32>
    %671 = tpu.matmul %462, %670, %cst_393 {dimension_numbers = #tpu.dot_dimension_numbers<[1], [0], [0], [1], [0, 0, 1, 1], [], []>} : vector<8x12xf32>, vector<12x32xf32>, vector<8x32xf32> -> vector<8x32xf32>
    %672 = arith.addf %668, %671 : vector<8x32xf32>
    %673 = vector.broadcast %463 : vector<8x1xf32> to vector<8x32xf32>
    %674 = arith.addf %672, %673 : vector<8x32xf32>
    %cst_394 = arith.constant 0.000000e+00 : f32
    %675 = vector.broadcast %cst_394 : f32 to vector<8x32xf32>
    %676 = arith.maximumf %674, %675 : vector<8x32xf32>
    %c0_395 = arith.constant 0 : index
    %c0_396 = arith.constant 0 : index
    %c11_397 = arith.constant 11 : index
    %c0_398 = arith.constant 0 : index
    %677 = vector.load %arg9[%c0_395, %c0_396, %c11_397, %c0_398] : memref<1x8x16x32xf32, #tpu.memory_space<vmem>>, vector<1x8x1x32xf32>
    %678 = vector.shape_cast %677 : vector<1x8x1x32xf32> to vector<8x32xf32>
    %679 = vector.shape_cast %676 : vector<8x32xf32> to vector<1x8x1x32xf32>
    tpu.vector_store %arg9[%c0_395, %c0_396, %c11_397, %c0_398], %679 {strides = array<i32>} : memref<1x8x16x32xf32, #tpu.memory_space<vmem>>, vector<1x8x1x32xf32>,
    %c12_399 = arith.constant 12 : index
    %c0_400 = arith.constant 0 : index
    %c0_401 = arith.constant 0 : index
    %680 = vector.load %arg10[%c12_399, %c0_400, %c0_401] : memref<18x12x32xf32, #tpu.memory_space<vmem>>, vector<1x12x32xf32>
    %681 = vector.shape_cast %680 : vector<1x12x32xf32> to vector<12x32xf32>
    %cst_402 = arith.constant dense<0.000000e+00> : vector<8x32xf32>
    %682 = tpu.matmul %458, %681, %cst_402 {dimension_numbers = #tpu.dot_dimension_numbers<[1], [0], [0], [1], [0, 0, 1, 1], [], []>} : vector<8x12xf32>, vector<12x32xf32>, vector<8x32xf32> -> vector<8x32xf32>
    %c13_403 = arith.constant 13 : index
    %c0_404 = arith.constant 0 : index
    %c0_405 = arith.constant 0 : index
    %683 = vector.load %arg10[%c13_403, %c0_404, %c0_405] : memref<18x12x32xf32, #tpu.memory_space<vmem>>, vector<1x12x32xf32>
    %684 = vector.shape_cast %683 : vector<1x12x32xf32> to vector<12x32xf32>
    %cst_406 = arith.constant dense<0.000000e+00> : vector<8x32xf32>
    %685 = tpu.matmul %460, %684, %cst_406 {dimension_numbers = #tpu.dot_dimension_numbers<[1], [0], [0], [1], [0, 0, 1, 1], [], []>} : vector<8x12xf32>, vector<12x32xf32>, vector<8x32xf32> -> vector<8x32xf32>
    %686 = arith.addf %682, %685 : vector<8x32xf32>
    %c14_407 = arith.constant 14 : index
    %c0_408 = arith.constant 0 : index
    %c0_409 = arith.constant 0 : index
    %687 = vector.load %arg10[%c14_407, %c0_408, %c0_409] : memref<18x12x32xf32, #tpu.memory_space<vmem>>, vector<1x12x32xf32>
    %688 = vector.shape_cast %687 : vector<1x12x32xf32> to vector<12x32xf32>
    %cst_410 = arith.constant dense<0.000000e+00> : vector<8x32xf32>
    %689 = tpu.matmul %462, %688, %cst_410 {dimension_numbers = #tpu.dot_dimension_numbers<[1], [0], [0], [1], [0, 0, 1, 1], [], []>} : vector<8x12xf32>, vector<12x32xf32>, vector<8x32xf32> -> vector<8x32xf32>
    %690 = arith.addf %686, %689 : vector<8x32xf32>
    %691 = vector.broadcast %463 : vector<8x1xf32> to vector<8x32xf32>
    %692 = arith.addf %690, %691 : vector<8x32xf32>
    %cst_411 = arith.constant 0.000000e+00 : f32
    %693 = vector.broadcast %cst_411 : f32 to vector<8x32xf32>
    %694 = arith.maximumf %692, %693 : vector<8x32xf32>
    %c0_412 = arith.constant 0 : index
    %c0_413 = arith.constant 0 : index
    %c12_414 = arith.constant 12 : index
    %c0_415 = arith.constant 0 : index
    %695 = vector.load %arg9[%c0_412, %c0_413, %c12_414, %c0_415] : memref<1x8x16x32xf32, #tpu.memory_space<vmem>>, vector<1x8x1x32xf32>
    %696 = vector.shape_cast %695 : vector<1x8x1x32xf32> to vector<8x32xf32>
    %697 = vector.shape_cast %694 : vector<8x32xf32> to vector<1x8x1x32xf32>
    tpu.vector_store %arg9[%c0_412, %c0_413, %c12_414, %c0_415], %697 {strides = array<i32>} : memref<1x8x16x32xf32, #tpu.memory_space<vmem>>, vector<1x8x1x32xf32>,
    %c13_416 = arith.constant 13 : index
    %c0_417 = arith.constant 0 : index
    %c0_418 = arith.constant 0 : index
    %698 = vector.load %arg10[%c13_416, %c0_417, %c0_418] : memref<18x12x32xf32, #tpu.memory_space<vmem>>, vector<1x12x32xf32>
    %699 = vector.shape_cast %698 : vector<1x12x32xf32> to vector<12x32xf32>
    %cst_419 = arith.constant dense<0.000000e+00> : vector<8x32xf32>
    %700 = tpu.matmul %458, %699, %cst_419 {dimension_numbers = #tpu.dot_dimension_numbers<[1], [0], [0], [1], [0, 0, 1, 1], [], []>} : vector<8x12xf32>, vector<12x32xf32>, vector<8x32xf32> -> vector<8x32xf32>
    %c14_420 = arith.constant 14 : index
    %c0_421 = arith.constant 0 : index
    %c0_422 = arith.constant 0 : index
    %701 = vector.load %arg10[%c14_420, %c0_421, %c0_422] : memref<18x12x32xf32, #tpu.memory_space<vmem>>, vector<1x12x32xf32>
    %702 = vector.shape_cast %701 : vector<1x12x32xf32> to vector<12x32xf32>
    %cst_423 = arith.constant dense<0.000000e+00> : vector<8x32xf32>
    %703 = tpu.matmul %460, %702, %cst_423 {dimension_numbers = #tpu.dot_dimension_numbers<[1], [0], [0], [1], [0, 0, 1, 1], [], []>} : vector<8x12xf32>, vector<12x32xf32>, vector<8x32xf32> -> vector<8x32xf32>
    %704 = arith.addf %700, %703 : vector<8x32xf32>
    %c15_424 = arith.constant 15 : index
    %c0_425 = arith.constant 0 : index
    %c0_426 = arith.constant 0 : index
    %705 = vector.load %arg10[%c15_424, %c0_425, %c0_426] : memref<18x12x32xf32, #tpu.memory_space<vmem>>, vector<1x12x32xf32>
    %706 = vector.shape_cast %705 : vector<1x12x32xf32> to vector<12x32xf32>
    %cst_427 = arith.constant dense<0.000000e+00> : vector<8x32xf32>
    %707 = tpu.matmul %462, %706, %cst_427 {dimension_numbers = #tpu.dot_dimension_numbers<[1], [0], [0], [1], [0, 0, 1, 1], [], []>} : vector<8x12xf32>, vector<12x32xf32>, vector<8x32xf32> -> vector<8x32xf32>
    %708 = arith.addf %704, %707 : vector<8x32xf32>
    %709 = vector.broadcast %463 : vector<8x1xf32> to vector<8x32xf32>
    %710 = arith.addf %708, %709 : vector<8x32xf32>
    %cst_428 = arith.constant 0.000000e+00 : f32
    %711 = vector.broadcast %cst_428 : f32 to vector<8x32xf32>
    %712 = arith.maximumf %710, %711 : vector<8x32xf32>
    %c0_429 = arith.constant 0 : index
    %c0_430 = arith.constant 0 : index
    %c13_431 = arith.constant 13 : index
    %c0_432 = arith.constant 0 : index
    %713 = vector.load %arg9[%c0_429, %c0_430, %c13_431, %c0_432] : memref<1x8x16x32xf32, #tpu.memory_space<vmem>>, vector<1x8x1x32xf32>
    %714 = vector.shape_cast %713 : vector<1x8x1x32xf32> to vector<8x32xf32>
    %715 = vector.shape_cast %712 : vector<8x32xf32> to vector<1x8x1x32xf32>
    tpu.vector_store %arg9[%c0_429, %c0_430, %c13_431, %c0_432], %715 {strides = array<i32>} : memref<1x8x16x32xf32, #tpu.memory_space<vmem>>, vector<1x8x1x32xf32>,
    %c14_433 = arith.constant 14 : index
    %c0_434 = arith.constant 0 : index
    %c0_435 = arith.constant 0 : index
    %716 = vector.load %arg10[%c14_433, %c0_434, %c0_435] : memref<18x12x32xf32, #tpu.memory_space<vmem>>, vector<1x12x32xf32>
    %717 = vector.shape_cast %716 : vector<1x12x32xf32> to vector<12x32xf32>
    %cst_436 = arith.constant dense<0.000000e+00> : vector<8x32xf32>
    %718 = tpu.matmul %458, %717, %cst_436 {dimension_numbers = #tpu.dot_dimension_numbers<[1], [0], [0], [1], [0, 0, 1, 1], [], []>} : vector<8x12xf32>, vector<12x32xf32>, vector<8x32xf32> -> vector<8x32xf32>
    %c15_437 = arith.constant 15 : index
    %c0_438 = arith.constant 0 : index
    %c0_439 = arith.constant 0 : index
    %719 = vector.load %arg10[%c15_437, %c0_438, %c0_439] : memref<18x12x32xf32, #tpu.memory_space<vmem>>, vector<1x12x32xf32>
    %720 = vector.shape_cast %719 : vector<1x12x32xf32> to vector<12x32xf32>
    %cst_440 = arith.constant dense<0.000000e+00> : vector<8x32xf32>
    %721 = tpu.matmul %460, %720, %cst_440 {dimension_numbers = #tpu.dot_dimension_numbers<[1], [0], [0], [1], [0, 0, 1, 1], [], []>} : vector<8x12xf32>, vector<12x32xf32>, vector<8x32xf32> -> vector<8x32xf32>
    %722 = arith.addf %718, %721 : vector<8x32xf32>
    %c16_441 = arith.constant 16 : index
    %c0_442 = arith.constant 0 : index
    %c0_443 = arith.constant 0 : index
    %723 = vector.load %arg10[%c16_441, %c0_442, %c0_443] : memref<18x12x32xf32, #tpu.memory_space<vmem>>, vector<1x12x32xf32>
    %724 = vector.shape_cast %723 : vector<1x12x32xf32> to vector<12x32xf32>
    %cst_444 = arith.constant dense<0.000000e+00> : vector<8x32xf32>
    %725 = tpu.matmul %462, %724, %cst_444 {dimension_numbers = #tpu.dot_dimension_numbers<[1], [0], [0], [1], [0, 0, 1, 1], [], []>} : vector<8x12xf32>, vector<12x32xf32>, vector<8x32xf32> -> vector<8x32xf32>
    %726 = arith.addf %722, %725 : vector<8x32xf32>
    %727 = vector.broadcast %463 : vector<8x1xf32> to vector<8x32xf32>
    %728 = arith.addf %726, %727 : vector<8x32xf32>
    %cst_445 = arith.constant 0.000000e+00 : f32
    %729 = vector.broadcast %cst_445 : f32 to vector<8x32xf32>
    %730 = arith.maximumf %728, %729 : vector<8x32xf32>
    %c0_446 = arith.constant 0 : index
    %c0_447 = arith.constant 0 : index
    %c14_448 = arith.constant 14 : index
    %c0_449 = arith.constant 0 : index
    %731 = vector.load %arg9[%c0_446, %c0_447, %c14_448, %c0_449] : memref<1x8x16x32xf32, #tpu.memory_space<vmem>>, vector<1x8x1x32xf32>
    %732 = vector.shape_cast %731 : vector<1x8x1x32xf32> to vector<8x32xf32>
    %733 = vector.shape_cast %730 : vector<8x32xf32> to vector<1x8x1x32xf32>
    tpu.vector_store %arg9[%c0_446, %c0_447, %c14_448, %c0_449], %733 {strides = array<i32>} : memref<1x8x16x32xf32, #tpu.memory_space<vmem>>, vector<1x8x1x32xf32>,
    %c15_450 = arith.constant 15 : index
    %c0_451 = arith.constant 0 : index
    %c0_452 = arith.constant 0 : index
    %734 = vector.load %arg10[%c15_450, %c0_451, %c0_452] : memref<18x12x32xf32, #tpu.memory_space<vmem>>, vector<1x12x32xf32>
    %735 = vector.shape_cast %734 : vector<1x12x32xf32> to vector<12x32xf32>
    %cst_453 = arith.constant dense<0.000000e+00> : vector<8x32xf32>
    %736 = tpu.matmul %458, %735, %cst_453 {dimension_numbers = #tpu.dot_dimension_numbers<[1], [0], [0], [1], [0, 0, 1, 1], [], []>} : vector<8x12xf32>, vector<12x32xf32>, vector<8x32xf32> -> vector<8x32xf32>
    %c16_454 = arith.constant 16 : index
    %c0_455 = arith.constant 0 : index
    %c0_456 = arith.constant 0 : index
    %737 = vector.load %arg10[%c16_454, %c0_455, %c0_456] : memref<18x12x32xf32, #tpu.memory_space<vmem>>, vector<1x12x32xf32>
    %738 = vector.shape_cast %737 : vector<1x12x32xf32> to vector<12x32xf32>
    %cst_457 = arith.constant dense<0.000000e+00> : vector<8x32xf32>
    %739 = tpu.matmul %460, %738, %cst_457 {dimension_numbers = #tpu.dot_dimension_numbers<[1], [0], [0], [1], [0, 0, 1, 1], [], []>} : vector<8x12xf32>, vector<12x32xf32>, vector<8x32xf32> -> vector<8x32xf32>
    %740 = arith.addf %736, %739 : vector<8x32xf32>
    %c17_458 = arith.constant 17 : index
    %c0_459 = arith.constant 0 : index
    %c0_460 = arith.constant 0 : index
    %741 = vector.load %arg10[%c17_458, %c0_459, %c0_460] : memref<18x12x32xf32, #tpu.memory_space<vmem>>, vector<1x12x32xf32>
    %742 = vector.shape_cast %741 : vector<1x12x32xf32> to vector<12x32xf32>
    %cst_461 = arith.constant dense<0.000000e+00> : vector<8x32xf32>
    %743 = tpu.matmul %462, %742, %cst_461 {dimension_numbers = #tpu.dot_dimension_numbers<[1], [0], [0], [1], [0, 0, 1, 1], [], []>} : vector<8x12xf32>, vector<12x32xf32>, vector<8x32xf32> -> vector<8x32xf32>
    %744 = arith.addf %740, %743 : vector<8x32xf32>
    %745 = vector.broadcast %463 : vector<8x1xf32> to vector<8x32xf32>
    %746 = arith.addf %744, %745 : vector<8x32xf32>
    %cst_462 = arith.constant 0.000000e+00 : f32
    %747 = vector.broadcast %cst_462 : f32 to vector<8x32xf32>
    %748 = arith.maximumf %746, %747 : vector<8x32xf32>
    %c0_463 = arith.constant 0 : index
    %c0_464 = arith.constant 0 : index
    %c15_465 = arith.constant 15 : index
    %c0_466 = arith.constant 0 : index
    %749 = vector.load %arg9[%c0_463, %c0_464, %c15_465, %c0_466] : memref<1x8x16x32xf32, #tpu.memory_space<vmem>>, vector<1x8x1x32xf32>
    %750 = vector.shape_cast %749 : vector<1x8x1x32xf32> to vector<8x32xf32>
    %751 = vector.shape_cast %748 : vector<8x32xf32> to vector<1x8x1x32xf32>
    tpu.vector_store %arg9[%c0_463, %c0_464, %c15_465, %c0_466], %751 {strides = array<i32>} : memref<1x8x16x32xf32, #tpu.memory_space<vmem>>, vector<1x8x1x32xf32>,
    return
  }
  func.func @transform_0(%arg0: i32, %arg1: i32, %arg2: memref<34xi32, #tpu.memory_space<smem>>) -> (i32, i32, i32, i32) {
    %c0_i32 = arith.constant 0 : i32
    %c0_i32_0 = arith.constant 0 : i32
    %c0_i32_1 = arith.constant 0 : i32
    %c0_i32_2 = arith.constant 0 : i32
    return %arg0, %c0_i32, %c0_i32_0, %c0_i32_1 : i32, i32, i32, i32
  }
  func.func @transform_1(%arg0: i32, %arg1: i32, %arg2: memref<34xi32, #tpu.memory_space<smem>>) -> (i32, i32) {
    %c0_i32 = arith.constant 0 : i32
    %c0_i32_0 = arith.constant 0 : i32
    %c0_i32_1 = arith.constant 0 : i32
    return %c0_i32, %c0_i32_0 : i32, i32
  }
  func.func @transform_2(%arg0: i32, %arg1: i32, %arg2: memref<34xi32, #tpu.memory_space<smem>>) -> (i32, i32) {
    %c0_i32 = arith.constant 0 : i32
    %c0_i32_0 = arith.constant 0 : i32
    %c0_i32_1 = arith.constant 0 : i32
    return %c0_i32, %c0_i32_0 : i32, i32
  }
  func.func @transform_3(%arg0: i32, %arg1: i32, %arg2: memref<34xi32, #tpu.memory_space<smem>>) -> (i32, i32) {
    %c0_i32 = arith.constant 0 : i32
    %c0_i32_0 = arith.constant 0 : i32
    %c0_i32_1 = arith.constant 0 : i32
    return %c0_i32, %c0_i32_0 : i32, i32
  }
  func.func @transform_4(%arg0: i32, %arg1: i32, %arg2: memref<34xi32, #tpu.memory_space<smem>>) -> (i32, i32, i32) {
    %c0_i32 = arith.constant 0 : i32
    %c0_i32_0 = arith.constant 0 : i32
    %c0_i32_1 = arith.constant 0 : i32
    %c0_i32_2 = arith.constant 0 : i32
    return %c0_i32, %c0_i32_0, %c0_i32_1 : i32, i32, i32
  }
  func.func @transform_5(%arg0: i32, %arg1: i32, %arg2: memref<34xi32, #tpu.memory_space<smem>>) -> (i32, i32) {
    %c0_i32 = arith.constant 0 : i32
    %c0_i32_0 = arith.constant 0 : i32
    %c0_i32_1 = arith.constant 0 : i32
    return %c0_i32, %c0_i32_0 : i32, i32
  }
  func.func @transform_6(%arg0: i32, %arg1: i32, %arg2: memref<34xi32, #tpu.memory_space<smem>>) -> (i32, i32, i32, i32) {
    %c0_i32 = arith.constant 0 : i32
    %c0_i32_0 = arith.constant 0 : i32
    %c0_i32_1 = arith.constant 0 : i32
    return %arg0, %c0_i32, %arg1, %c0_i32_0 : i32, i32, i32, i32
  }
}

</mosaic_0001>

<bundles_post_ra>
// kernel: upconv_block.1
= control target key start
LH: loop header
LB: loop body
LE: loop exit
PB: predicated region body
PF: predicated region fallthrough
CT: control target
= control target key end

     0   :  { %s3938_s27 = smov [#allocation4]   ;;  %s5255_s0 = inlined_call_operand.vmem [shape: s32[34], index: 0, kind: input, shape index: {}]   ;;  %s5256_s1 = inlined_call_operand.vmem [shape: f32[2,4,16,16], index: 1, kind: input, shape index: {}]   ;;  %s5257_s2 = inlined_call_operand.vmem [shape: f32[34,1], index: 2, kind: input, shape index: {}]   ;;  %s5258_s3 = inlined_call_operand.vmem [shape: f32[34,1], index: 3, kind: input, shape index: {}]   ;;  %s5259_s4 = inlined_call_operand.vmem [shape: f32[16,34], index: 4, kind: input, shape index: {}]   ;;  %s5260_s5 = inlined_call_operand.vmem [shape: f32[3,8,12], index: 5, kind: input, shape index: {}]   ;;  %s5261_s6 = inlined_call_operand.vmem [shape: f32[8,1], index: 6, kind: input, shape index: {}]   ;;  %s5262_s7 = inlined_call_operand.hbm [shape: f32[2,8,32,32], index: 7, kind: output, shape index: {}]  }
   0x1   :  { %5265 = sst [smem:[#allocation13_spill]] %s5256_s1  ;;  %s13_s26 = sshll.u32 %s5255_s0, 4  ;;  %s14_s26 = int_to_ptr.vmem [resolvable:$true] %s13_s26 }
   0x2   :  { %5266 = sst [smem:[#allocation14_spill]] %s5257_s2 }
   0x3   :  { %5267 = sst [smem:[#allocation15_spill]] %s5258_s3 }
   0x4   :  { %16 = dma.vmem_to_smem %s14_s26, 16, %s3938_s27, [#allocation3] }
   0x5   :  { %3900 = dma.done.wait [#allocation3], 16 }
   0x6   :  { %3901 = vsyncadd [#allocation3], 4294967280 }
   0x7   :  { %19 = sfence }
   0x8   :  { %20 = vsyncpa [#allocation6], 0 }
   0x9   :  { %22 = vsyncpa [#allocation6 + $0x1], 0  ;;  %s3992_s28 = smov 0   ;;  %s3994_s29 = smov 0  }
   0xa   :  { %s3996_s30 = smov 0   ;;  %s3998_s8 = smov 0  }
   0xb   :  { %s4000_s9 = smov 0   ;;  %s4002_s10 = smov 0  }
   0xc   :  { %s4004_s0 = smov 0   ;;  %s4006_s11 = smov 0  }
   0xd LB: > { %s3489_s12 = sadd.s32 4294967295, %s3936_s11   ;;  %s3490_s13 = sadd.s32 4294967294, %s3936_s11   ;;  %s3936_s11 = sphi %s4006_s11, %s28_s11   ;;  %s3932_s0 = sphi %s4004_s0, %s5284_s0   ;;  %s3928_s10 = sphi %s4002_s10, %s5283_s10   ;;  %s3924_s9 = sphi %s4000_s9, %s5282_s9   ;;  %s3920_s8 = sphi %s3998_s8, %s5281_s8   ;;  %s3916_s30 = sphi %s3996_s30, %s5280_s30   ;;  %s3912_s29 = sphi %s3994_s29, %s5279_s29   ;;  %s3908_s28 = sphi %s3992_s28, %s5278_s28  }
   0xe   : > { %s37_s14 = sadd.s32 1, %s3928_s10  ;;  %s40_s15 = sadd.s32 1, %s3932_s0 }
   0xf   : > { %p38_p0 = scmp.ge.s32.totalorder %s37_s14, 2  ;;  %p190_p1 = scmp.ne.s32.totalorder %s3916_s30, %s3912_s29 }
  0x10   : > { %p191_p2 = scmp.eq.s32.totalorder %s3489_s12, 3  ;;  %p196_p5 = scmp.ne.s32.totalorder %s3912_s29, %s3908_s28 }
  0x11   : > { %s5286_s14 = smov (%p38_p0, %s37_s14), 0  ;;  %s5288_s15 = smov (!%p38_p0, %s40_s15), %s3932_s0 }
  0x12   : > { %5268 = sst [smem:[#allocation11_spill]] %s5286_s14  ;;  %s176_s16 = ssub.s32 %s3928_s10, %s5286_s14 }
  0x13   : > { %p4043_p3 = por %p191_p2, %p190_p1  ;;  %p42_p4 = scmp.ge.s32.totalorder %s5288_s15, 2 }
  0x14   : > { %p197_p6 = scmp.eq.s32.totalorder %s3490_s13, 3  ;;  %p3493_p7 = scmp.ge.s32.totalorder %s3936_s11, 1 }
  0x15   : > { %s5290_s15 = smov (%p42_p4, %s5288_s15), 0  ;;  %p238_p9 = scmp.lt.s32.totalorder %s3936_s11, 5 }
  0x16   : > { %5270 = sst [smem:[#allocation12_spill]] %s5290_s15  ;;  %p4052_p8 = por %p197_p6, %p196_p5 }
  0x17   : > { %s175_s19 = ssub.s32 %s3932_s0, %s5290_s15  ;;  %s180_s20 = sadd.s32 1, %s3916_s30 }
  0x18   : > { %s177_s21 = sor.u32 %s176_s16, %s175_s19  ;;  %p239_p10 = pnand %p3493_p7, %p238_p9 }
  0x19   : > { %p178_p11 = scmp.eq.s32.totalorder %s177_s21, 0  ;;  %s4064_s23 = sshll.u32 (!%p239_p10), %s3920_s8, 4 }
  0x1a   : > { %242 = sbr.rel (%p239_p10) target bundleno = 645 (0x285), region = 44  ;;  %s5272_s2 = sld [smem:[#allocation14_spill]] (!%p239_p10) }
  0x1b   : > { %s4061_s22 = scalar_select %p178_p11, %s3916_s30, %s180_s20  }
  0x1c   : > { %s5273_s3 = sld [smem:[#allocation15_spill]] (!%p239_p10)  ;;  %p268_p12 = scmp.lt.s32.totalorder (!%p239_p10), %s3924_s9, 1 }
  0x1d   : > { %s1445_s19 = sadd.s32 (!%p239_p10), 15, %s4064_s23  ;;  %s1522_s21 = sadd.s32 (!%p239_p10), 16, %s4064_s23 }
  0x1e   : > { %s1446_s20 = sld [smem:[#allocation4 + %s1445_s19]] (!%p239_p10)  ;;  %s1599_s25 = sadd.s32 (!%p239_p10), 17, %s4064_s23 }
  0x1f   : > { %s269_s16 = scalar_select %p268_p12, %s3924_s9, 1  ;;  %v4102_v24 = vld [vmem:[%s5259_s4 + $0x8] sm:$0xff]  ;;  %v4119_v25 = vld [vmem:[%s5259_s4] sm:$0xff]  ;;  %vm322_vm0 = vcmask 1041409   ;;  %vm325_vm1 = vcmask 1042434   ;;  %vm328_vm2 = vcmask 1043459  }
  0x20   : > { %s4070_s26 = scalar_lea.vmem %s5272_s2, %s4064_s23  ;;  %s1523_s24 = sld [smem:[#allocation4 + %s1522_s21]]  ;;  %347 = vmatpush.msra.mxu0 %v4102_v24  ;;  %426 = vmatpush.msra.mxu1 %v4102_v24  ;;  %vm330_vm3 = vcmask 130048   ;;  %vm365_vm4 = vcmask 257024   ;;  %vm361_vm5 = vcmask 1043456   ;;  %vm363_vm6 = vcmask 261120  }
  0x21   : > { %v278_v0 = vld [vmem:[%s4070_s26] sm:$0xff]  ;;  %v4081_v16 = vld [vmem:[%s4070_s26 + $0x8] sm:$0xff]  ;;  %s3692_s27 = sshll.u32 %s269_s16, 6  ;;  %503 = vmatpush.msra.mxu2 %v4102_v24  ;;  %580 = vmatpush.msra.mxu3 %v4102_v24  ;;  %s5274_s1 = sld [smem:[#allocation13_spill]]  ;;  %vm1686_vm7 = vcmask 97280   ;;  %vm1790_vm8 = vcmask 253952  }
  0x22   : > { %s4076_s13 = scalar_lea.vmem %s5273_s3, %s4064_s23  ;;  %3693 = vpush %v278_v0  ;;  %v380_v2 = vrot.slane %v278_v0, 1  ;;  %v457_v4 = vrot.slane %v278_v0, 2  ;;  %v534_v6 = vrot.slane %v278_v0, 3  ;;  %v611_v8 = vrot.slane %v278_v0, 4  ;;  %s1600_s3 = sld [smem:[#allocation4 + %s1599_s25]]  ;;  %348 = vmatpush.msra.mxu0 %v4119_v25  ;;  %427 = vmatpush.msra.mxu1 %v4119_v25 }
  0x23   : > { %v282_v1 = vld [vmem:[%s4076_s13] sm:$0xff]  ;;  %v688_v10 = vrot.slane %v278_v0, 5  ;;  %v765_v12 = vrot.slane %v278_v0, 6  ;;  %v842_v14 = vrot.slane %v278_v0, 7  ;;  %v4084_v17 = vld [vmem:[%s4076_s13 + $0x8] sm:$0xff]  ;;  %v996_v18 = vrot.slane %v4081_v16, 1  ;;  %504 = vmatpush.msra.mxu2 %v4119_v25  ;;  %581 = vmatpush.msra.mxu3 %v4119_v25 }
  0x24   : > { %v388_v3 = vrot.slane %v282_v1, 1  ;;  %3695 = vpush %v282_v1  ;;  %v465_v5 = vrot.slane %v282_v1, 2  ;;  %v542_v7 = vrot.slane %v282_v1, 3  ;;  %v619_v9 = vrot.slane %v282_v1, 4  ;;  %s4114_s2 = sld [smem:[#allocation4 + %s4064_s23]]  ;;  %s367_s14 = sadd.s32 1, %s4064_s23  ;;  %657 = vmatpush.msrb.mxu0 %v4102_v24  ;;  %734 = vmatpush.msrb.mxu1 %v4102_v24 }
  0x25   : > { %3697 = vpush %v380_v2  ;;  %v696_v11 = vrot.slane %v282_v1, 5  ;;  %v773_v13 = vrot.slane %v282_v1, 6  ;;  %v850_v15 = vrot.slane %v282_v1, 7  ;;  %v1004_v19 = vrot.slane %v4084_v17, 1  ;;  %s368_s19 = sld [smem:[#allocation4 + %s367_s14]]  ;;  %811 = vmatpush.msrb.mxu2 %v4102_v24  ;;  %888 = vmatpush.msrb.mxu3 %v4102_v24 }
  0x26   : > { %3699 = vpush %v388_v3  ;;  %v1073_v20 = vrot.slane %v4081_v16, 2  ;;  %v1081_v21 = vrot.slane %v4084_v17, 2  ;;  %v1150_v22 = vrot.slane %v4081_v16, 3  ;;  %v1158_v23 = vrot.slane %v4084_v17, 3  ;;  %658 = vmatpush.msrb.mxu0 %v4119_v25  ;;  %735 = vmatpush.msrb.mxu1 %v4119_v25 }
  0x27   : > { %3701 = vpush %v457_v4  ;;  %s4111_s21 = scalar_lea.vmem %s5274_s1, %s3692_s27  ;;  %v1227_v26 = vrot.slane %v4081_v16, 4  ;;  %v1235_v27 = vrot.slane %v4084_v17, 4  ;;  %812 = vmatpush.msrb.mxu2 %v4119_v25  ;;  %889 = vmatpush.msrb.mxu3 %v4119_v25  ;;  %v1304_v28 = vrot.slane %v4081_v16, 5  ;;  %v1312_v29 = vrot.slane %v4084_v17, 5 }
  0x28   : > { %3703 = vpush %v465_v5  ;;  %s4122_s12 = scalar_lea.vmem %s4111_s21, %s1446_s20  ;;  %s4128_s15 = scalar_lea.vmem %s4111_s21, %s1523_s24  ;;  %v1381_v30 = vrot.slane %v4081_v16, 6  ;;  %v1389_v31 = vrot.slane %v4084_v17, 6  ;;  %v1458_v32 = vrot.slane %v4081_v16, 7  ;;  %v1466_v33 = vrot.slane %v4084_v17, 7 }
  0x29   : > { %3705 = vpush %v534_v6  ;;  %s4133_s27 = scalar_lea.vmem %s4111_s21, %s1600_s3  ;;  %s444_s20 = sadd.s32 2, %s4064_s23 }
  0x2a   : > { %3707 = vpush %v542_v7  ;;  %s4149_s3 = sld [smem:[#allocation4 + %s444_s20]]  ;;  %s286_s14 = scalar_lea.vmem %s4111_s21, %s4114_s2 }
  0x2b   : > { %3709 = vpush %v611_v8  ;;  %s521_s24 = sadd.s32 3, %s4064_s23  ;;  %v287_v34 = vld [vmem:[%s286_s14] sm:$0x1]  ;;  %s4158_s16 = scalar_lea.vmem %s4111_s21, %s368_s19  ;;  %v288_v35 = vld [vmem:[%s286_s14 + $0x10] sm:$0x1] }
  0x2c   : > { %3711 = vpush %v619_v9  ;;  %s4160_s25 = sld [smem:[#allocation4 + %s521_s24]]  ;;  %v289_v36 = vld [vmem:[%s286_s14 + $0x20] sm:$0x1]  ;;  %v290_v37 = vld [vmem:[%s286_s14 + $0x30] sm:$0x1] }
  0x2d   : > { %3713 = vpush %v688_v10  ;;  %v3498_v38 = vld [vmem:[%s286_s14 + $0x1] sm:$0x1]  ;;  %v3499_v39 = vld [vmem:[%s286_s14 + $0x11] sm:$0x1]  ;;  %v370_v43 = vld [vmem:[%s4158_s16] sm:$0x1] }
  0x2e   : > { %3715 = vpush %v696_v11  ;;  %v3500_v41 = vld [vmem:[%s286_s14 + $0x21] sm:$0x1]  ;;  %v3501_v42 = vld [vmem:[%s286_s14 + $0x31] sm:$0x1]  ;;  %v371_v48 = vld [vmem:[%s4158_s16 + $0x10] sm:$0x1] }
  0x2f   : > { %3717 = vpush %v765_v12  ;;  %v372_v49 = vld [vmem:[%s4158_s16 + $0x20] sm:$0x1]  ;;  %v373_v50 = vld [vmem:[%s4158_s16 + $0x30] sm:$0x1]  ;;  %s598_s14 = sadd.s32 4, %s4064_s23 }
  0x30   : > { %3719 = vpush %v773_v13  ;;  %s4168_s24 = scalar_lea.vmem %s4111_s21, %s4149_s3  ;;  %v3503_v57 = vld [vmem:[%s4158_s16 + $0x1] sm:$0x1]  ;;  %v3504_v58 = vld [vmem:[%s4158_s16 + $0x11] sm:$0x1]  ;;  %s4194_s3 = sld [smem:[#allocation4 + %s598_s14]] }
  0x31   : > { %3721 = vpush %v842_v14  ;;  %v3505_v63 = vld [vmem:[%s4158_s16 + $0x21] sm:$0x1]  ;;  %v3506_v0 = vld [vmem:[%s4158_s16 + $0x31] sm:$0x1]  ;;  %v448_v1 = vld [vmem:[%s4168_s24 + $0x10] sm:$0x1] }
  0x32   : > { %3723 = vpush %v850_v15  ;;  %v447_v6 = vld [vmem:[%s4168_s24] sm:$0x1]  ;;  %v450_v8 = vld [vmem:[%s4168_s24 + $0x30] sm:$0x1]  ;;  %s4190_s16 = scalar_lea.vmem %s4111_s21, %s4160_s25 }
  0x33   : > { %3725 = vpush %v4081_v16  ;;  %v449_v7 = vld [vmem:[%s4168_s24 + $0x20] sm:$0x1] }
  0x34   : > { %3727 = vpush %v4084_v17  ;;  %v3508_v17 = vld [vmem:[%s4168_s24 + $0x1] sm:$0x1] }
  0x35   : > { %3729 = vpush %v996_v18  ;;  %v3509_v18 = vld [vmem:[%s4168_s24 + $0x11] sm:$0x1] }
  0x36   : > { %3731 = vpush %v1004_v19 }
  0x37   : > { %3733 = vpush %v1073_v20 }
  0x38   : > { %3735 = vpush %v1081_v21 }
  0x39   : > { %3737 = vpush %v1150_v22 }
  0x3a   : > { %3739 = vpush %v1158_v23  ;;  %v3510_v23 = vld [vmem:[%s4168_s24 + $0x21] sm:$0x1] }
  0x3b   : > { %3741 = vpush %v1227_v26  ;;  %v3511_v26 = vld [vmem:[%s4168_s24 + $0x31] sm:$0x1] }
  0x3c   : > { %3743 = vpush %v1235_v27  ;;  %v524_v27 = vld [vmem:[%s4190_s16] sm:$0x1] }
  0x3d   : > { %3745 = vpush %v1304_v28 }
  0x3e   : > { %3747 = vpush %v1312_v29 }
  0x3f   : > { %3749 = vpush %v1381_v30 }
  0x40   : > { %3751 = vpush %v1389_v31 }
  0x41   : > { %3753 = vpush %v1458_v32  ;;  %v525_v32 = vld [vmem:[%s4190_s16 + $0x10] sm:$0x1] }
  0x42   : > { %3755 = vpush %v1466_v33  ;;  %v526_v33 = vld [vmem:[%s4190_s16 + $0x20] sm:$0x1] }
  0x53   : > { %s3694_s2 = spop %3693 }
  0x54   : > { %v299_v40 = vstv %s3694_s2 }
  0x55   : > { %s3696_s19 = spop %3695  ;;  %v301_v44 = vmul.f32 %v299_v40, %v287_v34  ;;  %v302_v45 = vmul.f32 %v299_v40, %v288_v35  ;;  %v303_v46 = vmul.f32 %v299_v40, %v289_v36  ;;  %v304_v47 = vmul.f32 %v299_v40, %v290_v37  ;;  %v4215_v40 = vld [vmem:[%s4076_s13 + $0x10] sm:$0x3]  ;;  %s4230_s13 = scalar_lea.vmem %s4111_s21, %s4194_s3 }
  0x56   : > { %s3698_s20 = spop %3697  ;;  %v307_v51 = vstv %s3696_s19 }
  0x57   : > { %v382_v52 = vstv %s3698_s20  ;;  %s3700_s2 = spop %3699  ;;  %v309_v53 = vmul.f32 %v3498_v38, %v307_v51  ;;  %v310_v54 = vmul.f32 %v3499_v39, %v307_v51  ;;  %v311_v55 = vmul.f32 %v3500_v41, %v307_v51  ;;  %v527_v38 = vld [vmem:[%s4190_s16 + $0x30] sm:$0x1] }
  0x58   : > { %v312_v56 = vmul.f32 %v3501_v42, %v307_v51  ;;  %s3702_s1 = spop %3701  ;;  %v384_v59 = vmul.f32 %v382_v52, %v370_v43  ;;  %v385_v60 = vmul.f32 %v382_v52, %v371_v48  ;;  %v386_v61 = vmul.f32 %v382_v52, %v372_v49  ;;  %v4212_v39 = vld [vmem:[%s4070_s26 + $0x10] sm:$0x3]  ;;  %v3515_v51 = vld [vmem:[%s4190_s16 + $0x21] sm:$0x1] }
  0x59   : > { %v387_v62 = vmul.f32 %v382_v52, %v373_v50  ;;  %s3704_s19 = spop %3703  ;;  %v4177_v2 = vadd.f32 %v309_v53, %v301_v44  ;;  %v4179_v3 = vadd.f32 %v310_v54, %v302_v45  ;;  %v4181_v4 = vadd.f32 %v311_v55, %v303_v46  ;;  %v3513_v45 = vld [vmem:[%s4190_s16 + $0x1] sm:$0x1]  ;;  %3757 = vpush %v4212_v39  ;;  %v3514_v50 = vld [vmem:[%s4190_s16 + $0x11] sm:$0x1] }
  0x5a   : > { %v4183_v5 = vadd.f32 %v312_v56, %v304_v47  ;;  %s3706_s20 = spop %3705  ;;  %v390_v9 = vstv %s3700_s2  ;;  %v459_v10 = vstv %s3702_s1  ;;  %v467_v11 = vstv %s3704_s19  ;;  %s5275_s1 = sadd.s32 5, %s4064_s23  ;;  %3759 = vpush %v4215_v40  ;;  %v3516_v56 = vld [vmem:[%s4190_s16 + $0x31] sm:$0x1] }
  0x5b   : > { %v536_v12 = vstv %s3706_s20  ;;  %v321_v13 = vrot.slane %v4179_v3, 7  ;;  %v324_v14 = vrot.slane %v4181_v4, 6  ;;  %v392_v15 = vmul.f32 %v3503_v57, %v390_v9  ;;  %s4207_s25 = sld [smem:[#allocation4 + %s5275_s1]]  ;;  %s752_s2 = sadd.s32 6, %s4064_s23 }
  0x5c   : > { %v393_v16 = vmul.f32 %v3504_v58, %v390_v9  ;;  %v394_v19 = vmul.f32 %v3505_v63, %v390_v9  ;;  %v395_v20 = vmul.f32 %v3506_v0, %v390_v9  ;;  %v461_v21 = vmul.f32 %v459_v10, %v447_v6  ;;  %s3708_s24 = spop %3707  ;;  %s4223_s26 = sld [smem:[#allocation4 + %s752_s2]]  ;;  %v601_v9 = vld [vmem:[%s4230_s13] sm:$0x1] }
  0x5d   : > { %v462_v22 = vmul.f32 %v459_v10, %v448_v1  ;;  %v396_v28 = vadd.f32 %v392_v15, %v384_v59  ;;  %v463_v30 = vmul.f32 %v459_v10, %v449_v7  ;;  %v464_v31 = vmul.f32 %v459_v10, %v450_v8  ;;  %s4232_s14 = spop %3709  ;;  %s829_s19 = sadd.s32 7, %s4064_s23  ;;  %v602_v10 = vld [vmem:[%s4230_s13 + $0x10] sm:$0x1]  ;;  %v603_v15 = vld [vmem:[%s4230_s13 + $0x20] sm:$0x1] }
  0x5e   : > { %v397_v29 = vadd.f32 %v393_v16, %v385_v60  ;;  %v398_v34 = vadd.f32 %v394_v19, %v386_v61  ;;  %v399_v35 = vadd.f32 %v395_v20, %v387_v62  ;;  %v469_v36 = vmul.f32 %v3508_v17, %v467_v11  ;;  %s4237_s3 = spop %3711  ;;  %v604_v16 = vld [vmem:[%s4230_s13 + $0x30] sm:$0x1]  ;;  %s4253_s1 = sld [smem:[#allocation4 + %s829_s19]] }
  0x5f   : > { %v470_v37 = vmul.f32 %v3509_v18, %v467_v11  ;;  %v471_v42 = vmul.f32 %v3510_v23, %v467_v11  ;;  %v472_v43 = vmul.f32 %v3511_v26, %v467_v11  ;;  %v538_v44 = vmul.f32 %v536_v12, %v524_v27  ;;  %s4242_s20 = spop %3713  ;;  %s983_s19 = sadd.s32 9, %s4064_s23 }
  0x60   : > { %v404_v41 = vrot.slane %v397_v29, 7  ;;  %v406_v46 = vrot.slane %v398_v34, 6  ;;  %v473_v47 = vadd.f32 %v469_v36, %v461_v21  ;;  %v539_v49 = vmul.f32 %v536_v12, %v525_v32  ;;  %v3518_v21 = vld [vmem:[%s4230_s13 + $0x1] sm:$0x1]  ;;  %s4259_s2 = spop %3715  ;;  %v3521_v29 = vld [vmem:[%s4230_s13 + $0x31] sm:$0x1] }
  0x61   : > { %v474_v48 = vadd.f32 %v470_v37, %v462_v22  ;;  %v475_v52 = vadd.f32 %v471_v42, %v463_v30  ;;  %v476_v53 = vadd.f32 %v472_v43, %v464_v31  ;;  %v540_v54 = vmul.f32 %v536_v12, %v526_v33  ;;  %s4251_s16 = scalar_lea.vmem %s4111_s21, %s4207_s25  ;;  %v3519_v22 = vld [vmem:[%s4230_s13 + $0x11] sm:$0x1]  ;;  %s4272_s25 = spop %3717 }
  0x62   : > { %v541_v55 = vmul.f32 %v536_v12, %v527_v38  ;;  %v544_v58 = vstv %s3708_s24  ;;  %v323_v59 = vsel %vm322_vm0, %v321_v13, %v4177_v2  ;;  %v327_v60 = vrot.slane %v4183_v5, 5  ;;  %v679_v36 = vld [vmem:[%s4251_s16 + $0x10] sm:$0x1]  ;;  %v680_v43 = vld [vmem:[%s4251_s16 + $0x20] sm:$0x1]  ;;  %s4279_s24 = scalar_lea.vmem %s4111_s21, %s4223_s26 }
  0x63   : > { %v481_v57 = vrot.slane %v474_v48, 7  ;;  %v483_v61 = vrot.slane %v475_v52, 6  ;;  %v546_v62 = vmul.f32 %v3513_v45, %v544_v58  ;;  %v547_v63 = vmul.f32 %v3514_v50, %v544_v58 }
  0x64   : > { %v548_v0 = vmul.f32 %v3515_v51, %v544_v58  ;;  %v549_v1 = vmul.f32 %v3516_v56, %v544_v58  ;;  %v326_v3 = vsel %vm325_vm1, %v324_v14, %v323_v59  ;;  %v405_v4 = vsel %vm322_vm0, %v404_v41, %v396_v28  ;;  %v3520_v28 = vld [vmem:[%s4230_s13 + $0x21] sm:$0x1]  ;;  %s3720_s13 = spop %3719  ;;  %v3526_v56 = vld [vmem:[%s4251_s16 + $0x31] sm:$0x1] }
  0x65   : > { %v408_v2 = vrot.slane %v399_v35, 5  ;;  %v550_v5 = vadd.f32 %v546_v62, %v538_v44  ;;  %v551_v6 = vadd.f32 %v547_v63, %v539_v49  ;;  %v329_v8 = vsel %vm328_vm2, %v327_v60, %v326_v3  ;;  %v678_v35 = vld [vmem:[%s4251_s16] sm:$0x1]  ;;  %v681_v44 = vld [vmem:[%s4251_s16 + $0x30] sm:$0x1] }
  0x66   : > { %v552_v7 = vadd.f32 %v548_v0, %v540_v54  ;;  %v553_v11 = vadd.f32 %v549_v1, %v541_v55  ;;  %3502 = vmatmul.msk.f32.vlgmr.msra.gmra.mxu0 %vm330_vm3, %v329_v8  ;;  %v407_v12 = vsel %vm325_vm1, %v406_v46, %v405_v4  ;;  %v482_v13 = vsel %vm322_vm0, %v481_v57, %v473_v47  ;;  %v3523_v49 = vld [vmem:[%s4251_s16 + $0x1] sm:$0x1]  ;;  %v3524_v54 = vld [vmem:[%s4251_s16 + $0x11] sm:$0x1]  ;;  %v756_v62 = vld [vmem:[%s4279_s24 + $0x10] sm:$0x1] }
  0x67   : > { %v485_v14 = vrot.slane %v476_v53, 5  ;;  %v558_v17 = vrot.slane %v551_v6, 7  ;;  %v409_v19 = vsel %vm328_vm2, %v408_v2, %v407_v12  ;;  %v484_v20 = vsel %vm325_vm1, %v483_v61, %v482_v13  ;;  %965 = vmatpush.msra.mxu0 %v4102_v24  ;;  %v3525_v55 = vld [vmem:[%s4251_s16 + $0x21] sm:$0x1]  ;;  %v755_v61 = vld [vmem:[%s4279_s24] sm:$0x1] }
  0x68   : > { %v560_v18 = vrot.slane %v552_v7, 6  ;;  %3507 = vmatmul.msk.f32.vlgmr.msra.gmra.mxu1 %vm330_vm3, %v409_v19  ;;  %v562_v26 = vrot.slane %v553_v11, 5  ;;  %v613_v27 = vstv %s4232_s14  ;;  %v621_v30 = vstv %s4237_s3  ;;  %s906_s14 = sadd.s32 8, %s4064_s23  ;;  %v757_v63 = vld [vmem:[%s4279_s24 + $0x20] sm:$0x1]  ;;  %s4319_s3 = scalar_lea.vmem %s4111_s21, %s4253_s1 }
  0x69   : > { %v486_v23 = vsel %vm328_vm2, %v485_v14, %v484_v20  ;;  %v559_v31 = vsel %vm322_vm0, %v558_v17, %v550_v5  ;;  %v615_v32 = vmul.f32 %v613_v27, %v601_v9  ;;  %v616_v33 = vmul.f32 %v613_v27, %v602_v10  ;;  %966 = vmatpush.msra.mxu0 %v4119_v25  ;;  %v758_v3 = vld [vmem:[%s4279_s24 + $0x30] sm:$0x1]  ;;  %s4308_s26 = sld [smem:[#allocation4 + %s906_s14]]  ;;  %v3528_v9 = vld [vmem:[%s4279_s24 + $0x1] sm:$0x1]  ;;  %s1137_s14 = sadd.s32 11, %s4064_s23 }
  0x6a   : > { %3512 = vmatmul.msk.f32.vlgmr.msra.gmra.mxu2 %vm330_vm3, %v486_v23  ;;  %v617_v34 = vmul.f32 %v613_v27, %v603_v15  ;;  %v561_v37 = vsel %vm325_vm1, %v560_v18, %v559_v31  ;;  %v618_v38 = vmul.f32 %v613_v27, %v604_v16  ;;  %v623_v41 = vmul.f32 %v3518_v21, %v621_v30  ;;  %v3529_v10 = vld [vmem:[%s4279_s24 + $0x11] sm:$0x1]  ;;  %v3530_v15 = vld [vmem:[%s4279_s24 + $0x21] sm:$0x1]  ;;  %v832_v27 = vld [vmem:[%s4319_s3] sm:$0x1] }
  0x6b   : > { %v624_v42 = vmul.f32 %v3519_v22, %v621_v30  ;;  %v563_v45 = vsel %vm328_vm2, %v562_v26, %v561_v37  ;;  %v625_v46 = vmul.f32 %v3520_v28, %v621_v30  ;;  %v626_v47 = vmul.f32 %v3521_v29, %v621_v30  ;;  %1042 = vmatpush.msra.mxu1 %v4102_v24  ;;  %v3531_v16 = vld [vmem:[%s4279_s24 + $0x31] sm:$0x1]  ;;  %v833_v28 = vld [vmem:[%s4319_s3 + $0x10] sm:$0x1]  ;;  %s4326_s16 = sld [smem:[#allocation4 + %s983_s19]] }
  0x6c   : > { %v690_v48 = vstv %s4242_s20  ;;  %1119 = vmatpush.msra.mxu2 %v4102_v24  ;;  %3517 = vmatmul.msk.f32.vlgmr.msra.gmra.mxu3 %vm330_vm3, %v563_v45  ;;  %v4289_v50 = vadd.f32 %v623_v41, %v615_v32  ;;  %v698_v1 = vstv %s4259_s2  ;;  %v767_v4 = vstv %s4272_s25  ;;  %s3722_s20 = spop %3721  ;;  %v834_v32 = vld [vmem:[%s4319_s3 + $0x20] sm:$0x1]  ;;  %s1060_s2 = sadd.s32 10, %s4064_s23 }
  0x6d   : > { %v4291_v51 = vadd.f32 %v624_v42, %v616_v33  ;;  %v692_v52 = vmul.f32 %v690_v48, %v678_v35  ;;  %v693_v53 = vmul.f32 %v690_v48, %v679_v36  ;;  %v4296_v57 = vadd.f32 %v625_v46, %v617_v34  ;;  %1043 = vmatpush.msra.mxu1 %v4119_v25  ;;  %v835_v33 = vld [vmem:[%s4319_s3 + $0x30] sm:$0x1]  ;;  %s3724_s1 = spop %3723  ;;  %v3533_v41 = vld [vmem:[%s4319_s3 + $0x1] sm:$0x1]  ;;  %v3534_v42 = vld [vmem:[%s4319_s3 + $0x11] sm:$0x1] }
  0x6e   : > { %v4298_v58 = vadd.f32 %v626_v47, %v618_v38  ;;  %v694_v59 = vmul.f32 %v690_v48, %v680_v43  ;;  %v695_v60 = vmul.f32 %v690_v48, %v681_v44  ;;  %v775_v2 = vstv %s3720_s13  ;;  %1120 = vmatpush.msra.mxu2 %v4119_v25  ;;  %1196 = vmatpush.msra.mxu3 %v4102_v24  ;;  %v3535_v47 = vld [vmem:[%s4319_s3 + $0x21] sm:$0x1]  ;;  %v3536_v48 = vld [vmem:[%s4319_s3 + $0x31] sm:$0x1]  ;;  %s4339_s24 = sld [smem:[#allocation4 + %s1060_s2]]  ;;  %s3726_s13 = spop %3725 }
  0x6f   : > { %v635_v0 = vrot.slane %v4291_v51, 7  ;;  %v637_v5 = vrot.slane %v4296_v57, 6  ;;  %v700_v7 = vmul.f32 %v3523_v49, %v698_v1  ;;  %v701_v8 = vmul.f32 %v3524_v54, %v698_v1  ;;  %s4337_s25 = scalar_lea.vmem %s4111_s21, %s4308_s26  ;;  %s4362_s26 = spop %3727 }
  0x70   : > { %v639_v6 = vrot.slane %v4298_v58, 5  ;;  %v702_v11 = vmul.f32 %v3525_v55, %v698_v1  ;;  %v703_v12 = vmul.f32 %v3526_v56, %v698_v1  ;;  %v769_v13 = vmul.f32 %v767_v4, %v755_v61  ;;  %1197 = vmatpush.msra.mxu3 %v4119_v25  ;;  %v910_v51 = vld [vmem:[%s4337_s25 + $0x10] sm:$0x1]  ;;  %s3730_s3 = spop %3729 }
  0x71   : > { %v770_v14 = vmul.f32 %v767_v4, %v756_v62  ;;  %v704_v17 = vadd.f32 %v700_v7, %v692_v52  ;;  %v705_v18 = vadd.f32 %v701_v8, %v693_v53  ;;  %v771_v19 = vmul.f32 %v767_v4, %v757_v63  ;;  %v909_v8 = vld [vmem:[%s4337_s25] sm:$0x1]  ;;  %s4366_s19 = scalar_lea.vmem %s4111_s21, %s4326_s16  ;;  %s4386_s16 = spop %3731 }
  0x72   : > { %v772_v20 = vmul.f32 %v767_v4, %v758_v3  ;;  %v706_v21 = vadd.f32 %v702_v11, %v694_v59  ;;  %v707_v22 = vadd.f32 %v703_v12, %v695_v60  ;;  %v777_v23 = vmul.f32 %v3528_v9, %v775_v2  ;;  %v911_v11 = vld [vmem:[%s4337_s25 + $0x20] sm:$0x1]  ;;  %v912_v12 = vld [vmem:[%s4337_s25 + $0x30] sm:$0x1]  ;;  %s3734_s2 = spop %3733 }
  0x73   : > { %v778_v26 = vmul.f32 %v3529_v10, %v775_v2  ;;  %v712_v29 = vrot.slane %v705_v18, 7  ;;  %v779_v30 = vmul.f32 %v3530_v15, %v775_v2  ;;  %v780_v31 = vmul.f32 %v3531_v16, %v775_v2 }
  0x74   : > { %v844_v34 = vstv %s3722_s20  ;;  %v714_v35 = vrot.slane %v706_v21, 6  ;;  %v716_v36 = vrot.slane %v707_v22, 5  ;;  %v781_v37 = vadd.f32 %v777_v23, %v769_v13  ;;  %v3538_v13 = vld [vmem:[%s4337_s25 + $0x1] sm:$0x1]  ;;  %s4374_s20 = sld [smem:[#allocation4 + %s1137_s14]] }
  0x75   : > { %v782_v38 = vadd.f32 %v778_v26, %v770_v14  ;;  %v783_v43 = vadd.f32 %v779_v30, %v771_v19  ;;  %v784_v44 = vadd.f32 %v780_v31, %v772_v20  ;;  %v846_v45 = vmul.f32 %v844_v34, %v832_v27  ;;  %v3539_v14 = vld [vmem:[%s4337_s25 + $0x11] sm:$0x1]  ;;  %v3540_v19 = vld [vmem:[%s4337_s25 + $0x21] sm:$0x1]  ;;  %v986_v23 = vld [vmem:[%s4366_s19] sm:$0x1] }
  0x76   : > { %v847_v46 = vmul.f32 %v844_v34, %v833_v28  ;;  %v848_v52 = vmul.f32 %v844_v34, %v834_v32  ;;  %v849_v53 = vmul.f32 %v844_v34, %v835_v33  ;;  %v852_v54 = vstv %s3724_s1  ;;  %v3541_v20 = vld [vmem:[%s4337_s25 + $0x31] sm:$0x1]  ;;  %v987_v26 = vld [vmem:[%s4366_s19 + $0x10] sm:$0x1]  ;;  %v988_v27 = vld [vmem:[%s4366_s19 + $0x20] sm:$0x1]  ;;  %s4393_s1 = scalar_lea.vmem %s4111_s21, %s4339_s24 }
  0x77   : > { %v789_v49 = vrot.slane %v782_v38, 7  ;;  %v791_v55 = vrot.slane %v783_v43, 6  ;;  %v793_v56 = vrot.slane %v784_v44, 5  ;;  %v854_v59 = vmul.f32 %v3533_v41, %v852_v54  ;;  %s1214_s25 = sadd.s32 12, %s4064_s23  ;;  %v3543_v43 = vld [vmem:[%s4366_s19 + $0x1] sm:$0x1] }
  0x78   : > { %v855_v60 = vmul.f32 %v3534_v42, %v852_v54  ;;  %v856_v61 = vmul.f32 %v3535_v47, %v852_v54  ;;  %v857_v62 = vmul.f32 %v3536_v48, %v852_v54  ;;  %v636_v63 = vsel %vm322_vm0, %v635_v0, %v4289_v50  ;;  %v3544_v44 = vld [vmem:[%s4366_s19 + $0x11] sm:$0x1]  ;;  %v1064_v54 = vld [vmem:[%s4393_s1 + $0x10] sm:$0x1]  ;;  %s1291_s24 = sadd.s32 13, %s4064_s23  ;;  %s4428_s14 = sld [smem:[#allocation4 + %s1214_s25]] }
  0x79   : > { %v713_v1 = vsel %vm322_vm0, %v712_v29, %v704_v17  ;;  %v858_v3 = vadd.f32 %v854_v59, %v846_v45  ;;  %v638_v2 = vsel %vm325_vm1, %v637_v5, %v636_v63  ;;  %v790_v58 = vsel %vm322_vm0, %v789_v49, %v781_v37  ;;  %v3545_v45 = vld [vmem:[%s4366_s19 + $0x21] sm:$0x1] }
  0x7a   : > { %v859_v4 = vadd.f32 %v855_v60, %v847_v46  ;;  %v715_v7 = vsel %vm325_vm1, %v714_v35, %v713_v1  ;;  %v860_v9 = vadd.f32 %v856_v61, %v848_v52  ;;  %v4353_v50 = vadd.f32 %v857_v62, %v849_v53  ;;  %v3546_v52 = vld [vmem:[%s4366_s19 + $0x31] sm:$0x1]  ;;  %v1063_v53 = vld [vmem:[%s4393_s1] sm:$0x1]  ;;  %v1066_v61 = vld [vmem:[%s4393_s1 + $0x30] sm:$0x1] }
  0x7b   : > { %v640_v0 = vsel %vm328_vm2, %v639_v6, %v638_v2  ;;  %v717_v10 = vsel %vm328_vm2, %v716_v36, %v715_v7  ;;  %v1612_v5 = vrot.slane %v4212_v39, 1  ;;  %v1620_v6 = vrot.slane %v4215_v40, 1  ;;  %v989_v36 = vld [vmem:[%s4366_s19 + $0x30] sm:$0x1]  ;;  %v1065_v60 = vld [vmem:[%s4393_s1 + $0x20] sm:$0x1] }
  0x7c   : > { %v866_v57 = vrot.slane %v859_v4, 7  ;;  %3522 = vmatmul.msk.f32.vlgmr.msrb.gmra.mxu0 %vm330_vm3, %v640_v0  ;;  %3527 = vmatmul.msk.f32.vlgmr.msrb.gmra.mxu1 %vm330_vm3, %v717_v10  ;;  %v868_v15 = vrot.slane %v860_v9, 6  ;;  %v870_v16 = vrot.slane %v4353_v50, 5  ;;  %v792_v17 = vsel %vm325_vm1, %v791_v55, %v790_v58  ;;  %v3548_v2 = vld [vmem:[%s4393_s1 + $0x1] sm:$0x1] }
  0x7d   : > { %v921_v18 = vstv %s3726_s13  ;;  %1273 = vmatpush.msrb.mxu0 %v4102_v24  ;;  %1350 = vmatpush.msrb.mxu1 %v4102_v24  ;;  %v794_v39 = vsel %vm328_vm2, %v793_v56, %v792_v17  ;;  %3761 = vpush %v1612_v5  ;;  %v929_v29 = vstv %s4362_s26  ;;  %v998_v31 = vstv %s3730_s3  ;;  %s3736_s13 = spop %3735  ;;  %v3549_v50 = vld [vmem:[%s4393_s1 + $0x11] sm:$0x1]  ;;  %s4435_s26 = scalar_lea.vmem %s4111_s21, %s4374_s20 }
  0x7e   : > { %v923_v40 = vmul.f32 %v921_v18, %v909_v8  ;;  %v924_v21 = vmul.f32 %v921_v18, %v910_v51  ;;  %v925_v22 = vmul.f32 %v921_v18, %v911_v11  ;;  %3532 = vmatmul.msk.f32.vlgmr.msrb.gmra.mxu2 %vm330_vm3, %v794_v39  ;;  %3763 = vpush %v1620_v6  ;;  %v1006_v59 = vstv %s4386_s16  ;;  %v3550_v0 = vld [vmem:[%s4393_s1 + $0x21] sm:$0x1]  ;;  %v3551_v10 = vld [vmem:[%s4393_s1 + $0x31] sm:$0x1]  ;;  %s3738_s19 = spop %3737  ;;  %s4441_s3 = sld [smem:[#allocation4 + %s1291_s24]] }
  0x7f   : > { %v926_v28 = vmul.f32 %v921_v18, %v912_v12  ;;  %v867_v30 = vsel %vm322_vm0, %v866_v57, %v858_v3  ;;  %1274 = vmatpush.msrb.mxu0 %v4119_v25  ;;  %v931_v32 = vmul.f32 %v3538_v13, %v929_v29  ;;  %v932_v33 = vmul.f32 %v3539_v14, %v929_v29  ;;  %v1142_v39 = vld [vmem:[%s4435_s26 + $0x20] sm:$0x1]  ;;  %s3740_s20 = spop %3739  ;;  %s1368_s16 = sadd.s32 14, %s4064_s23 }
  0x80   : > { %v933_v34 = vmul.f32 %v3540_v19, %v929_v29  ;;  %v934_v35 = vmul.f32 %v3541_v20, %v929_v29  ;;  %1427 = vmatpush.msrb.mxu2 %v4102_v24  ;;  %v869_v37 = vsel %vm325_vm1, %v868_v15, %v867_v30  ;;  %v1000_v38 = vmul.f32 %v998_v31, %v986_v23  ;;  %v1140_v15 = vld [vmem:[%s4435_s26] sm:$0x1]  ;;  %v1141_v20 = vld [vmem:[%s4435_s26 + $0x10] sm:$0x1]  ;;  %s3742_s1 = spop %3741  ;;  %s4457_s23 = sld [smem:[#allocation4 + %s1368_s16]] }
  0x81   : > { %v1001_v41 = vmul.f32 %v998_v31, %v987_v26  ;;  %v1002_v42 = vmul.f32 %v998_v31, %v988_v27  ;;  %1351 = vmatpush.msrb.mxu1 %v4119_v25  ;;  %v4404_v46 = vadd.f32 %v931_v32, %v923_v40  ;;  %v4406_v47 = vadd.f32 %v932_v33, %v924_v21  ;;  %v1143_v40 = vld [vmem:[%s4435_s26 + $0x30] sm:$0x1]  ;;  %v3553_v27 = vld [vmem:[%s4435_s26 + $0x1] sm:$0x1]  ;;  %v3556_v33 = vld [vmem:[%s4435_s26 + $0x31] sm:$0x1]  ;;  %s3744_s25 = spop %3743 }
  0x82   : > { %v4408_v48 = vadd.f32 %v933_v34, %v925_v22  ;;  %v4410_v49 = vadd.f32 %v934_v35, %v926_v28  ;;  %1428 = vmatpush.msrb.mxu2 %v4119_v25  ;;  %v871_v55 = vsel %vm328_vm2, %v870_v16, %v869_v37  ;;  %v1003_v56 = vmul.f32 %v998_v31, %v989_v36  ;;  %v3554_v31 = vld [vmem:[%s4435_s26 + $0x11] sm:$0x1]  ;;  %v3555_v32 = vld [vmem:[%s4435_s26 + $0x21] sm:$0x1] }
  0x83   : > { %v1075_v62 = vstv %s3734_s2  ;;  %v943_v63 = vrot.slane %v4406_v47, 7  ;;  %3537 = vmatmul.msk.f32.vlgmr.msrb.gmra.mxu3 %vm330_vm3, %v871_v55  ;;  %v1008_v4 = vmul.f32 %v3543_v43, %v1006_v59  ;;  %v1009_v7 = vmul.f32 %v3544_v44, %v1006_v59  ;;  %s4455_s2 = scalar_lea.vmem %s4111_s21, %s4428_s14 }
  0x84   : > { %v945_v1 = vrot.slane %v4408_v48, 6  ;;  %v947_v3 = vrot.slane %v4410_v49, 5  ;;  %v1010_v8 = vmul.f32 %v3545_v45, %v1006_v59  ;;  %v1011_v51 = vmul.f32 %v3546_v52, %v1006_v59  ;;  %1504 = vmatpush.msrb.mxu3 %v4102_v24  ;;  %s4470_s24 = scalar_lea.vmem %s4111_s21, %s4441_s3 }
  0x85   : > { %v1077_v9 = vmul.f32 %v1075_v62, %v1063_v53  ;;  %v1012_v11 = vadd.f32 %v1008_v4, %v1000_v38  ;;  %v1078_v12 = vmul.f32 %v1075_v62, %v1064_v54  ;;  %v1079_v13 = vmul.f32 %v1075_v62, %v1065_v60  ;;  %v1217_v54 = vld [vmem:[%s4455_s2] sm:$0x1] }
  0x86   : > { %v1080_v57 = vmul.f32 %v1075_v62, %v1066_v61  ;;  %v1013_v58 = vadd.f32 %v1009_v7, %v1001_v41  ;;  %v1014_v5 = vadd.f32 %v1010_v8, %v1002_v42  ;;  %v4438_v6 = vadd.f32 %v1011_v51, %v1003_v56  ;;  %1505 = vmatpush.msrb.mxu3 %v4119_v25  ;;  %v1218_v7 = vld [vmem:[%s4455_s2 + $0x10] sm:$0x1]  ;;  %v1219_v8 = vld [vmem:[%s4455_s2 + $0x20] sm:$0x1]  ;;  %s4500_s26 = scalar_lea.vmem %s4111_s21, %s4457_s23 }
  0x87   : > { %v1083_v14 = vstv %s3736_s13  ;;  %v1152_v26 = vstv %s3738_s19  ;;  %v1160_v43 = vstv %s3740_s20  ;;  %v944_v55 = vsel %vm322_vm0, %v943_v63, %v4404_v46  ;;  %v1220_v51 = vld [vmem:[%s4455_s2 + $0x30] sm:$0x1]  ;;  %s3746_s13 = spop %3745 }
  0x88   : > { %v1085_v16 = vmul.f32 %v3548_v2, %v1083_v14  ;;  %v1086_v17 = vmul.f32 %v3549_v50, %v1083_v14  ;;  %v1087_v18 = vmul.f32 %v3550_v0, %v1083_v14  ;;  %v1088_v19 = vmul.f32 %v3551_v10, %v1083_v14  ;;  %v3558_v50 = vld [vmem:[%s4455_s2 + $0x1] sm:$0x1]  ;;  %v3559_v0 = vld [vmem:[%s4455_s2 + $0x11] sm:$0x1]  ;;  %v1294_v14 = vld [vmem:[%s4470_s24] sm:$0x1]  ;;  %s4490_s14 = spop %3747 }
  0x89   : > { %v1020_v21 = vrot.slane %v1013_v58, 7  ;;  %v1022_v22 = vrot.slane %v1014_v5, 6  ;;  %v1024_v23 = vrot.slane %v4438_v6, 5  ;;  %v1154_v34 = vmul.f32 %v1152_v26, %v1140_v15  ;;  %v3561_v6 = vld [vmem:[%s4455_s2 + $0x31] sm:$0x1]  ;;  %s3750_s19 = spop %3749 }
  0x8a   : > { %v1089_v28 = vadd.f32 %v1085_v16, %v1077_v9  ;;  %v1090_v25 = vadd.f32 %v1086_v17, %v1078_v12  ;;  %v1091_v29 = vadd.f32 %v1087_v18, %v1079_v13  ;;  %v1092_v30 = vadd.f32 %v1088_v19, %v1080_v57  ;;  %v1295_v15 = vld [vmem:[%s4470_s24 + $0x10] sm:$0x1]  ;;  %v1296_v17 = vld [vmem:[%s4470_s24 + $0x20] sm:$0x1] }
  0x8b   : > { %v1155_v35 = vmul.f32 %v1152_v26, %v1141_v20  ;;  %v1156_v36 = vmul.f32 %v1152_v26, %v1142_v39  ;;  %v1157_v37 = vmul.f32 %v1152_v26, %v1143_v40  ;;  %v1162_v44 = vmul.f32 %v3553_v27, %v1160_v43 }
  0x8c   : > { %v1097_v38 = vrot.slane %v1090_v25, 7  ;;  %v1099_v41 = vrot.slane %v1091_v29, 6  ;;  %v1101_v42 = vrot.slane %v1092_v30, 5  ;;  %v1163_v45 = vmul.f32 %v3554_v31, %v1160_v43  ;;  %v3564_v25 = vld [vmem:[%s4470_s24 + $0x11] sm:$0x1]  ;;  %v3854_v29 = vld [vmem:[%s5259_s4 + $0x8] sm:$0xff] }
  0x8d   : > { %v1164_v52 = vmul.f32 %v3555_v32, %v1160_v43  ;;  %v1165_v53 = vmul.f32 %v3556_v33, %v1160_v43  ;;  %v1021_v56 = vsel %vm322_vm0, %v1020_v21, %v1012_v11  ;;  %v1229_v60 = vstv %s3742_s1  ;;  %v1297_v21 = vld [vmem:[%s4470_s24 + $0x30] sm:$0x1]  ;;  %v3565_v33 = vld [vmem:[%s4470_s24 + $0x21] sm:$0x1]  ;;  %s3752_s1 = spop %3751 }
  0x8e   : > { %v1098_v59 = vsel %vm322_vm0, %v1097_v38, %v1089_v28  ;;  %v1166_v61 = vadd.f32 %v1162_v44, %v1154_v34  ;;  %v1167_v62 = vadd.f32 %v1163_v45, %v1155_v35  ;;  %v946_v46 = vsel %vm325_vm1, %v945_v1, %v944_v55  ;;  %v3560_v1 = vld [vmem:[%s4455_s2 + $0x21] sm:$0x1]  ;;  %v3566_v34 = vld [vmem:[%s4470_s24 + $0x31] sm:$0x1]  ;;  %v1371_v35 = vld [vmem:[%s4500_s26] sm:$0x1]  ;;  %s3754_s2 = spop %3753 }
  0x8f   : > { %v1168_v4 = vadd.f32 %v1164_v52, %v1156_v36  ;;  %v1169_v2 = vadd.f32 %v1165_v53, %v1157_v37  ;;  %v1023_v47 = vsel %vm325_vm1, %v1022_v22, %v1021_v56  ;;  %v1100_v63 = vsel %vm325_vm1, %v1099_v41, %v1098_v59  ;;  %v3563_v28 = vld [vmem:[%s4470_s24 + $0x1] sm:$0x1]  ;;  %v1372_v41 = vld [vmem:[%s4500_s26 + $0x10] sm:$0x1]  ;;  %s3756_s23 = spop %3755 }
  0x90   : > { %v1231_v9 = vmul.f32 %v1229_v60, %v1217_v54  ;;  %v1174_v10 = vrot.slane %v1167_v62, 7  ;;  %v948_v48 = vsel %vm328_vm2, %v947_v3, %v946_v46  ;;  %v1025_v13 = vsel %vm328_vm2, %v1024_v23, %v1023_v47  ;;  %v3855_v44 = vld [vmem:[%s5259_s4] sm:$0xff]  ;;  %v1374_v55 = vld [vmem:[%s4500_s26 + $0x30] sm:$0x1] }
  0x91   : > { %v1176_v11 = vrot.slane %v1168_v4, 6  ;;  %v1178_v12 = vrot.slane %v1169_v2, 5  ;;  %3542 = vmatmul.msk.f32.vlgmr.msra.gmra.mxu0 %vm330_vm3, %v948_v48  ;;  %v1102_v57 = vsel %vm328_vm2, %v1101_v42, %v1100_v63  ;;  %v1232_v58 = vmul.f32 %v1229_v60, %v1218_v7  ;;  %3547 = vmatmul.msk.f32.vlgmr.msra.gmra.mxu1 %vm330_vm3, %v1025_v13  ;;  %v1373_v42 = vld [vmem:[%s4500_s26 + $0x20] sm:$0x1]  ;;  %v3568_v56 = vld [vmem:[%s4500_s26 + $0x1] sm:$0x1] }
  0x92   : > { %v1233_v5 = vmul.f32 %v1229_v60, %v1219_v8  ;;  %3552 = vmatmul.msk.f32.vlgmr.msra.gmra.mxu2 %vm330_vm3, %v1102_v57  ;;  %v1175_v49 = vsel %vm322_vm0, %v1174_v10, %v1166_v61  ;;  %v1234_v3 = vmul.f32 %v1229_v60, %v1220_v51  ;;  %v1237_v16 = vstv %s3744_s25  ;;  %1581 = vmatpush.msra.mxu0 %v4102_v24  ;;  %v3569_v4 = vld [vmem:[%s4500_s26 + $0x11] sm:$0x1]  ;;  %v3570_v2 = vld [vmem:[%s4500_s26 + $0x21] sm:$0x1]  ;;  %v1448_v10 = vld [vmem:[%s4122_s12] sm:$0x1]  ;;  %s3758_s25 = spop %3757 }
  0x93   : > { %v1306_v18 = vstv %s3746_s13  ;;  %v1177_v19 = vsel %vm325_vm1, %v1176_v11, %v1175_v49  ;;  %v1239_v20 = vmul.f32 %v3558_v50, %v1237_v16  ;;  %v1240_v39 = vmul.f32 %v3559_v0, %v1237_v16  ;;  %1658 = vmatpush.msra.mxu1 %v3854_v29  ;;  %v3571_v63 = vld [vmem:[%s4500_s26 + $0x31] sm:$0x1]  ;;  %v1449_v11 = vld [vmem:[%s4122_s12 + $0x10] sm:$0x1]  ;;  %v1450_v57 = vld [vmem:[%s4122_s12 + $0x20] sm:$0x1] }
  0x94   : > { %v1241_v40 = vmul.f32 %v3560_v1, %v1237_v16  ;;  %v1179_v22 = vsel %vm328_vm2, %v1178_v12, %v1177_v19  ;;  %v1242_v23 = vmul.f32 %v3561_v6, %v1237_v16  ;;  %v1308_v26 = vmul.f32 %v1306_v18, %v1294_v14  ;;  %1582 = vmatpush.msra.mxu0 %v3855_v44  ;;  %v3574_v19 = vld [vmem:[%s4122_s12 + $0x11] sm:$0x1]  ;;  %s3940_s13 = smov 127  }
  0x95   : > { %v1309_v27 = vmul.f32 %v1306_v18, %v1295_v15  ;;  %3557 = vmatmul.msk.f32.vlgmr.msra.gmra.mxu3 %vm330_vm3, %v1179_v22  ;;  %v4510_v30 = vadd.f32 %v1239_v20, %v1231_v9  ;;  %v4512_v24 = vadd.f32 %v1240_v39, %v1232_v58  ;;  %v1310_v32 = vmul.f32 %v1306_v18, %v1296_v17  ;;  %v1451_v58 = vld [vmem:[%s4122_s12 + $0x30] sm:$0x1]  ;;  %v3575_v20 = vld [vmem:[%s4122_s12 + $0x21] sm:$0x1] }
  0x96   : > { %v4514_v31 = vadd.f32 %v1241_v40, %v1233_v5  ;;  %v4519_v36 = vadd.f32 %v1242_v23, %v1234_v3  ;;  %v1311_v37 = vmul.f32 %v1306_v18, %v1297_v21  ;;  %v1314_v38 = vstv %s4490_s14  ;;  %1659 = vmatpush.msra.mxu1 %v3855_v44  ;;  %v3573_v18 = vld [vmem:[%s4122_s12 + $0x1] sm:$0x1]  ;;  %v3576_v23 = vld [vmem:[%s4122_s12 + $0x31] sm:$0x1]  ;;  %v1527_v44 = vld [vmem:[%s4128_s15 + $0x20] sm:$0x1]  ;;  %s3760_s12 = spop %3759 }
  0x97   : > { %v1383_v43 = vstv %s3750_s19  ;;  %v1251_v45 = vrot.slane %v4512_v24, 7  ;;  %v1316_v53 = vmul.f32 %v3563_v28, %v1314_v38  ;;  %v1317_v54 = vmul.f32 %v3564_v25, %v1314_v38 }
  0x98   : > { %v1253_v52 = vrot.slane %v4514_v31, 6  ;;  %v1255_v59 = vrot.slane %v4519_v36, 5  ;;  %v1318_v60 = vmul.f32 %v3565_v33, %v1314_v38  ;;  %v1319_v61 = vmul.f32 %v3566_v34, %v1314_v38 }
  0x99   : > { %v1385_v62 = vmul.f32 %v1383_v43, %v1371_v35  ;;  %v1320_v7 = vadd.f32 %v1316_v53, %v1308_v26  ;;  %v1321_v8 = vadd.f32 %v1317_v54, %v1309_v27  ;;  %v1386_v46 = vmul.f32 %v1383_v43, %v1372_v41  ;;  %v1528_v54 = vld [vmem:[%s4128_s15 + $0x30] sm:$0x1] }
  0x9a   : > { %v1387_v47 = vmul.f32 %v1383_v43, %v1373_v42  ;;  %v1322_v51 = vadd.f32 %v1318_v60, %v1310_v32  ;;  %v1323_v9 = vadd.f32 %v1319_v61, %v1311_v37  ;;  %v1388_v50 = vmul.f32 %v1383_v43, %v1374_v55  ;;  %v1525_v42 = vld [vmem:[%s4128_s15] sm:$0x1]  ;;  %v1526_v43 = vld [vmem:[%s4128_s15 + $0x10] sm:$0x1] }
  0x9b   : > { %v1391_v0 = vstv %s3752_s1  ;;  %v1328_v12 = vrot.slane %v1321_v8, 7  ;;  %v1460_v15 = vstv %s3754_s2  ;;  %v1468_v28 = vstv %s3756_s23  ;;  %s265_s2 = sand.u32 1, %s3912_s29  }
  0x9c   : > { %v1393_v48 = vmul.f32 %v3568_v56, %v1391_v0  ;;  %v1394_v1 = vmul.f32 %v3569_v4, %v1391_v0  ;;  %v1395_v13 = vmul.f32 %v3570_v2, %v1391_v0  ;;  %v1330_v5 = vrot.slane %v1322_v51, 6  ;;  %v3578_v56 = vld [vmem:[%s4128_s15 + $0x1] sm:$0x1]  ;;  %v3579_v4 = vld [vmem:[%s4128_s15 + $0x11] sm:$0x1]  ;;  %s3494_s23 = sshll.u32 %s265_s2, 7 }
  0x9d   : > { %v1332_v6 = vrot.slane %v1323_v9, 5  ;;  %v1396_v14 = vmul.f32 %v3571_v63, %v1391_v0  ;;  %v1462_v17 = vmul.f32 %v1460_v15, %v1448_v10  ;;  %v1463_v40 = vmul.f32 %v1460_v15, %v1449_v11  ;;  %v3580_v2 = vld [vmem:[%s4128_s15 + $0x21] sm:$0x1]  ;;  %v3581_v63 = vld [vmem:[%s4128_s15 + $0x31] sm:$0x1] }
  0x9e   : > { %v1397_v49 = vadd.f32 %v1393_v48, %v1385_v62  ;;  %v1398_v3 = vadd.f32 %v1394_v1, %v1386_v46  ;;  %v1399_v16 = vadd.f32 %v1395_v13, %v1387_v47  ;;  %v1464_v21 = vmul.f32 %v1460_v15, %v1450_v57 }
  0x9f   : > { %v1400_v39 = vadd.f32 %v1396_v14, %v1388_v50  ;;  %v1465_v22 = vmul.f32 %v1460_v15, %v1451_v58  ;;  %v1252_v25 = vsel %vm322_vm0, %v1251_v45, %v4510_v30  ;;  %v1470_v24 = vmul.f32 %v3573_v18, %v1468_v28 }
  0xa0   : > { %v1405_v26 = vrot.slane %v1398_v3, 7  ;;  %v1407_v27 = vrot.slane %v1399_v16, 6  ;;  %v1471_v31 = vmul.f32 %v3574_v19, %v1468_v28  ;;  %v1472_v32 = vmul.f32 %v3575_v20, %v1468_v28  ;;  %v1603_v3 = vld [vmem:[%s4133_s27 + $0x10] sm:$0x1]  ;;  %v1604_v16 = vld [vmem:[%s4133_s27 + $0x20] sm:$0x1] }
  0xa1   : > { %v1409_v29 = vrot.slane %v1400_v39, 5  ;;  %v1473_v33 = vmul.f32 %v3576_v23, %v1468_v28  ;;  %v1254_v34 = vsel %vm325_vm1, %v1253_v52, %v1252_v25  ;;  %v1329_v36 = vsel %vm322_vm0, %v1328_v12, %v1320_v7  ;;  %v3583_v19 = vld [vmem:[%s4133_s27 + $0x1] sm:$0x1] }
  0xa2   : > { %v1406_v35 = vsel %vm322_vm0, %v1405_v26, %v1397_v49  ;;  %v1474_v37 = vadd.f32 %v1470_v24, %v1462_v17  ;;  %v1475_v38 = vadd.f32 %v1471_v31, %v1463_v40  ;;  %v1476_v41 = vadd.f32 %v1472_v32, %v1464_v21  ;;  %v1602_v49 = vld [vmem:[%s4133_s27] sm:$0x1]  ;;  %v1605_v17 = vld [vmem:[%s4133_s27 + $0x30] sm:$0x1]  ;;  %v3584_v40 = vld [vmem:[%s4133_s27 + $0x11] sm:$0x1] }
  0xa3   : > { %v1256_v30 = vsel %vm328_vm2, %v1255_v59, %v1254_v34  ;;  %v1477_v45 = vadd.f32 %v1473_v33, %v1465_v22  ;;  %v1408_v52 = vsel %vm325_vm1, %v1407_v27, %v1406_v35  ;;  %v1331_v53 = vsel %vm325_vm1, %v1330_v5, %v1329_v36  ;;  %v3585_v21 = vld [vmem:[%s4133_s27 + $0x21] sm:$0x1]  ;;  %v3586_v22 = vld [vmem:[%s4133_s27 + $0x31] sm:$0x1]  ;;  %s3939_s27 = smov 126  }
  0xa4   : > { %3562 = vmatmul.msk.f32.vlgmr.msrb.gmra.mxu0 %vm330_vm3, %v1256_v30  ;;  %v1537_v55 = vstv %s3758_s25  ;;  %v1482_v60 = vrot.slane %v1475_v38, 7  ;;  %v1484_v61 = vrot.slane %v1476_v41, 6  ;;  %v1410_v59 = vsel %vm328_vm2, %v1409_v29, %v1408_v52  ;;  %s4932_s25 = scalar_lea.vmem [#allocation5], %s3494_s23 }
  0xa5   : > { %v1333_v62 = vsel %vm328_vm2, %v1332_v6, %v1331_v53  ;;  %v1486_v7 = vrot.slane %v1477_v45, 5  ;;  %3572 = vmatmul.msk.f32.vlgmr.msrb.gmra.mxu2 %vm330_vm3, %v1410_v59  ;;  %v1539_v8 = vmul.f32 %v1537_v55, %v1525_v42  ;;  %v1540_v46 = vmul.f32 %v1537_v55, %v1526_v43 }
  0xa6   : > { %3567 = vmatmul.msk.f32.vlgmr.msrb.gmra.mxu1 %vm330_vm3, %v1333_v62  ;;  %v1541_v47 = vmul.f32 %v1537_v55, %v1527_v44  ;;  %v1483_v51 = vsel %vm322_vm0, %v1482_v60, %v1474_v37  ;;  %v1542_v9 = vmul.f32 %v1537_v55, %v1528_v54  ;;  %v1545_v50 = vstv %s3760_s12  ;;  %s3315_s12 = scalar_lea.sflag [#allocation6], %s265_s2 }
  0xa7   : > { %v1485_v0 = vsel %vm325_vm1, %v1484_v61, %v1483_v51  ;;  %v1547_v10 = vmul.f32 %v3578_v56, %v1545_v50  ;;  %v1548_v11 = vmul.f32 %v3579_v4, %v1545_v50  ;;  %v1549_v12 = vmul.f32 %v3580_v2, %v1545_v50 }
  0xa8   : > { %v1487_v48 = vsel %vm328_vm2, %v1486_v7, %v1485_v0  ;;  %v1550_v1 = vmul.f32 %v3581_v63, %v1545_v50 }
  0xa9   : > { %3577 = vmatmul.msk.f32.vlgmr.msrb.gmra.mxu3 %vm330_vm3, %v1487_v48  ;;  %v1551_v13 = vadd.f32 %v1547_v10, %v1539_v8  ;;  %v1552_v57 = vadd.f32 %v1548_v11, %v1540_v46  ;;  %v1553_v58 = vadd.f32 %v1549_v12, %v1541_v47 }
  0xaa   : > { %v1554_v5 = vadd.f32 %v1550_v1, %v1542_v9 }
  0xab   : > { %v1559_v6 = vrot.slane %v1552_v57, 7  ;;  %v1561_v14 = vrot.slane %v1553_v58, 6 }
  0xac   : > { %v1563_v15 = vrot.slane %v1554_v5, 5 }
  0xad   : > { %v1560_v18 = vsel %vm322_vm0, %v1559_v6, %v1551_v13 }
  0xae   : > { %s3762_s15 = spop %3761  ;;  %v1562_v20 = vsel %vm325_vm1, %v1561_v14, %v1560_v18 }
  0xaf   : > { %v1614_v39 = vstv %s3762_s15  ;;  %s3764_s24 = spop %3763  ;;  %v1564_v23 = vsel %vm328_vm2, %v1563_v15, %v1562_v20 }
  0xb0   : > { %v1616_v26 = vmul.f32 %v1614_v39, %v1602_v49  ;;  %v1617_v27 = vmul.f32 %v1614_v39, %v1603_v3  ;;  %v1618_v28 = vmul.f32 %v1614_v39, %v1604_v16  ;;  %v1619_v25 = vmul.f32 %v1614_v39, %v1605_v17  ;;  %3582 = vmatmul.msk.f32.vlgmr.msra.gmra.mxu0 %vm330_vm3, %v1564_v23 }
  0xb1   : > { %v1622_v29 = vstv %s3764_s24 }
  0xb2   : > { %v1624_v24 = vmul.f32 %v3583_v19, %v1622_v29  ;;  %v1625_v31 = vmul.f32 %v3584_v40, %v1622_v29  ;;  %v1626_v32 = vmul.f32 %v3585_v21, %v1622_v29  ;;  %v1627_v33 = vmul.f32 %v3586_v22, %v1622_v29  ;;  %v4702_v22 = vld [vmem:[%s5260_s5 + $0x10] sm:$0xff] }
  0xb4   : > { %v1628_v34 = vadd.f32 %v1624_v24, %v1616_v26  ;;  %v1629_v35 = vadd.f32 %v1625_v31, %v1617_v27  ;;  %v1630_v36 = vadd.f32 %v1626_v32, %v1618_v28  ;;  %v1631_v37 = vadd.f32 %v1627_v33, %v1619_v25  ;;  %v4708_v27 = vld [vmem:[%s5260_s5 + $0x8] sm:$0xff] }
  0xb6   : > { %v1636_v38 = vrot.slane %v1629_v35, 7  ;;  %v1638_v41 = vrot.slane %v1630_v36, 6  ;;  %v1640_v30 = vrot.slane %v1631_v37, 5  ;;  %v4730_v36 = vld [vmem:[%s5260_s5] sm:$0xff]  ;;  %v3941_v37 = vmov 0  }
  0xb7   : > { %3853 = vset.pattern.permute.xlu0 %v3941_v37 }
  0xb8   : > { %v1637_v42 = vsel %vm322_vm0, %v1636_v38, %v1628_v34  ;;  %v1681_v38 = vld [vmem:[%s5261_s6] sm:$0xff] }
  0xb9   : > { %v1639_v43 = vsel %vm325_vm1, %v1638_v41, %v1637_v42 }
  0xba   : > { %v1641_v44 = vsel %vm328_vm2, %v1640_v30, %v1639_v43 }
  0xbb   : > { %3587 = vmatmul.msk.f32.vlgmr.msra.gmra.mxu1 %vm330_vm3, %v1641_v44 }
  0xe3   : > { %v4584_v45 = vpop.f32.mrf.mxu0 }
  0xe4   : > { %358 = vrot.lane.b32.xlu0 %v4584_v45, %s3939_s27  ;;  %v354_v53 = vrot.slane %v4584_v45, 4 }
  0xe5   : > { %v4588_v52 = vpop.f32.mrf.mxu1 }
  0xe6   : > { %437 = vrot.lane.b32.xlu1 %v4588_v52, %s3939_s27  ;;  %v433_v54 = vrot.slane %v4588_v52, 4 }
  0xec   : > { %355 = vrot.lane.b32.xlu0 %v354_v53, %s3940_s13 }
  0xed   : > { %v4594_v55 = vpop.f32.mrf.mxu2 }
  0xee   : > { %514 = vrot.lane.b32.xlu2 %v4594_v55, %s3939_s27  ;;  %434 = vrot.lane.b32.xlu1 %v433_v54, %s3940_s13  ;;  %v510_v56 = vrot.slane %v4594_v55, 4 }
  0xef   : > { %v4601_v60 = vpop.f32.mrf.mxu3 }
  0xf0   : > { %v587_v61 = vrot.slane %v4601_v60, 4 }
  0xf4   : > { %591 = vrot.lane.b32.xlu0 %v4601_v60, %s3939_s27 }
  0xf6   : > { %511 = vrot.lane.b32.xlu2 %v510_v56, %s3940_s13  ;;  %588 = vrot.lane.b32.xlu1 %v587_v61, %s3940_s13 }
  0xf9   : > { %v4608_v59 = vpop.f32.mrf.mxu0  ;;  %v4611_v4 = vpop.f32.mrf.mxu1 }
  0xfa   : > { %v664_v62 = vrot.slane %v4608_v59, 4  ;;  %v741_v8 = vrot.slane %v4611_v4, 4 }
  0xfc   : > { %665 = vrot.lane.b32.xlu0 %v664_v62, %s3940_s13 }
  0xfe   : > { %668 = vrot.lane.b32.xlu2 %v4608_v59, %s3939_s27  ;;  %745 = vrot.lane.b32.xlu1 %v4611_v4, %s3939_s27 }
 0x101   : > { %v4618_v2 = vpop.f32.mrf.mxu2 }
 0x102   : > { %v818_v7 = vrot.slane %v4618_v2, 4 }
 0x104   : > { %822 = vrot.lane.b32.xlu0 %v4618_v2, %s3939_s27 }
 0x106   : > { %742 = vrot.lane.b32.xlu2 %v741_v8, %s3940_s13  ;;  %819 = vrot.lane.b32.xlu1 %v818_v7, %s3940_s13  ;;  %v4626_v46 = vpop.f32.mrf.mxu3 }
 0x107   : > { %v895_v47 = vrot.slane %v4626_v46, 4 }
 0x10c   : > { %896 = vrot.lane.b32.xlu0 %v895_v47, %s3940_s13 }
 0x10e   : > { %899 = vrot.lane.b32.xlu2 %v4626_v46, %s3939_s27  ;;  %v4632_v63 = vpop.f32.mrf.mxu0  ;;  %v4636_v51 = vpop.f32.mrf.mxu1 }
 0x10f   : > { %976 = vrot.lane.b32.xlu1 %v4632_v63, %s3939_s27  ;;  %v972_v9 = vrot.slane %v4632_v63, 4  ;;  %v1049_v50 = vrot.slane %v4636_v51, 4 }
 0x114   : > { %1053 = vrot.lane.b32.xlu0 %v4636_v51, %s3939_s27 }
 0x115   : > { %v4643_v0 = vpop.f32.mrf.mxu2 }
 0x116   : > { %973 = vrot.lane.b32.xlu2 %v972_v9, %s3940_s13  ;;  %v1126_v10 = vrot.slane %v4643_v0, 4 }
 0x117   : > { %1050 = vrot.lane.b32.xlu1 %v1049_v50, %s3940_s13 }
 0x118   : > { %v4648_v11 = vpop.f32.mrf.mxu3 }
 0x119   : > { %v1203_v48 = vrot.slane %v4648_v11, 4 }
 0x11c   : > { %1127 = vrot.lane.b32.xlu0 %v1126_v10, %s3940_s13 }
 0x11e   : > { %1130 = vrot.lane.b32.xlu2 %v4643_v0, %s3939_s27 }
 0x11f   : > { %1207 = vrot.lane.b32.xlu1 %v4648_v11, %s3939_s27 }
 0x121   : > { %v4654_v12 = vpop.f32.mrf.mxu0 }
 0x122   : > { %v1280_v1 = vrot.slane %v4654_v12, 4 }
 0x123   : > { %v4661_v13 = vpop.f32.mrf.mxu1 }
 0x124   : > { %1284 = vrot.lane.b32.xlu0 %v4654_v12, %s3939_s27  ;;  %v1357_v57 = vrot.slane %v4661_v13, 4 }
 0x126   : > { %1204 = vrot.lane.b32.xlu2 %v1203_v48, %s3940_s13 }
 0x127   : > { %1281 = vrot.lane.b32.xlu1 %v1280_v1, %s3940_s13 }
 0x128   : > { %v4666_v58 = vpop.f32.mrf.mxu2 }
 0x129   : > { %v1434_v6 = vrot.slane %v4666_v58, 4 }
 0x12c   : > { %1358 = vrot.lane.b32.xlu0 %v1357_v57, %s3940_s13  ;;  %v4672_v5 = vpop.f32.mrf.mxu3 }
 0x12d   : > { %v1511_v14 = vrot.slane %v4672_v5, 4  ;;  %v4679_v15 = vpop.f32.mrf.mxu0 }
 0x12e   : > { %1361 = vrot.lane.b32.xlu2 %v4661_v13, %s3939_s27  ;;  %v1588_v49 = vrot.slane %v4679_v15, 4 }
 0x12f   : > { %1438 = vrot.lane.b32.xlu1 %v4666_v58, %s3939_s27 }
 0x134   : > { %1515 = vrot.lane.b32.xlu0 %v4672_v5, %s3939_s27 }
 0x136   : > { %1435 = vrot.lane.b32.xlu2 %v1434_v6, %s3940_s13 }
 0x137   : > { %1512 = vrot.lane.b32.xlu1 %v1511_v14, %s3940_s13 }
 0x138   : > { %v4684_v3 = vpop.f32.mrf.mxu1 }
 0x139   : > { %v1665_v16 = vrot.slane %v4684_v3, 4 }
 0x13c   : > { %1589 = vrot.lane.b32.xlu0 %v1588_v49, %s3940_s13 }
 0x13e   : > { %1592 = vrot.lane.b32.xlu2 %v4679_v15, %s3939_s27 }
 0x13f   : > { %1669 = vrot.lane.b32.xlu1 %v4684_v3, %s3939_s27 }
 0x144   : > { %1770 = vperm.xlu0 %3853, %v1681_v38  }
 0x146   : > { %1666 = vrot.lane.b32.xlu2 %v1665_v16, %s3940_s13 }
 0x148   : > { %v515_v17 = vpop.permute.xlu2 %514 }
 0x149   : > { %520 = vst.msk [vmem:[#allocation2 + $0x28] sm:$0xf] %vm365_vm4, %v515_v17 }
 0x150   : > { %v512_v18 = vpop.permute.xlu2 %511  ;;  %v1740_v19 = vld [vmem:[#allocation2 + $0x28] sm:$0xf] }
 0x151   : > { %v1802_v20 = vld [vmem:[#allocation2 + $0x28] sm:$0xf]  ;;  %v517_v39 = vsel %vm361_vm5, %v4594_v55, %v512_v18  ;;  %3594 = vmatpush.msk.msrb.mxu0 %vm361_vm5, %v1740_v19 }
 0x152   : > { %3596 = vmatpush.msk.msrb.mxu1 %vm361_vm5, %v1802_v20  ;;  %519 = vst.msk [vmem:[#allocation2 + $0x20] sm:$0xff] %vm363_vm6, %v517_v39  ;;  %v1901_v28 = vld [vmem:[#allocation2 + $0x28] sm:$0xf] }
 0x156   : > { %v359_v40 = vpop.permute.xlu0 %358 }
 0x157   : > { %366 = vst.msk [vmem:[#allocation2 + $0x8] sm:$0xf] %vm365_vm4, %v359_v40 }
 0x158   : > { %v669_v21 = vpop.permute.xlu2 %668  ;;  %v438_v26 = vpop.permute.xlu1 %437 }
 0x159   : > { %674 = vst.msk [vmem:[#allocation2 + $0x48] sm:$0xf] %vm365_vm4, %v669_v21  ;;  %v1801_v23 = vld [vmem:[#allocation2 + $0x20] sm:$0xff] }
 0x15a   : > { %1821 = vmatpush.msrb.mxu1 %v1801_v23  ;;  %443 = vst.msk [vmem:[#allocation2 + $0x18] sm:$0xf] %vm365_vm4, %v438_v26  ;;  %1762 = vmatpush.msrb.mxu0 %v1801_v23 }
 0x15b   : > { %3595 = vmatmul.msk.f32.vlgmr.msrb.gmra.mxu0 %vm1686_vm7, %v4702_v22  ;;  %3597 = vmatmul.msk.f32.vlgmr.msrb.gmra.mxu1 %vm1686_vm7, %v4708_v27 }
 0x15c   : > { %3604 = vmatpush.msk.msra.mxu1 %vm361_vm5, %v1901_v28 }
 0x15e   : > { %1945 = vmatpush.msra.mxu1 %v1801_v23  ;;  %v356_v25 = vpop.permute.xlu0 %355  ;;  %v1683_v29 = vld [vmem:[#allocation2 + $0x8] sm:$0xf] }
 0x15f   : > { %v362_v31 = vsel %vm361_vm5, %v4584_v45, %v356_v25  ;;  %3592 = vmatpush.msk.msra.mxu3 %vm361_vm5, %v1683_v29 }
 0x160   : > { %v743_v24 = vpop.permute.xlu2 %742  ;;  %364 = vst.msk [vmem:[#allocation2] sm:$0xff] %vm363_vm6, %v362_v31  ;;  %v435_v33 = vpop.permute.xlu1 %434  ;;  %v1951_v53 = vld [vmem:[#allocation2 + $0x48] sm:$0xf] }
 0x161   : > { %v748_v32 = vsel %vm361_vm5, %v4611_v4, %v743_v24  ;;  %v1685_v34 = vld [vmem:[#allocation2 + $0x18] sm:$0xf]  ;;  %v440_v35 = vsel %vm361_vm5, %v4588_v52, %v435_v33  ;;  %v2103_v10 = vld [vmem:[#allocation2 + $0x48] sm:$0xf] }
 0x162   : > { %750 = vst.msk [vmem:[#allocation2 + $0x50] sm:$0xff] %vm363_vm6, %v748_v32  ;;  %3590 = vmatpush.msk.msra.mxu2 %vm361_vm5, %v1685_v34  ;;  %v1800_v52 = vld [vmem:[#allocation2 + $0x18] sm:$0xf] }
 0x163   : > { %442 = vst.msk [vmem:[#allocation2 + $0x10] sm:$0xff] %vm363_vm6, %v440_v35  ;;  %3605 = vmatmul.msk.f32.vlgmr.msra.gmra.mxu1 %vm1686_vm7, %v4730_v36 }
 0x166   : > { %v592_v41 = vpop.permute.xlu0 %591 }
 0x167   : > { %597 = vst.msk [vmem:[#allocation2 + $0x38] sm:$0xf] %vm365_vm4, %v592_v41  ;;  %v1682_v42 = vld [vmem:[#allocation2] sm:$0xff] }
 0x168   : > { %v900_v30 = vpop.permute.xlu2 %899  ;;  %v589_v43 = vpop.permute.xlu1 %588  ;;  %1734 = vmatpush.msra.mxu3 %v1682_v42 }
 0x169   : > { %905 = vst.msk [vmem:[#allocation2 + $0x78] sm:$0xf] %vm365_vm4, %v900_v30  ;;  %v594_v44 = vsel %vm361_vm5, %v4601_v60, %v589_v43  ;;  %3593 = vmatmul.msk.f32.vlgmr.msra.gmra.mxu3 %vm1686_vm7, %v4730_v36  ;;  %v2051_v6 = vld [vmem:[#allocation2 + $0x50] sm:$0xff] }
 0x16a   : > { %v1684_v45 = vld [vmem:[#allocation2 + $0x10] sm:$0xff]  ;;  %596 = vst.msk [vmem:[#allocation2 + $0x30] sm:$0xff] %vm363_vm6, %v594_v44 }
 0x16b   : > { %1708 = vmatpush.msra.mxu2 %v1684_v45 }
 0x16c   : > { %3591 = vmatmul.msk.f32.vlgmr.msra.gmra.mxu2 %vm1686_vm7, %v4708_v27 }
 0x16d   : > { %3598 = vmatpush.msk.msrb.mxu2 %vm361_vm5, %v1800_v52 }
 0x16e   : > { %v666_v54 = vpop.permute.xlu0 %665  ;;  %v1850_v55 = vld [vmem:[#allocation2 + $0x38] sm:$0xf] }
 0x16f   : > { %1844 = vmatpush.msrb.mxu2 %v1684_v45  ;;  %v1903_v56 = vld [vmem:[#allocation2 + $0x38] sm:$0xf]  ;;  %v671_v61 = vsel %vm361_vm5, %v4608_v59, %v666_v54  ;;  %3600 = vmatpush.msk.msrb.mxu3 %vm361_vm5, %v1850_v55  ;;  %v2004_v59 = vld [vmem:[#allocation2 + $0x48] sm:$0xf] }
 0x170   : > { %v974_v60 = vpop.permute.xlu2 %973  ;;  %673 = vst.msk [vmem:[#allocation2 + $0x40] sm:$0xff] %vm363_vm6, %v671_v61  ;;  %3602 = vmatpush.msk.msra.mxu0 %vm361_vm5, %v1903_v56  ;;  %v746_v4 = vpop.permute.xlu1 %745  ;;  %v2002_v8 = vld [vmem:[#allocation2 + $0x38] sm:$0xf] }
 0x171   : > { %3606 = vmatpush.msk.msra.mxu2 %vm361_vm5, %v1951_v53  ;;  %v979_v62 = vsel %vm361_vm5, %v4632_v63, %v974_v60  ;;  %v1849_v7 = vld [vmem:[#allocation2 + $0x30] sm:$0xff]  ;;  %751 = vst.msk [vmem:[#allocation2 + $0x58] sm:$0xf] %vm365_vm4, %v746_v4  ;;  %v2254_v14 = vld [vmem:[#allocation2 + $0x78] sm:$0xf] }
 0x172   : > { %981 = vst.msk [vmem:[#allocation2 + $0x80] sm:$0xff] %vm363_vm6, %v979_v62  ;;  %1869 = vmatpush.msrb.mxu3 %v1849_v7  ;;  %1922 = vmatpush.msra.mxu0 %v1849_v7  ;;  %v2406_v28 = vld [vmem:[#allocation2 + $0x78] sm:$0xf] }
 0x173   : > { %3601 = vmatmul.msk.f32.vlgmr.msrb.gmra.mxu3 %vm1686_vm7, %v4702_v22  ;;  %3603 = vmatmul.msk.f32.vlgmr.msra.gmra.mxu0 %vm1686_vm7, %v4708_v27 }
 0x174   : > { %3599 = vmatmul.msk.f32.vlgmr.msrb.gmra.mxu2 %vm1686_vm7, %v4730_v36  ;;  %3608 = vmatpush.msk.msra.mxu3 %vm361_vm5, %v2004_v59 }
 0x175   : > { %3610 = vmatpush.msk.msrb.mxu0 %vm361_vm5, %v2002_v8 }
 0x176   : > { %v823_v47 = vpop.permute.xlu0 %822 }
 0x177   : > { %2046 = vmatpush.msrb.mxu0 %v1849_v7  ;;  %828 = vst.msk [vmem:[#allocation2 + $0x68] sm:$0xf] %vm365_vm4, %v823_v47  ;;  %v1950_v9 = vld [vmem:[#allocation2 + $0x40] sm:$0xff] }
 0x178   : > { %v1131_v63 = vpop.permute.xlu2 %1130  ;;  %v820_v50 = vpop.permute.xlu1 %819  ;;  %1970 = vmatpush.msra.mxu2 %v1950_v9  ;;  %2023 = vmatpush.msra.mxu3 %v1950_v9  ;;  %v2052_v1 = vld [vmem:[#allocation2 + $0x58] sm:$0xf] }
 0x179   : > { %1136 = vst.msk [vmem:[#allocation2 + $0xa8] sm:$0xf] %vm365_vm4, %v1131_v63  ;;  %v825_v48 = vsel %vm361_vm5, %v4618_v2, %v820_v50  ;;  %v2105_v57 = vld [vmem:[#allocation2 + $0x58] sm:$0xf]  ;;  %3612 = vmatpush.msk.msrb.mxu1 %vm361_vm5, %v2052_v1  ;;  %v2354_v32 = vld [vmem:[#allocation2 + $0x80] sm:$0xff] }
 0x17a   : > { %3616 = vmatpush.msk.msrb.mxu3 %vm361_vm5, %v2103_v10  ;;  %827 = vst.msk [vmem:[#allocation2 + $0x60] sm:$0xff] %vm363_vm6, %v825_v48  ;;  %3614 = vmatpush.msk.msrb.mxu2 %vm361_vm5, %v2105_v57  ;;  %v2204_v2 = vld [vmem:[#allocation2 + $0x58] sm:$0xf] }
 0x17b   : > { %3609 = vmatmul.msk.f32.vlgmr.msra.gmra.mxu3 %vm1686_vm7, %v4708_v27  ;;  %3611 = vmatmul.msk.f32.vlgmr.msrb.gmra.mxu0 %vm1686_vm7, %v4730_v36 }
 0x17c   : > { %3607 = vmatmul.msk.f32.vlgmr.msra.gmra.mxu2 %vm1686_vm7, %v4702_v22  ;;  %2071 = vmatpush.msrb.mxu1 %v2051_v6 }
 0x17d   : > { %2124 = vmatpush.msrb.mxu2 %v2051_v6  ;;  %2147 = vmatpush.msrb.mxu3 %v1950_v9 }
 0x17e   : > { %3613 = vmatmul.msk.f32.vlgmr.msrb.gmra.mxu1 %vm1686_vm7, %v4702_v22  ;;  %v897_v49 = vpop.permute.xlu0 %896  ;;  %v2153_v16 = vld [vmem:[#allocation2 + $0x68] sm:$0xf] }
 0x17f   : > { %3622 = vmatpush.msk.msra.mxu2 %vm361_vm5, %v2204_v2  ;;  %v2206_v17 = vld [vmem:[#allocation2 + $0x68] sm:$0xf]  ;;  %3624 = vmatpush.msk.msra.mxu3 %vm361_vm5, %v2254_v14  ;;  %v902_v19 = vsel %vm361_vm5, %v4626_v46, %v897_v49 }
 0x180   : > { %v1205_v18 = vpop.permute.xlu2 %1204  ;;  %3618 = vmatpush.msk.msra.mxu0 %vm361_vm5, %v2153_v16  ;;  %904 = vst.msk [vmem:[#allocation2 + $0x70] sm:$0xff] %vm363_vm6, %v902_v19  ;;  %3620 = vmatpush.msk.msra.mxu1 %vm361_vm5, %v2206_v17  ;;  %v2305_v46 = vld [vmem:[#allocation2 + $0x68] sm:$0xf] }
 0x181   : > { %v1210_v20 = vsel %vm361_vm5, %v4648_v11, %v1205_v18  ;;  %2248 = vmatpush.msra.mxu2 %v2051_v6  ;;  %v977_v39 = vpop.permute.xlu1 %976  ;;  %v2152_v40 = vld [vmem:[#allocation2 + $0x60] sm:$0xff]  ;;  %v2307_v11 = vld [vmem:[#allocation2 + $0x78] sm:$0xf]  ;;  %v2709_v60 = vld [vmem:[#allocation2 + $0xa8] sm:$0xf] }
 0x182   : > { %1212 = vst.msk [vmem:[#allocation2 + $0xb0] sm:$0xff] %vm363_vm6, %v1210_v20  ;;  %2172 = vmatpush.msra.mxu0 %v2152_v40  ;;  %2225 = vmatpush.msra.mxu1 %v2152_v40 }
 0x183   : > { %982 = vst.msk [vmem:[#allocation2 + $0x88] sm:$0xf] %vm365_vm4, %v977_v39  ;;  %3617 = vmatmul.msk.f32.vlgmr.msrb.gmra.mxu3 %vm1686_vm7, %v4730_v36  ;;  %3619 = vmatmul.msk.f32.vlgmr.msra.gmra.mxu0 %vm1686_vm7, %v4702_v22 }
 0x184   : > { %3615 = vmatmul.msk.f32.vlgmr.msrb.gmra.mxu2 %vm1686_vm7, %v4708_v27  ;;  %3628 = vmatpush.msk.msrb.mxu1 %vm361_vm5, %v2305_v46 }
 0x185   : > { %3626 = vmatpush.msk.msrb.mxu0 %vm361_vm5, %v2307_v11 }
 0x186   : > { %3621 = vmatmul.msk.f32.vlgmr.msra.gmra.mxu1 %vm1686_vm7, %v4708_v27  ;;  %v1054_v21 = vpop.permute.xlu0 %1053 }
 0x187   : > { %2349 = vmatpush.msrb.mxu1 %v2152_v40  ;;  %1059 = vst.msk [vmem:[#allocation2 + $0x98] sm:$0xf] %vm365_vm4, %v1054_v21  ;;  %v2253_v26 = vld [vmem:[#allocation2 + $0x70] sm:$0xff] }
 0x188   : > { %v1362_v23 = vpop.permute.xlu2 %1361  ;;  %2273 = vmatpush.msra.mxu3 %v2253_v26  ;;  %2326 = vmatpush.msrb.mxu0 %v2253_v26 }
 0x189   : > { %1367 = vst.msk [vmem:[#allocation2 + $0xd8] sm:$0xf] %vm365_vm4, %v1362_v23  ;;  %v1051_v25 = vpop.permute.xlu1 %1050  ;;  %v2657_v61 = vld [vmem:[#allocation2 + $0xb0] sm:$0xff] }
 0x18a   : > { %v2355_v29 = vld [vmem:[#allocation2 + $0x88] sm:$0xf]  ;;  %3634 = vmatpush.msk.msra.mxu0 %vm361_vm5, %v2406_v28  ;;  %v1056_v31 = vsel %vm361_vm5, %v4636_v51, %v1051_v25 }
 0x18b   : > { %v2408_v24 = vld [vmem:[#allocation2 + $0x88] sm:$0xf]  ;;  %3630 = vmatpush.msk.msrb.mxu2 %vm361_vm5, %v2355_v29  ;;  %1058 = vst.msk [vmem:[#allocation2 + $0x90] sm:$0xff] %vm363_vm6, %v1056_v31  ;;  %3625 = vmatmul.msk.f32.vlgmr.msra.gmra.mxu3 %vm1686_vm7, %v4702_v22 }
 0x18c   : > { %3632 = vmatpush.msk.msrb.mxu3 %vm361_vm5, %v2408_v24  ;;  %3623 = vmatmul.msk.f32.vlgmr.msra.gmra.mxu2 %vm1686_vm7, %v4730_v36  ;;  %v2507_v33 = vld [vmem:[#allocation2 + $0x88] sm:$0xf] }
 0x18d   : > { %3627 = vmatmul.msk.f32.vlgmr.msrb.gmra.mxu0 %vm1686_vm7, %v4708_v27  ;;  %2374 = vmatpush.msrb.mxu2 %v2354_v32  ;;  %v2557_v51 = vld [vmem:[#allocation2 + $0xa8] sm:$0xf] }
 0x18e   : > { %2427 = vmatpush.msrb.mxu3 %v2354_v32  ;;  %2450 = vmatpush.msra.mxu0 %v2253_v26  ;;  %v1128_v34 = vpop.permute.xlu0 %1127  ;;  %v2456_v35 = vld [vmem:[#allocation2 + $0x98] sm:$0xf] }
 0x18f   : > { %3629 = vmatmul.msk.f32.vlgmr.msrb.gmra.mxu1 %vm1686_vm7, %v4730_v36  ;;  %v2509_v37 = vld [vmem:[#allocation2 + $0x98] sm:$0xf]  ;;  %v1133_v41 = vsel %vm361_vm5, %v4643_v0, %v1128_v34  ;;  %v2610_v0 = vld [vmem:[#allocation2 + $0xa8] sm:$0xf] }
 0x190   : > { %3640 = vmatpush.msk.msra.mxu3 %vm361_vm5, %v2507_v33  ;;  %3642 = vmatpush.msk.msrb.mxu0 %vm361_vm5, %v2557_v51  ;;  %v1436_v38 = vpop.permute.xlu2 %1435  ;;  %1135 = vst.msk [vmem:[#allocation2 + $0xa0] sm:$0xff] %vm363_vm6, %v1133_v41  ;;  %v2608_v44 = vld [vmem:[#allocation2 + $0x98] sm:$0xf] }
 0x191   : > { %3636 = vmatpush.msk.msra.mxu1 %vm361_vm5, %v2456_v35  ;;  %v1441_v30 = vsel %vm361_vm5, %v4666_v58, %v1436_v38  ;;  %3638 = vmatpush.msk.msra.mxu2 %vm361_vm5, %v2509_v37  ;;  %v1208_v42 = vpop.permute.xlu1 %1207  ;;  %v2860_v59 = vld [vmem:[#allocation2 + $0xd8] sm:$0xf] }
 0x192   : > { %2551 = vmatpush.msra.mxu3 %v2354_v32  ;;  %1443 = vst.msk [vmem:[#allocation2 + $0xe0] sm:$0xff] %vm363_vm6, %v1441_v30  ;;  %v2455_v43 = vld [vmem:[#allocation2 + $0x90] sm:$0xff]  ;;  %v3012_v49 = vld [vmem:[#allocation2 + $0xd8] sm:$0xf] }
 0x193   : > { %1213 = vst.msk [vmem:[#allocation2 + $0xb8] sm:$0xf] %vm365_vm4, %v1208_v42  ;;  %2475 = vmatpush.msra.mxu1 %v2455_v43  ;;  %2528 = vmatpush.msra.mxu2 %v2455_v43 }
 0x194   : > { %3631 = vmatmul.msk.f32.vlgmr.msrb.gmra.mxu2 %vm1686_vm7, %v4702_v22  ;;  %3633 = vmatmul.msk.f32.vlgmr.msrb.gmra.mxu3 %vm1686_vm7, %v4708_v27 }
 0x195   : > { %3635 = vmatmul.msk.f32.vlgmr.msra.gmra.mxu0 %vm1686_vm7, %v4730_v36  ;;  %3644 = vmatpush.msk.msrb.mxu1 %vm361_vm5, %v2610_v0 }
 0x196   : > { %3646 = vmatpush.msk.msrb.mxu2 %vm361_vm5, %v2608_v44  ;;  %v1285_v58 = vpop.permute.xlu0 %1284 }
 0x197   : > { %3637 = vmatmul.msk.f32.vlgmr.msra.gmra.mxu1 %vm1686_vm7, %v4702_v22  ;;  %1290 = vst.msk [vmem:[#allocation2 + $0xc8] sm:$0xf] %vm365_vm4, %v1285_v58  ;;  %v2556_v52 = vld [vmem:[#allocation2 + $0xa0] sm:$0xff] }
 0x198   : > { %v1593_v45 = vpop.permute.xlu2 %1592  ;;  %2652 = vmatpush.msrb.mxu2 %v2455_v43  ;;  %2576 = vmatpush.msrb.mxu0 %v2556_v52 }
 0x199   : > { %1598 = vst.msk [vmem:[#allocation2 + $0x108] sm:$0xf] %vm365_vm4, %v1593_v45  ;;  %v1282_v53 = vpop.permute.xlu1 %1281  ;;  %2629 = vmatpush.msrb.mxu1 %v2556_v52  ;;  %v2960_v14 = vld [vmem:[#allocation2 + $0xe0] sm:$0xff] }
 0x19a   : > { %v2658_v54 = vld [vmem:[#allocation2 + $0xb8] sm:$0xf]  ;;  %v1287_v56 = vsel %vm361_vm5, %v4654_v12, %v1282_v53 }
 0x19b   : > { %v2711_v55 = vld [vmem:[#allocation2 + $0xb8] sm:$0xf]  ;;  %3648 = vmatpush.msk.msrb.mxu3 %vm361_vm5, %v2658_v54  ;;  %1289 = vst.msk [vmem:[#allocation2 + $0xc0] sm:$0xff] %vm363_vm6, %v1287_v56  ;;  %3652 = vmatpush.msk.msra.mxu1 %vm361_vm5, %v2709_v60 }
 0x19c   : > { %3650 = vmatpush.msk.msra.mxu0 %vm361_vm5, %v2711_v55  ;;  %3639 = vmatmul.msk.f32.vlgmr.msra.gmra.mxu2 %vm1686_vm7, %v4708_v27  ;;  %v2810_v62 = vld [vmem:[#allocation2 + $0xb8] sm:$0xf] }
 0x19d   : > { %3641 = vmatmul.msk.f32.vlgmr.msra.gmra.mxu3 %vm1686_vm7, %v4730_v36  ;;  %3643 = vmatmul.msk.f32.vlgmr.msrb.gmra.mxu0 %vm1686_vm7, %v4702_v22 }
 0x19e   : > { %2677 = vmatpush.msrb.mxu3 %v2657_v61  ;;  %2730 = vmatpush.msra.mxu0 %v2657_v61  ;;  %v1359_v12 = vpop.permute.xlu0 %1358  ;;  %v2759_v4 = vld [vmem:[#allocation2 + $0xc8] sm:$0xf] }
 0x19f   : > { %2753 = vmatpush.msra.mxu1 %v2556_v52  ;;  %v2812_v7 = vld [vmem:[#allocation2 + $0xc8] sm:$0xf]  ;;  %v1364_v47 = vsel %vm361_vm5, %v4661_v13, %v1359_v12  ;;  %3654 = vmatpush.msk.msra.mxu2 %vm361_vm5, %v2759_v4 }
 0x1a0   : > { %3645 = vmatmul.msk.f32.vlgmr.msrb.gmra.mxu1 %vm1686_vm7, %v4708_v27  ;;  %3658 = vmatpush.msk.msrb.mxu0 %vm361_vm5, %v2810_v62  ;;  %v1667_v8 = vpop.permute.xlu2 %1666  ;;  %1366 = vst.msk [vmem:[#allocation2 + $0xd0] sm:$0xff] %vm363_vm6, %v1364_v47  ;;  %v2911_v13 = vld [vmem:[#allocation2 + $0xc8] sm:$0xf] }
 0x1a1   : > { %3660 = vmatpush.msk.msrb.mxu1 %vm361_vm5, %v2860_v59  ;;  %v1672_v63 = vsel %vm361_vm5, %v4684_v3, %v1667_v8  ;;  %v1439_v9 = vpop.permute.xlu1 %1438  ;;  %3656 = vmatpush.msk.msra.mxu3 %vm361_vm5, %v2812_v7  ;;  %v2913_v3 = vld [vmem:[#allocation2 + $0xd8] sm:$0xf]  ;;  %v3216_v46 = vld [vmem:[#allocation2 + $0x108] sm:$0xf] }
 0x1a2   : > { %1674 = vst.msk [vmem:[#allocation2 + $0x110] sm:$0xff] %vm363_vm6, %v1672_v63  ;;  %2854 = vmatpush.msrb.mxu0 %v2657_v61  ;;  %v2758_v50 = vld [vmem:[#allocation2 + $0xc0] sm:$0xff] }
 0x1a3   : > { %1444 = vst.msk [vmem:[#allocation2 + $0xe8] sm:$0xf] %vm365_vm4, %v1439_v9  ;;  %2778 = vmatpush.msra.mxu2 %v2758_v50  ;;  %2831 = vmatpush.msra.mxu3 %v2758_v50 }
 0x1a4   : > { %3647 = vmatmul.msk.f32.vlgmr.msrb.gmra.mxu2 %vm1686_vm7, %v4730_v36 }
 0x1a5   : > { %3649 = vmatmul.msk.f32.vlgmr.msrb.gmra.mxu3 %vm1686_vm7, %v4702_v22  ;;  %3651 = vmatmul.msk.f32.vlgmr.msra.gmra.mxu0 %vm1686_vm7, %v4708_v27 }
 0x1a6   : > { %3662 = vmatpush.msk.msrb.mxu2 %vm361_vm5, %v2913_v3  ;;  %3664 = vmatpush.msk.msrb.mxu3 %vm361_vm5, %v2911_v13  ;;  %v1516_v10 = vpop.permute.xlu0 %1515 }
 0x1a7   : > { %1521 = vst.msk [vmem:[#allocation2 + $0xf8] sm:$0xf] %vm365_vm4, %v1516_v10  ;;  %v2859_v48 = vld [vmem:[#allocation2 + $0xd0] sm:$0xff] }
 0x1a8   : > { %3653 = vmatmul.msk.f32.vlgmr.msra.gmra.mxu1 %vm1686_vm7, %v4730_v36  ;;  %2955 = vmatpush.msrb.mxu3 %v2758_v50 }
 0x1a9   : > { %2879 = vmatpush.msrb.mxu1 %v2859_v48  ;;  %v1513_v1 = vpop.permute.xlu1 %1512  ;;  %2932 = vmatpush.msrb.mxu2 %v2859_v48  ;;  %v3263_v23 = vld [vmem:[#allocation2 + $0x110] sm:$0xff] }
 0x1aa   : > { %v2961_v57 = vld [vmem:[#allocation2 + $0xe8] sm:$0xf]  ;;  %v1518_v2 = vsel %vm361_vm5, %v4672_v5, %v1513_v1 }
 0x1ab   : > { %v3014_v6 = vld [vmem:[#allocation2 + $0xe8] sm:$0xf]  ;;  %3666 = vmatpush.msk.msra.mxu0 %vm361_vm5, %v2961_v57  ;;  %1520 = vst.msk [vmem:[#allocation2 + $0xf0] sm:$0xff] %vm363_vm6, %v1518_v2 }
 0x1ac   : > { %3668 = vmatpush.msk.msra.mxu1 %vm361_vm5, %v3014_v6  ;;  %3655 = vmatmul.msk.f32.vlgmr.msra.gmra.mxu2 %vm1686_vm7, %v4702_v22  ;;  %v3113_v16 = vld [vmem:[#allocation2 + $0xe8] sm:$0xf] }
 0x1ad   : > { %3657 = vmatmul.msk.f32.vlgmr.msra.gmra.mxu3 %vm1686_vm7, %v4708_v27  ;;  %3659 = vmatmul.msk.f32.vlgmr.msrb.gmra.mxu0 %vm1686_vm7, %v4730_v36 }
 0x1ae   : > { %3033 = vmatpush.msra.mxu1 %v2960_v14  ;;  %2980 = vmatpush.msra.mxu0 %v2960_v14  ;;  %v1590_v5 = vpop.permute.xlu0 %1589  ;;  %v3062_v17 = vld [vmem:[#allocation2 + $0xf8] sm:$0xf] }
 0x1af   : > { %3670 = vmatpush.msk.msra.mxu2 %vm361_vm5, %v3012_v49  ;;  %v3115_v18 = vld [vmem:[#allocation2 + $0xf8] sm:$0xf]  ;;  %v1595_v19 = vsel %vm361_vm5, %v4679_v15, %v1590_v5  ;;  %3672 = vmatpush.msk.msra.mxu3 %vm361_vm5, %v3062_v17  ;;  %v3163_v15 = vld [vmem:[#allocation2 + $0x108] sm:$0xf] }
 0x1b0   : > { %3661 = vmatmul.msk.f32.vlgmr.msrb.gmra.mxu1 %vm1686_vm7, %v4702_v22  ;;  %1597 = vst.msk [vmem:[#allocation2 + $0x100] sm:$0xff] %vm363_vm6, %v1595_v19  ;;  %3674 = vmatpush.msk.msrb.mxu0 %vm361_vm5, %v3115_v18  ;;  %v3214_v40 = vld [vmem:[#allocation2 + $0xf8] sm:$0xf] }
 0x1b1   : > { %3676 = vmatpush.msk.msrb.mxu1 %vm361_vm5, %v3113_v16  ;;  %3056 = vmatpush.msra.mxu2 %v2859_v48  ;;  %v1670_v20 = vpop.permute.xlu1 %1669 }
 0x1b2   : > { %1675 = vst.msk [vmem:[#allocation2 + $0x118] sm:$0xf] %vm365_vm4, %v1670_v20  ;;  %v3061_v39 = vld [vmem:[#allocation2 + $0xf0] sm:$0xff] }
 0x1b3   : > { %3157 = vmatpush.msrb.mxu1 %v2960_v14  ;;  %3081 = vmatpush.msra.mxu3 %v3061_v39 }
 0x1b4   : > { %3134 = vmatpush.msrb.mxu0 %v3061_v39  ;;  %3663 = vmatmul.msk.f32.vlgmr.msrb.gmra.mxu2 %vm1686_vm7, %v4708_v27 }
 0x1b5   : > { %3665 = vmatmul.msk.f32.vlgmr.msrb.gmra.mxu3 %vm1686_vm7, %v4730_v36  ;;  %3667 = vmatmul.msk.f32.vlgmr.msra.gmra.mxu0 %vm1686_vm7, %v4702_v22 }
 0x1b6   : > { %3678 = vmatpush.msk.msrb.mxu2 %vm361_vm5, %v3163_v15  ;;  %3680 = vmatpush.msk.msrb.mxu3 %vm361_vm5, %v3216_v46  ;;  %v4927_v31 = vpop.permute.xlu0 %1770 }
 0x1b7   : > { %3682 = vmatpush.msk.msra.mxu0 %vm361_vm5, %v3214_v40  ;;  %v3162_v11 = vld [vmem:[#allocation2 + $0x100] sm:$0xff] }
 0x1b8   : > { %3669 = vmatmul.msk.f32.vlgmr.msra.gmra.mxu1 %vm1686_vm7, %v4708_v27  ;;  %3182 = vmatpush.msrb.mxu2 %v3162_v11 }
 0x1b9   : > { %3258 = vmatpush.msra.mxu0 %v3061_v39  ;;  %3235 = vmatpush.msrb.mxu3 %v3162_v11  ;;  %v3264_v21 = vld [vmem:[#allocation2 + $0x118] sm:$0xf] }
 0x1ba   : > { %3684 = vmatpush.msk.msra.mxu1 %vm361_vm5, %v3264_v21 }
 0x1bc   : > { %3671 = vmatmul.msk.f32.vlgmr.msra.gmra.mxu2 %vm1686_vm7, %v4730_v36  ;;  %3283 = vmatpush.msra.mxu1 %v3263_v23 }
 0x1bd   : > { %3673 = vmatmul.msk.f32.vlgmr.msra.gmra.mxu3 %vm1686_vm7, %v4702_v22  ;;  %3675 = vmatmul.msk.f32.vlgmr.msrb.gmra.mxu0 %vm1686_vm7, %v4708_v27 }
 0x1c0   : > { %3677 = vmatmul.msk.f32.vlgmr.msrb.gmra.mxu1 %vm1686_vm7, %v4730_v36 }
 0x1c4   : > { %3679 = vmatmul.msk.f32.vlgmr.msrb.gmra.mxu2 %vm1686_vm7, %v4702_v22 }
 0x1c5   : > { %3681 = vmatmul.msk.f32.vlgmr.msrb.gmra.mxu3 %vm1686_vm7, %v4708_v27  ;;  %3683 = vmatmul.msk.f32.vlgmr.msra.gmra.mxu0 %vm1686_vm7, %v4730_v36 }
 0x1c8   : > { %3685 = vmatmul.msk.f32.vlgmr.msra.gmra.mxu1 %vm1686_vm7, %v4702_v22 }
 0x1d8   : > { %v1764_v26 = vpop.f32.mrf.mxu0  ;;  %v1823_v25 = vpop.f32.mrf.mxu1 }
 0x1e0   : > { %v1947_v38 = vpop.f32.mrf.mxu1 }
 0x1ec   : > { %v1736_v28 = vpop.f32.mrf.mxu3 }
 0x1ef   : > { %v1710_v29 = vpop.f32.mrf.mxu2 }
 0x1f0   : > { %v1737_v24 = vadd.f32 %v1736_v28, %v1710_v29  ;;  %v1924_v33 = vpop.f32.mrf.mxu0 }
 0x1f1   : > { %v1948_v52 = vadd.f32 %v1947_v38, %v1924_v33 }
 0x1f2   : > { %v1767_v32 = vadd.f32 %v1764_v26, %v1737_v24 }
 0x1f4   : > { %v1773_v51 = vadd.f32 %v4927_v31, %v1767_v32 }
 0x1f6   : > { %v1774_v27 = vmax.f32 %v1773_v51, 0.0  ;;  %v1871_v36 = vpop.f32.mrf.mxu3 }
 0x1f7   : > { %v1846_v34 = vpop.f32.mrf.mxu2 }
 0x1f8   : > { %v1776_v35 = vrot.slane %v1774_v27, 1  ;;  %v1777_v37 = vrot.slane %v1774_v27, 2  ;;  %v1778_v22 = vrot.slane %v1774_v27, 3  ;;  %1791 = vst.msk [vmem:[%s4932_s25] sm:$0x1] %vm1790_vm8, %v1774_v27  ;;  %v1779_v41 = vrot.slane %v1774_v27, 4  ;;  %v2048_v45 = vpop.f32.mrf.mxu0 }
 0x1f9   : > { %v1847_v30 = vadd.f32 %v1846_v34, %v1823_v25  ;;  %v1780_v42 = vrot.slane %v1774_v27, 5  ;;  %v1781_v43 = vrot.slane %v1774_v27, 6  ;;  %v1782_v0 = vrot.slane %v1774_v27, 7 }
 0x1fa   : > { %1792 = vst.msk [vmem:[%s4932_s25 + $0x10] sm:$0x1] %vm1790_vm8, %v1776_v35 }
 0x1fb   : > { %1793 = vst.msk [vmem:[%s4932_s25 + $0x20] sm:$0x1] %vm1790_vm8, %v1777_v37  ;;  %v1874_v44 = vadd.f32 %v1871_v36, %v1847_v30  ;;  %v2073_v59 = vpop.f32.mrf.mxu1 }
 0x1fc   : > { %1794 = vst.msk [vmem:[%s4932_s25 + $0x30] sm:$0x1] %vm1790_vm8, %v1778_v22 }
 0x1fd   : > { %1795 = vst.msk [vmem:[%s4932_s25 + $0x40] sm:$0x1] %vm1790_vm8, %v1779_v41  ;;  %v1875_v58 = vadd.f32 %v1874_v44, %v4927_v31 }
 0x1fe   : > { %1796 = vst.msk [vmem:[%s4932_s25 + $0x50] sm:$0x1] %vm1790_vm8, %v1780_v42  ;;  %v2025_v55 = vpop.f32.mrf.mxu3 }
 0x1ff   : > { %1797 = vst.msk [vmem:[%s4932_s25 + $0x60] sm:$0x1] %vm1790_vm8, %v1781_v43  ;;  %v1876_v53 = vmax.f32 %v1875_v58, 0.0  ;;  %v1972_v54 = vpop.f32.mrf.mxu2  ;;  %v2049_v60 = vadd.f32 %v2048_v45, %v2025_v55 }
 0x200   : > { %1798 = vst.msk [vmem:[%s4932_s25 + $0x70] sm:$0x1] %vm1790_vm8, %v1782_v0  ;;  %v1975_v56 = vadd.f32 %v1972_v54, %v1948_v52  ;;  %v2174_v6 = vpop.f32.mrf.mxu0 }
 0x201   : > { %v1878_v61 = vrot.slane %v1876_v53, 1  ;;  %v1879_v62 = vrot.slane %v1876_v53, 2  ;;  %v1880_v12 = vrot.slane %v1876_v53, 3  ;;  %1892 = vst.msk [vmem:[%s4932_s25 + $0x1] sm:$0x1] %vm1790_vm8, %v1876_v53  ;;  %v1881_v4 = vrot.slane %v1876_v53, 4 }
 0x202   : > { %v1976_v7 = vadd.f32 %v1975_v56, %v4927_v31  ;;  %v1882_v8 = vrot.slane %v1876_v53, 5  ;;  %v2076_v47 = vadd.f32 %v2073_v59, %v2049_v60  ;;  %v1883_v63 = vrot.slane %v1876_v53, 6 }
 0x203   : > { %1893 = vst.msk [vmem:[%s4932_s25 + $0x11] sm:$0x1] %vm1790_vm8, %v1878_v61  ;;  %v1884_v50 = vrot.slane %v1876_v53, 7  ;;  %v2227_v18 = vpop.f32.mrf.mxu1 }
 0x204   : > { %1894 = vst.msk [vmem:[%s4932_s25 + $0x21] sm:$0x1] %vm1790_vm8, %v1879_v62  ;;  %v1977_v9 = vmax.f32 %v1976_v7, 0.0  ;;  %v2077_v3 = vadd.f32 %v2076_v47, %v4927_v31 }
 0x205   : > { %1895 = vst.msk [vmem:[%s4932_s25 + $0x31] sm:$0x1] %vm1790_vm8, %v1880_v12 }
 0x206   : > { %1896 = vst.msk [vmem:[%s4932_s25 + $0x41] sm:$0x1] %vm1790_vm8, %v1881_v4  ;;  %v1979_v13 = vrot.slane %v1977_v9, 1  ;;  %v2149_v48 = vpop.f32.mrf.mxu3  ;;  %v1980_v1 = vrot.slane %v1977_v9, 2  ;;  %v1981_v2 = vrot.slane %v1977_v9, 3  ;;  %v1982_v14 = vrot.slane %v1977_v9, 4 }
 0x207   : > { %1897 = vst.msk [vmem:[%s4932_s25 + $0x51] sm:$0x1] %vm1790_vm8, %v1882_v8  ;;  %v2126_v10 = vpop.f32.mrf.mxu2  ;;  %v1983_v49 = vrot.slane %v1977_v9, 5  ;;  %v2078_v16 = vmax.f32 %v2077_v3, 0.0  ;;  %v1984_v17 = vrot.slane %v1977_v9, 6  ;;  %v1985_v19 = vrot.slane %v1977_v9, 7 }
 0x208   : > { %1898 = vst.msk [vmem:[%s4932_s25 + $0x61] sm:$0x1] %vm1790_vm8, %v1883_v63  ;;  %v2150_v57 = vadd.f32 %v2149_v48, %v2126_v10 }
 0x209   : > { %1899 = vst.msk [vmem:[%s4932_s25 + $0x71] sm:$0x1] %vm1790_vm8, %v1884_v50  ;;  %v2080_v20 = vrot.slane %v2078_v16, 1  ;;  %v2081_v15 = vrot.slane %v2078_v16, 2  ;;  %v2082_v11 = vrot.slane %v2078_v16, 3  ;;  %v2083_v23 = vrot.slane %v2078_v16, 4 }
 0x20a   : > { %1993 = vst.msk [vmem:[%s4932_s25 + $0x2] sm:$0x1] %vm1790_vm8, %v1977_v9  ;;  %v2177_v5 = vadd.f32 %v2174_v6, %v2150_v57  ;;  %v2328_v26 = vpop.f32.mrf.mxu0  ;;  %v2084_v28 = vrot.slane %v2078_v16, 5  ;;  %v2085_v24 = vrot.slane %v2078_v16, 6  ;;  %v2086_v32 = vrot.slane %v2078_v16, 7 }
 0x20b   : > { %1994 = vst.msk [vmem:[%s4932_s25 + $0x12] sm:$0x1] %vm1790_vm8, %v1979_v13 }
 0x20c   : > { %1995 = vst.msk [vmem:[%s4932_s25 + $0x22] sm:$0x1] %vm1790_vm8, %v1980_v1  ;;  %v2178_v39 = vadd.f32 %v2177_v5, %v4927_v31  ;;  %v2351_v33 = vpop.f32.mrf.mxu1 }
 0x20d   : > { %1996 = vst.msk [vmem:[%s4932_s25 + $0x32] sm:$0x1] %vm1790_vm8, %v1981_v2  ;;  %v2352_v37 = vadd.f32 %v2351_v33, %v2328_v26 }
 0x20e   : > { %1997 = vst.msk [vmem:[%s4932_s25 + $0x42] sm:$0x1] %vm1790_vm8, %v1982_v14  ;;  %v2275_v46 = vpop.f32.mrf.mxu3  ;;  %v2179_v25 = vmax.f32 %v2178_v39, 0.0 }
 0x20f   : > { %1998 = vst.msk [vmem:[%s4932_s25 + $0x52] sm:$0x1] %vm1790_vm8, %v1983_v49  ;;  %v2250_v40 = vpop.f32.mrf.mxu2 }
 0x210   : > { %1999 = vst.msk [vmem:[%s4932_s25 + $0x62] sm:$0x1] %vm1790_vm8, %v1984_v17  ;;  %v2251_v21 = vadd.f32 %v2250_v40, %v2227_v18  ;;  %v2181_v51 = vrot.slane %v2179_v25, 1  ;;  %v2182_v34 = vrot.slane %v2179_v25, 2  ;;  %v2183_v35 = vrot.slane %v2179_v25, 3 }
 0x211   : > { %2000 = vst.msk [vmem:[%s4932_s25 + $0x72] sm:$0x1] %vm1790_vm8, %v1985_v19  ;;  %v2184_v22 = vrot.slane %v2179_v25, 4  ;;  %v2185_v41 = vrot.slane %v2179_v25, 5  ;;  %v2186_v43 = vrot.slane %v2179_v25, 6  ;;  %v2187_v0 = vrot.slane %v2179_v25, 7 }
 0x212   : > { %2094 = vst.msk [vmem:[%s4932_s25 + $0x3] sm:$0x1] %vm1790_vm8, %v2078_v16  ;;  %v2278_v29 = vadd.f32 %v2275_v46, %v2251_v21  ;;  %v2452_v44 = vpop.f32.mrf.mxu0 }
 0x213   : > { %2095 = vst.msk [vmem:[%s4932_s25 + $0x13] sm:$0x1] %vm1790_vm8, %v2080_v20 }
 0x214   : > { %2096 = vst.msk [vmem:[%s4932_s25 + $0x23] sm:$0x1] %vm1790_vm8, %v2081_v15  ;;  %v2279_v27 = vadd.f32 %v2278_v29, %v4927_v31  ;;  %v2477_v56 = vpop.f32.mrf.mxu1 }
 0x215   : > { %2097 = vst.msk [vmem:[%s4932_s25 + $0x33] sm:$0x1] %vm1790_vm8, %v2082_v11 }
 0x216   : > { %2098 = vst.msk [vmem:[%s4932_s25 + $0x43] sm:$0x1] %vm1790_vm8, %v2083_v23  ;;  %v2280_v30 = vmax.f32 %v2279_v27, 0.0 }
 0x217   : > { %2099 = vst.msk [vmem:[%s4932_s25 + $0x53] sm:$0x1] %vm1790_vm8, %v2084_v28  ;;  %v2376_v36 = vpop.f32.mrf.mxu2  ;;  %v2429_v38 = vpop.f32.mrf.mxu3 }
 0x218   : > { %2100 = vst.msk [vmem:[%s4932_s25 + $0x63] sm:$0x1] %vm1790_vm8, %v2085_v24  ;;  %v2379_v42 = vadd.f32 %v2376_v36, %v2352_v37  ;;  %v2282_v58 = vrot.slane %v2280_v30, 1  ;;  %v2453_v52 = vadd.f32 %v2452_v44, %v2429_v38  ;;  %v2283_v53 = vrot.slane %v2280_v30, 2 }
 0x219   : > { %2101 = vst.msk [vmem:[%s4932_s25 + $0x73] sm:$0x1] %vm1790_vm8, %v2086_v32  ;;  %v2284_v54 = vrot.slane %v2280_v30, 3  ;;  %v2285_v55 = vrot.slane %v2280_v30, 4  ;;  %v2286_v61 = vrot.slane %v2280_v30, 5  ;;  %v2287_v4 = vrot.slane %v2280_v30, 6 }
 0x21a   : > { %2195 = vst.msk [vmem:[%s4932_s25 + $0x4] sm:$0x1] %vm1790_vm8, %v2179_v25  ;;  %v2380_v45 = vadd.f32 %v2379_v42, %v4927_v31  ;;  %v2480_v12 = vadd.f32 %v2477_v56, %v2453_v52  ;;  %v2288_v59 = vrot.slane %v2280_v30, 7  ;;  %v2578_v50 = vpop.f32.mrf.mxu0 }
 0x21b   : > { %2196 = vst.msk [vmem:[%s4932_s25 + $0x14] sm:$0x1] %vm1790_vm8, %v2181_v51 }
 0x21c   : > { %2197 = vst.msk [vmem:[%s4932_s25 + $0x24] sm:$0x1] %vm1790_vm8, %v2182_v34  ;;  %v2381_v62 = vmax.f32 %v2380_v45, 0.0  ;;  %v2481_v47 = vadd.f32 %v2480_v12, %v4927_v31 }
 0x21d   : > { %2198 = vst.msk [vmem:[%s4932_s25 + $0x34] sm:$0x1] %vm1790_vm8, %v2183_v35  ;;  %v2631_v6 = vpop.f32.mrf.mxu1 }
 0x21e   : > { %2199 = vst.msk [vmem:[%s4932_s25 + $0x44] sm:$0x1] %vm1790_vm8, %v2184_v22  ;;  %v2383_v8 = vrot.slane %v2381_v62, 1  ;;  %v2384_v9 = vrot.slane %v2381_v62, 2  ;;  %v2385_v13 = vrot.slane %v2381_v62, 3  ;;  %v2386_v3 = vrot.slane %v2381_v62, 4 }
 0x21f   : > { %2200 = vst.msk [vmem:[%s4932_s25 + $0x54] sm:$0x1] %vm1790_vm8, %v2185_v41  ;;  %v2530_v60 = vpop.f32.mrf.mxu2  ;;  %v2387_v10 = vrot.slane %v2381_v62, 5  ;;  %v2482_v48 = vmax.f32 %v2481_v47, 0.0  ;;  %v2388_v57 = vrot.slane %v2381_v62, 6  ;;  %v2389_v14 = vrot.slane %v2381_v62, 7 }
 0x220   : > { %2201 = vst.msk [vmem:[%s4932_s25 + $0x64] sm:$0x1] %vm1790_vm8, %v2186_v43  ;;  %v2553_v7 = vpop.f32.mrf.mxu3 }
 0x221   : > { %2202 = vst.msk [vmem:[%s4932_s25 + $0x74] sm:$0x1] %vm1790_vm8, %v2187_v0  ;;  %v2554_v63 = vadd.f32 %v2553_v7, %v2530_v60  ;;  %v2484_v49 = vrot.slane %v2482_v48, 1  ;;  %v2485_v17 = vrot.slane %v2482_v48, 2  ;;  %v2486_v19 = vrot.slane %v2482_v48, 3 }
 0x222   : > { %2296 = vst.msk [vmem:[%s4932_s25 + $0x5] sm:$0x1] %vm1790_vm8, %v2280_v30  ;;  %v2487_v20 = vrot.slane %v2482_v48, 4  ;;  %v2732_v39 = vpop.f32.mrf.mxu0  ;;  %v2488_v40 = vrot.slane %v2482_v48, 5  ;;  %v2489_v11 = vrot.slane %v2482_v48, 6  ;;  %v2490_v21 = vrot.slane %v2482_v48, 7 }
 0x223   : > { %2297 = vst.msk [vmem:[%s4932_s25 + $0x15] sm:$0x1] %vm1790_vm8, %v2282_v58  ;;  %v2581_v1 = vadd.f32 %v2578_v50, %v2554_v63 }
 0x224   : > { %2298 = vst.msk [vmem:[%s4932_s25 + $0x25] sm:$0x1] %vm1790_vm8, %v2283_v53 }
 0x225   : > { %2299 = vst.msk [vmem:[%s4932_s25 + $0x35] sm:$0x1] %vm1790_vm8, %v2284_v54  ;;  %v2582_v16 = vadd.f32 %v2581_v1, %v4927_v31  ;;  %v2755_v23 = vpop.f32.mrf.mxu1 }
 0x226   : > { %2300 = vst.msk [vmem:[%s4932_s25 + $0x45] sm:$0x1] %vm1790_vm8, %v2285_v55  ;;  %v2756_v32 = vadd.f32 %v2755_v23, %v2732_v39 }
 0x227   : > { %2301 = vst.msk [vmem:[%s4932_s25 + $0x55] sm:$0x1] %vm1790_vm8, %v2286_v61  ;;  %v2654_v2 = vpop.f32.mrf.mxu2  ;;  %v2583_v15 = vmax.f32 %v2582_v16, 0.0 }
 0x228   : > { %2302 = vst.msk [vmem:[%s4932_s25 + $0x65] sm:$0x1] %vm1790_vm8, %v2287_v4  ;;  %v2655_v5 = vadd.f32 %v2654_v2, %v2631_v6  ;;  %v2679_v18 = vpop.f32.mrf.mxu3 }
 0x229   : > { %2303 = vst.msk [vmem:[%s4932_s25 + $0x75] sm:$0x1] %vm1790_vm8, %v2288_v59  ;;  %v2585_v26 = vrot.slane %v2583_v15, 1  ;;  %v2586_v25 = vrot.slane %v2583_v15, 2  ;;  %v2587_v24 = vrot.slane %v2583_v15, 3  ;;  %v2588_v33 = vrot.slane %v2583_v15, 4 }
 0x22a   : > { %2397 = vst.msk [vmem:[%s4932_s25 + $0x6] sm:$0x1] %vm1790_vm8, %v2381_v62  ;;  %v2682_v46 = vadd.f32 %v2679_v18, %v2655_v5  ;;  %v2589_v27 = vrot.slane %v2583_v15, 5  ;;  %v2590_v35 = vrot.slane %v2583_v15, 6  ;;  %v2856_v37 = vpop.f32.mrf.mxu0  ;;  %v2591_v22 = vrot.slane %v2583_v15, 7 }
 0x22b   : > { %2398 = vst.msk [vmem:[%s4932_s25 + $0x16] sm:$0x1] %vm1790_vm8, %v2383_v8 }
 0x22c   : > { %2399 = vst.msk [vmem:[%s4932_s25 + $0x26] sm:$0x1] %vm1790_vm8, %v2384_v9  ;;  %v2683_v28 = vadd.f32 %v2682_v46, %v4927_v31 }
 0x22d   : > { %2400 = vst.msk [vmem:[%s4932_s25 + $0x36] sm:$0x1] %vm1790_vm8, %v2385_v13  ;;  %v2881_v0 = vpop.f32.mrf.mxu1 }
 0x22e   : > { %2401 = vst.msk [vmem:[%s4932_s25 + $0x46] sm:$0x1] %vm1790_vm8, %v2386_v3  ;;  %v2684_v34 = vmax.f32 %v2683_v28, 0.0 }
 0x22f   : > { %2402 = vst.msk [vmem:[%s4932_s25 + $0x56] sm:$0x1] %vm1790_vm8, %v2387_v10  ;;  %v2780_v29 = vpop.f32.mrf.mxu2 }
 0x230   : > { %2403 = vst.msk [vmem:[%s4932_s25 + $0x66] sm:$0x1] %vm1790_vm8, %v2388_v57  ;;  %v2833_v51 = vpop.f32.mrf.mxu3  ;;  %v2783_v36 = vadd.f32 %v2780_v29, %v2756_v32  ;;  %v2686_v38 = vrot.slane %v2684_v34, 1  ;;  %v2687_v42 = vrot.slane %v2684_v34, 2  ;;  %v2688_v43 = vrot.slane %v2684_v34, 3 }
 0x231   : > { %2404 = vst.msk [vmem:[%s4932_s25 + $0x76] sm:$0x1] %vm1790_vm8, %v2389_v14  ;;  %v2857_v30 = vadd.f32 %v2856_v37, %v2833_v51  ;;  %v2689_v44 = vrot.slane %v2684_v34, 4  ;;  %v2690_v45 = vrot.slane %v2684_v34, 5  ;;  %v2691_v54 = vrot.slane %v2684_v34, 6 }
 0x232   : > { %2498 = vst.msk [vmem:[%s4932_s25 + $0x7] sm:$0x1] %vm1790_vm8, %v2482_v48  ;;  %v2784_v41 = vadd.f32 %v2783_v36, %v4927_v31  ;;  %v2692_v56 = vrot.slane %v2684_v34, 7  ;;  %v2982_v4 = vpop.f32.mrf.mxu0 }
 0x233   : > { %2499 = vst.msk [vmem:[%s4932_s25 + $0x17] sm:$0x1] %vm1790_vm8, %v2484_v49  ;;  %v2884_v53 = vadd.f32 %v2881_v0, %v2857_v30 }
 0x234   : > { %2500 = vst.msk [vmem:[%s4932_s25 + $0x27] sm:$0x1] %vm1790_vm8, %v2485_v17  ;;  %v2785_v52 = vmax.f32 %v2784_v41, 0.0 }
 0x235   : > { %2501 = vst.msk [vmem:[%s4932_s25 + $0x37] sm:$0x1] %vm1790_vm8, %v2486_v19  ;;  %v2885_v61 = vadd.f32 %v2884_v53, %v4927_v31  ;;  %v3035_v50 = vpop.f32.mrf.mxu1 }
 0x236   : > { %2502 = vst.msk [vmem:[%s4932_s25 + $0x47] sm:$0x1] %vm1790_vm8, %v2487_v20  ;;  %v2787_v60 = vrot.slane %v2785_v52, 1  ;;  %v2788_v12 = vrot.slane %v2785_v52, 2  ;;  %v2789_v7 = vrot.slane %v2785_v52, 3  ;;  %v2790_v59 = vrot.slane %v2785_v52, 4 }
 0x237   : > { %2503 = vst.msk [vmem:[%s4932_s25 + $0x57] sm:$0x1] %vm1790_vm8, %v2488_v40  ;;  %v2934_v58 = vpop.f32.mrf.mxu2  ;;  %v2791_v8 = vrot.slane %v2785_v52, 5  ;;  %v2886_v47 = vmax.f32 %v2885_v61, 0.0  ;;  %v2792_v9 = vrot.slane %v2785_v52, 6  ;;  %v2793_v3 = vrot.slane %v2785_v52, 7 }
 0x238   : > { %2504 = vst.msk [vmem:[%s4932_s25 + $0x67] sm:$0x1] %vm1790_vm8, %v2489_v11  ;;  %v2957_v55 = vpop.f32.mrf.mxu3 }
 0x239   : > { %2505 = vst.msk [vmem:[%s4932_s25 + $0x77] sm:$0x1] %vm1790_vm8, %v2490_v21  ;;  %v2958_v62 = vadd.f32 %v2957_v55, %v2934_v58  ;;  %v2888_v10 = vrot.slane %v2886_v47, 1  ;;  %v2889_v57 = vrot.slane %v2886_v47, 2  ;;  %v2890_v6 = vrot.slane %v2886_v47, 3 }
 0x23a   : > { %2599 = vst.msk [vmem:[%s4932_s25 + $0x8] sm:$0x1] %vm1790_vm8, %v2583_v15  ;;  %v2891_v2 = vrot.slane %v2886_v47, 4  ;;  %v3136_v49 = vpop.f32.mrf.mxu0  ;;  %v2892_v16 = vrot.slane %v2886_v47, 5  ;;  %v2893_v18 = vrot.slane %v2886_v47, 6  ;;  %v2894_v19 = vrot.slane %v2886_v47, 7 }
 0x23b   : > { %2600 = vst.msk [vmem:[%s4932_s25 + $0x18] sm:$0x1] %vm1790_vm8, %v2585_v26  ;;  %v2985_v63 = vadd.f32 %v2982_v4, %v2958_v62 }
 0x23c   : > { %2601 = vst.msk [vmem:[%s4932_s25 + $0x28] sm:$0x1] %vm1790_vm8, %v2586_v25 }
 0x23d   : > { %2602 = vst.msk [vmem:[%s4932_s25 + $0x38] sm:$0x1] %vm1790_vm8, %v2587_v24  ;;  %v2986_v48 = vadd.f32 %v2985_v63, %v4927_v31  ;;  %v3159_v20 = vpop.f32.mrf.mxu1 }
 0x23e   : > { %2603 = vst.msk [vmem:[%s4932_s25 + $0x48] sm:$0x1] %vm1790_vm8, %v2588_v33  ;;  %v3160_v21 = vadd.f32 %v3159_v20, %v3136_v49 }
 0x23f   : > { %2604 = vst.msk [vmem:[%s4932_s25 + $0x58] sm:$0x1] %vm1790_vm8, %v2589_v27  ;;  %v3058_v13 = vpop.f32.mrf.mxu2  ;;  %v2987_v5 = vmax.f32 %v2986_v48, 0.0 }
 0x240   : > { %2605 = vst.msk [vmem:[%s4932_s25 + $0x68] sm:$0x1] %vm1790_vm8, %v2590_v35  ;;  %v3059_v1 = vadd.f32 %v3058_v13, %v3035_v50  ;;  %v3083_v14 = vpop.f32.mrf.mxu3 }
 0x241   : > { %2606 = vst.msk [vmem:[%s4932_s25 + $0x78] sm:$0x1] %vm1790_vm8, %v2591_v22  ;;  %v2989_v39 = vrot.slane %v2987_v5, 1  ;;  %v2990_v15 = vrot.slane %v2987_v5, 2  ;;  %v2991_v11 = vrot.slane %v2987_v5, 3  ;;  %v2992_v23 = vrot.slane %v2987_v5, 4 }
 0x242   : > { %2700 = vst.msk [vmem:[%s4932_s25 + $0x9] sm:$0x1] %vm1790_vm8, %v2684_v34  ;;  %v3086_v17 = vadd.f32 %v3083_v14, %v3059_v1  ;;  %v2993_v26 = vrot.slane %v2987_v5, 5  ;;  %v2994_v29 = vrot.slane %v2987_v5, 6  ;;  %v3260_v32 = vpop.f32.mrf.mxu0  ;;  %v2995_v33 = vrot.slane %v2987_v5, 7 }
 0x243   : > { %2701 = vst.msk [vmem:[%s4932_s25 + $0x19] sm:$0x1] %vm1790_vm8, %v2686_v38 }
 0x244   : > { %2702 = vst.msk [vmem:[%s4932_s25 + $0x29] sm:$0x1] %vm1790_vm8, %v2687_v42  ;;  %v3087_v40 = vadd.f32 %v3086_v17, %v4927_v31 }
 0x245   : > { %2703 = vst.msk [vmem:[%s4932_s25 + $0x39] sm:$0x1] %vm1790_vm8, %v2688_v43  ;;  %v3285_v35 = vpop.f32.mrf.mxu1 }
 0x246   : > { %2704 = vst.msk [vmem:[%s4932_s25 + $0x49] sm:$0x1] %vm1790_vm8, %v2689_v44  ;;  %v3088_v28 = vmax.f32 %v3087_v40, 0.0 }
 0x247   : > { %2705 = vst.msk [vmem:[%s4932_s25 + $0x59] sm:$0x1] %vm1790_vm8, %v2690_v45  ;;  %v3184_v46 = vpop.f32.mrf.mxu2 }
 0x248   : > { %2706 = vst.msk [vmem:[%s4932_s25 + $0x69] sm:$0x1] %vm1790_vm8, %v2691_v54  ;;  %v3187_v25 = vadd.f32 %v3184_v46, %v3160_v21  ;;  %v3237_v24 = vpop.f32.mrf.mxu3  ;;  %v3090_v51 = vrot.slane %v3088_v28, 1  ;;  %v3091_v36 = vrot.slane %v3088_v28, 2  ;;  %v3092_v37 = vrot.slane %v3088_v28, 3 }
 0x249   : > { %2707 = vst.msk [vmem:[%s4932_s25 + $0x79] sm:$0x1] %vm1790_vm8, %v2692_v56  ;;  %v3261_v34 = vadd.f32 %v3260_v32, %v3237_v24  ;;  %v3093_v22 = vrot.slane %v3088_v28, 4  ;;  %v3094_v38 = vrot.slane %v3088_v28, 5  ;;  %v3095_v42 = vrot.slane %v3088_v28, 6 }
 0x24a   : > { %2801 = vst.msk [vmem:[%s4932_s25 + $0xa] sm:$0x1] %vm1790_vm8, %v2785_v52  ;;  %v3188_v27 = vadd.f32 %v3187_v25, %v4927_v31  ;;  %v3096_v43 = vrot.slane %v3088_v28, 7 }
 0x24b   : > { %2802 = vst.msk [vmem:[%s4932_s25 + $0x1a] sm:$0x1] %vm1790_vm8, %v2787_v60  ;;  %v3288_v30 = vadd.f32 %v3285_v35, %v3261_v34 }
 0x24c   : > { %2803 = vst.msk [vmem:[%s4932_s25 + $0x2a] sm:$0x1] %vm1790_vm8, %v2788_v12  ;;  %v3189_v41 = vmax.f32 %v3188_v27, 0.0 }
 0x24d   : > { %2804 = vst.msk [vmem:[%s4932_s25 + $0x3a] sm:$0x1] %vm1790_vm8, %v2789_v7  ;;  %v3289_v0 = vadd.f32 %v3288_v30, %v4927_v31 }
 0x24e   : > { %2805 = vst.msk [vmem:[%s4932_s25 + $0x4a] sm:$0x1] %vm1790_vm8, %v2790_v59  ;;  %v3191_v44 = vrot.slane %v3189_v41, 1  ;;  %v3192_v58 = vrot.slane %v3189_v41, 2  ;;  %v3193_v45 = vrot.slane %v3189_v41, 3  ;;  %v3194_v52 = vrot.slane %v3189_v41, 4 }
 0x24f   : > { %2806 = vst.msk [vmem:[%s4932_s25 + $0x5a] sm:$0x1] %vm1790_vm8, %v2791_v8  ;;  %v3195_v53 = vrot.slane %v3189_v41, 5  ;;  %v3290_v54 = vmax.f32 %v3289_v0, 0.0  ;;  %v3196_v55 = vrot.slane %v3189_v41, 6  ;;  %v3197_v31 = vrot.slane %v3189_v41, 7 }
 0x250   : > { %2807 = vst.msk [vmem:[%s4932_s25 + $0x6a] sm:$0x1] %vm1790_vm8, %v2792_v9 }
 0x251   : > { %2808 = vst.msk [vmem:[%s4932_s25 + $0x7a] sm:$0x1] %vm1790_vm8, %v2793_v3  ;;  %v3292_v56 = vrot.slane %v3290_v54, 1  ;;  %v3293_v60 = vrot.slane %v3290_v54, 2  ;;  %v3294_v61 = vrot.slane %v3290_v54, 3  ;;  %v3295_v62 = vrot.slane %v3290_v54, 4 }
 0x252   : > { %2902 = vst.msk [vmem:[%s4932_s25 + $0xb] sm:$0x1] %vm1790_vm8, %v2886_v47  ;;  %v3296_v12 = vrot.slane %v3290_v54, 5  ;;  %v3297_v4 = vrot.slane %v3290_v54, 6  ;;  %v3298_v7 = vrot.slane %v3290_v54, 7 }
 0x253   : > { %2903 = vst.msk [vmem:[%s4932_s25 + $0x1b] sm:$0x1] %vm1790_vm8, %v2888_v10 }
 0x254   : > { %2904 = vst.msk [vmem:[%s4932_s25 + $0x2b] sm:$0x1] %vm1790_vm8, %v2889_v57 }
 0x255   : > { %2905 = vst.msk [vmem:[%s4932_s25 + $0x3b] sm:$0x1] %vm1790_vm8, %v2890_v6 }
 0x256   : > { %2906 = vst.msk [vmem:[%s4932_s25 + $0x4b] sm:$0x1] %vm1790_vm8, %v2891_v2 }
 0x257   : > { %2907 = vst.msk [vmem:[%s4932_s25 + $0x5b] sm:$0x1] %vm1790_vm8, %v2892_v16 }
 0x258   : > { %2908 = vst.msk [vmem:[%s4932_s25 + $0x6b] sm:$0x1] %vm1790_vm8, %v2893_v18 }
 0x259   : > { %2909 = vst.msk [vmem:[%s4932_s25 + $0x7b] sm:$0x1] %vm1790_vm8, %v2894_v19 }
 0x25a   : > { %3003 = vst.msk [vmem:[%s4932_s25 + $0xc] sm:$0x1] %vm1790_vm8, %v2987_v5 }
 0x25b   : > { %3004 = vst.msk [vmem:[%s4932_s25 + $0x1c] sm:$0x1] %vm1790_vm8, %v2989_v39 }
 0x25c   : > { %3005 = vst.msk [vmem:[%s4932_s25 + $0x2c] sm:$0x1] %vm1790_vm8, %v2990_v15 }
 0x25d   : > { %3006 = vst.msk [vmem:[%s4932_s25 + $0x3c] sm:$0x1] %vm1790_vm8, %v2991_v11 }
 0x25e   : > { %3007 = vst.msk [vmem:[%s4932_s25 + $0x4c] sm:$0x1] %vm1790_vm8, %v2992_v23 }
 0x25f   : > { %3008 = vst.msk [vmem:[%s4932_s25 + $0x5c] sm:$0x1] %vm1790_vm8, %v2993_v26 }
 0x260   : > { %3009 = vst.msk [vmem:[%s4932_s25 + $0x6c] sm:$0x1] %vm1790_vm8, %v2994_v29 }
 0x261   : > { %3010 = vst.msk [vmem:[%s4932_s25 + $0x7c] sm:$0x1] %vm1790_vm8, %v2995_v33 }
 0x262   : > { %3104 = vst.msk [vmem:[%s4932_s25 + $0xd] sm:$0x1] %vm1790_vm8, %v3088_v28 }
 0x263   : > { %3105 = vst.msk [vmem:[%s4932_s25 + $0x1d] sm:$0x1] %vm1790_vm8, %v3090_v51 }
 0x264   : > { %3106 = vst.msk [vmem:[%s4932_s25 + $0x2d] sm:$0x1] %vm1790_vm8, %v3091_v36 }
 0x265   : > { %3107 = vst.msk [vmem:[%s4932_s25 + $0x3d] sm:$0x1] %vm1790_vm8, %v3092_v37 }
 0x266   : > { %3108 = vst.msk [vmem:[%s4932_s25 + $0x4d] sm:$0x1] %vm1790_vm8, %v3093_v22 }
 0x267   : > { %3109 = vst.msk [vmem:[%s4932_s25 + $0x5d] sm:$0x1] %vm1790_vm8, %v3094_v38 }
 0x268   : > { %3110 = vst.msk [vmem:[%s4932_s25 + $0x6d] sm:$0x1] %vm1790_vm8, %v3095_v42 }
 0x269   : > { %3111 = vst.msk [vmem:[%s4932_s25 + $0x7d] sm:$0x1] %vm1790_vm8, %v3096_v43 }
 0x26a   : > { %3205 = vst.msk [vmem:[%s4932_s25 + $0xe] sm:$0x1] %vm1790_vm8, %v3189_v41 }
 0x26b   : > { %3206 = vst.msk [vmem:[%s4932_s25 + $0x1e] sm:$0x1] %vm1790_vm8, %v3191_v44 }
 0x26c   : > { %3207 = vst.msk [vmem:[%s4932_s25 + $0x2e] sm:$0x1] %vm1790_vm8, %v3192_v58 }
 0x26d   : > { %3208 = vst.msk [vmem:[%s4932_s25 + $0x3e] sm:$0x1] %vm1790_vm8, %v3193_v45 }
 0x26e   : > { %3209 = vst.msk [vmem:[%s4932_s25 + $0x4e] sm:$0x1] %vm1790_vm8, %v3194_v52 }
 0x26f   : > { %3210 = vst.msk [vmem:[%s4932_s25 + $0x5e] sm:$0x1] %vm1790_vm8, %v3195_v53 }
 0x270   : > { %3211 = vst.msk [vmem:[%s4932_s25 + $0x6e] sm:$0x1] %vm1790_vm8, %v3196_v55 }
 0x271   : > { %3212 = vst.msk [vmem:[%s4932_s25 + $0x7e] sm:$0x1] %vm1790_vm8, %v3197_v31 }
 0x272   : > { %3306 = vst.msk [vmem:[%s4932_s25 + $0xf] sm:$0x1] %vm1790_vm8, %v3290_v54 }
 0x273   : > { %3307 = vst.msk [vmem:[%s4932_s25 + $0x1f] sm:$0x1] %vm1790_vm8, %v3292_v56 }
 0x274   : > { %3308 = vst.msk [vmem:[%s4932_s25 + $0x2f] sm:$0x1] %vm1790_vm8, %v3293_v60 }
 0x275   : > { %3309 = vst.msk [vmem:[%s4932_s25 + $0x3f] sm:$0x1] %vm1790_vm8, %v3294_v61 }
 0x276   : > { %3310 = vst.msk [vmem:[%s4932_s25 + $0x4f] sm:$0x1] %vm1790_vm8, %v3295_v62 }
 0x277   : > { %3311 = vst.msk [vmem:[%s4932_s25 + $0x5f] sm:$0x1] %vm1790_vm8, %v3296_v12 }
 0x278   : > { %3312 = vst.msk [vmem:[%s4932_s25 + $0x6f] sm:$0x1] %vm1790_vm8, %v3297_v4 }
 0x279   : > { %3313 = vst.msk [vmem:[%s4932_s25 + $0x7f] sm:$0x1] %vm1790_vm8, %v3298_v7 }
 0x27a   : > { %s3687_s15 = sshll.u32 %s3920_s8, 1  ;;  %s3688_s24 = sshll.u32 %s3924_s9, 5 }
 0x27b   : > { %s3326_s27 = sadd.s32 %s3688_s24, %s3687_s15  ;;  %s3339_s13 = sshll.u32 %s4932_s25, 4  ;;  %s3340_s13 = int_to_ptr.vmem [resolvable:$true] %s3339_s13 }
 0x27c   : > { %s3689_s14 = sshll.u32 %s3326_s27, 3  ;;  %s3942_s21 = smov 256  }
 0x27d   : > { %s3328_s3 = scalar_lea.hbm %s5262_s7, %s3689_s14  ;;  %3765 = sst [smem:[#allocation8]] (%p4043_p3), %s3942_s21 }
 0x27e   : > { %s3341_s20 = sshll.u32 %s3328_s3, 4  ;;  %s3943_s16 = smov 512   ;;  %s3342_s20 = int_to_ptr.hbm [resolvable:$true] %s3341_s20 }
 0x27f   : > { %3766 = sst [smem:[#allocation8 + $0x1]] (%p4043_p3), %s3943_s16  ;;  %s3944_s8 = smov 2  }
 0x280   : > { %3767 = sst [smem:[#allocation8 + $0x2]] (%p4043_p3), %s3944_s8  ;;  %s3945_s9 = smov 128  }
 0x281   : > { %3768 = sst [smem:[#allocation8 + $0x3]] (%p4043_p3), %s3945_s9  ;;  %s3946_s1 = smov 8  }
 0x282   : > { %3769 = sst [smem:[#allocation8 + $0x4]] (%p4043_p3), %s3945_s9  ;;  %s3947_s2 = smov [#allocation7]  }
 0x283   : > { %3770 = sst [smem:[#allocation8 + $0x5]] (%p4043_p3), %s3946_s1  ;;  %s3948_s23 = smov 0  }
 0x284   : > { %3771 = dma.general (%p4043_p3), %s3340_s13, 2048, %s3342_s20, %s3315_s12, %s3947_s2, [#allocation8], %s3948_s23, 0  }
 0x285 PF: > { %p3777_p13 = scmp.ge.s32.totalorder %s3936_s11, 2  ;;  %s3369_s25 = sand.u32 1, %s3908_s28  }
 0x286   : > { %s3370_s15 = scalar_lea.sflag [#allocation6], %s3369_s25 }
 0x287   : > { %p3774_p0 = pnand %p3777_p13, %p4052_p8 }
 0x289   : > { %p3775_p1 = pneg %p3774_p0 }
 0x28b   : > { %3903 = dma.done.wait (%p3775_p1), %s3370_s15, 2048  }
 0x28c   : > { %3905 = vsyncadd (%p3775_p1), %s3370_s15, 4294965248  ;;  %s28_s11 = sadd.s32 1, %s3936_s11   ;;  %s5276_s17 = sld [smem:[#allocation11_spill]] }
 0x28d   : > { %p25_p2 = scmp.ge.s32.totalorder %s28_s11, 6   ;;  %s5277_s12 = sld [smem:[#allocation12_spill]] }
 0x28e   : > { %s5278_s28 = smov %s3912_s29  ;;  %s5279_s29 = smov %s3916_s30 }
 0x28f   : > { %s5280_s30 = smov %s4061_s22  ;;  %s5281_s8 = smov %s3928_s10 }
 0x290   : > { %s5282_s9 = smov %s3932_s0  ;;  %27 = sbr.rel (!%p25_p2) target bundleno = 13 (0xd), region = 141 }
 0x292   : > { %s5283_s10 = smov %s5276_s17 }
 0x293   : > { %s5284_s0 = smov %s5277_s12 }
 0x295   :  { %3376 = vsyncpa [#allocation6], 1 }
 0x296   :  { %3378 = vsyncpa [#allocation6 + $0x1], 1 }

</bundles_post_ra>
